<compile_context>
chip_gen: v7x
topology: tpu7x:2x2x1
jax: 0.10.0
libtpu: 0.0.40
codegen_flags: <defaults>
</compile_context>

<pallas_src>
import functools

import jax
import jax.numpy as jnp
from jax import lax
from jax.experimental import pallas as pl
from jax.experimental.pallas import tpu as pltpu

HIDDEN = 128
EPS = 1e-5
HIGHEST = jax.lax.Precision.HIGHEST   # reference only


def _ds(start, size, align):
    """Slice helper: static ints slice directly, tracers carry an alignment hint."""
    if isinstance(start, int):
        return pl.ds(start, size)
    return pl.ds(pl.multiple_of(start, align), size)


# ----------------------------------------------------------------------------
# Fused kernel: conv+BN+ReLU+pool -> 2-layer biLSTM -> FC head (all VMEM resident)
# ----------------------------------------------------------------------------
def _fused_kernel(x2_ref, wc_ref, s1_ref, sh1_ref,
                  w0_ref, b0_ref, u0f_ref, u0b_ref,
                  w1_ref, b1_ref, u1f_ref, u1b_ref,
                  fw1_ref, s2_ref, sh2_ref, fw2_ref, b2_ref,
                  o_ref, gx_scr, y0_scr, y1_scr, *, R, T):
    """R = padded batch rows handled by this program, T = pooled sequence length."""
    H = HIDDEN
    TB = T * R

    # ---- Conv1d(k=3,p=1) + BN + ReLU + MaxPool(2) -------------------------------
    # Even/odd output positions are stacked along rows -> one MXU matmul; pooling is
    # an elementwise max of the two halves; BN + conv bias folded into scale/shift.
    y = jnp.dot(x2_ref[...], wc_ref[...], preferred_element_type=jnp.float32)  # (2*TB, 64)
    scale = s1_ref[...]
    shift = sh1_ref[...]
    ye = y[:TB] * scale + shift
    yo = y[TB:] * scale + shift
    feats = jnp.maximum(jnp.maximum(ye, yo), 0.0)          # (TB, 64) f32, time-major rows

    def cell(g, c_prev):
        # PyTorch gate order i, f, g, o.  Elementwise math stays f32.
        i = jax.nn.sigmoid(g[:, 0 * H:1 * H])
        f = jax.nn.sigmoid(g[:, 1 * H:2 * H])
        gg = jnp.tanh(g[:, 2 * H:3 * H])
        o = jax.nn.sigmoid(g[:, 3 * H:4 * H])
        c_new = f * c_prev + i * gg
        return o * jnp.tanh(c_new), c_new

    def run_layer(uf_ref, ub_ref, store):
        # Per-direction recurrent weights (no block-diagonal zero work); h/c carried as
        # four separate arrays (no per-step concatenation); bf16 operands on the MXU.
        uf = uf_ref[...]
        ub = ub_ref[...]

        def step(t, carry):
            h_f, c_f, h_b, c_b = carry
            rt = T - 1 - t
            gf = (jnp.dot(h_f.astype(jnp.bfloat16), uf, preferred_element_type=jnp.float32)
                  + gx_scr[_ds(t * R, R, R), 0:4 * H])
            gb = (jnp.dot(h_b.astype(jnp.bfloat16), ub, preferred_element_type=jnp.float32)
                  + gx_scr[_ds(rt * R, R, R), 4 * H:8 * H])
            h_f, c_f = cell(gf, c_f)
            h_b, c_b = cell(gb, c_b)
            store(t, rt, h_f, h_b)
            return h_f, c_f, h_b, c_b

        zero = jnp.zeros((R, H), jnp.float32)
        carry = (zero, zero, zero, zero)
        if T <= 16:                      # tiny T: full unroll, purely static slices
            for t in range(T):
                carry = step(t, carry)
        else:                            # long T: bounded live ranges / compile time
            _ = lax.fori_loop(0, T, step, carry)

    # ---- layer 0: input projection for BOTH directions hoisted out of recurrence ----
    gx_scr[...] = jnp.dot(feats.astype(jnp.bfloat16), w0_ref[...],
                          preferred_element_type=jnp.float32) + b0_ref[...]

    def store0(t, rt, h_f, h_b):         # time-major rows (row = t*R + b), [fwd | bwd] lanes
        y0_scr[_ds(t * R, R, R), 0:H] = h_f
        y0_scr[_ds(rt * R, R, R), H:2 * H] = h_b

    run_layer(u0f_ref, u0b_ref, store0)

    # ---- layer 1 (inter-layer dropout = identity in eval mode) ----------------------
    gx_scr[...] = jnp.dot(y0_scr[...].astype(jnp.bfloat16), w1_ref[...],
                          preferred_element_type=jnp.float32) + b1_ref[...]

    def store1(t, rt, h_f, h_b):
        # Final layer writes straight into the (R, T*2H) flatten layout used by fc1;
        # lane offsets are multiples of 128 so the stores stay lane-aligned.
        y1_scr[:, _ds(t * 2 * H, H, 2 * H)] = h_f
        y1_scr[:, _ds(rt * 2 * H + H, H, H)] = h_b

    run_layer(u1f_ref, u1b_ref, store1)

    # ---- FC head fused into the epilogue (activations never leave VMEM) -------------
    z = jnp.dot(y1_scr[...].astype(jnp.bfloat16), fw1_ref[...],
                preferred_element_type=jnp.float32)
    z = jnp.maximum(z * s2_ref[...] + sh2_ref[...], 0.0)
    o_ref[...] = jnp.dot(z.astype(jnp.bfloat16), fw2_ref[...],
                         preferred_element_type=jnp.float32) + b2_ref[...]


# ----------------------------------------------------------------------------
# Full forward (Pallas)
# ----------------------------------------------------------------------------
def forward_pallas(x, p):
    x = x.astype(jnp.float32)
    B, S, Cin = x.shape
    H = HIDDEN
    T = S // 2
    pred_len = p["fc2_w"].shape[-1]

    # ---- batch padding to full sublanes; 2-way batch-tile grid when it stays >= 8 ----
    Bp = max(8, ((B + 7) // 8) * 8)
    nb = 2 if Bp % 16 == 0 else 1            # second program only if each tile keeps 8+ rows
    R = Bp // nb

    # ---- wrapper-side im2col + even/odd split (layout plumbing only) ----------------
    xpad = jnp.pad(x, ((0, Bp - B), (1, 1), (0, 0)))
    xcat = jnp.concatenate([xpad[:, 0:S], xpad[:, 1:S + 1], xpad[:, 2:S + 2]], axis=-1)
    xcat = xcat[:, :2 * T]                                       # (Bp, 2T, 3Cin)

    def tile_time_major(z):                                      # (Bp, T, 3Cin) -> (nb, T*R, 3Cin)
        return (z.reshape(nb, R, T, 3 * Cin)
                 .transpose(0, 2, 1, 3)
                 .reshape(nb, T * R, 3 * Cin))

    x_even = tile_time_major(xcat[:, 0::2])
    x_odd = tile_time_major(xcat[:, 1::2])
    x2 = jnp.concatenate([x_even, x_odd], axis=1).astype(jnp.bfloat16)   # (nb, 2*T*R, 3Cin)

    wc = p["conv_w"].reshape(3 * Cin, 64).astype(jnp.bfloat16)
    s1v = p["bn1_gamma"] / jnp.sqrt(p["bn1_var"] + EPS)
    s1 = s1v.reshape(1, -1)
    sh1 = ((p["conv_b"] - p["bn1_mean"]) * s1v + p["bn1_beta"]).reshape(1, -1)

    # ---- LSTM weights: fused [fwd|bwd] input projections, per-direction recurrent ----
    def layer_weights(layer):
        fwd, bwd = p["lstm"][layer]
        w = jnp.concatenate([fwd["wih"], bwd["wih"]], axis=-1).astype(jnp.bfloat16)
        b = jnp.concatenate([fwd["b"], bwd["b"]], axis=-1)
        return w, b, fwd["whh"].astype(jnp.bfloat16), bwd["whh"].astype(jnp.bfloat16)

    w0, b0, u0f, u0b = layer_weights(0)
    w1, b1, u1f, u1b = layer_weights(1)

    # ---- FC head params (BN folded, output padded to 128 lanes) ----------------------
    s2v = p["bn2_gamma"] / jnp.sqrt(p["bn2_var"] + EPS)
    s2 = s2v.reshape(1, -1)
    sh2 = ((p["fc1_b"] - p["bn2_mean"]) * s2v + p["bn2_beta"]).reshape(1, -1)
    fw1 = p["fc1_w"].astype(jnp.bfloat16)                        # (T*2H, 256)
    Ppad = ((pred_len + 127) // 128) * 128
    fw2 = jnp.zeros((256, Ppad), jnp.bfloat16).at[:, :pred_len].set(
        p["fc2_w"].astype(jnp.bfloat16))
    b2 = jnp.zeros((1, Ppad), jnp.float32).at[:, :pred_len].set(p["fc2_b"].reshape(1, -1))

    inputs = (x2, wc, s1, sh1, w0, b0, u0f, u0b, w1, b1, u1f, u1b, fw1, s2, sh2, fw2, b2)

    def bcast2(a):                          # weights/biases shared by every grid program
        return pl.BlockSpec(a.shape, lambda j: (0, 0))

    in_specs = [pl.BlockSpec((pl.Squeezed(), 2 * T * R, 3 * Cin), lambda j: (j, 0, 0))]
    in_specs += [bcast2(a) for a in inputs[1:]]

    # ---- explicit VMEM budget (v7x has 64 MiB physical / 32 MiB default scoped) ------
    in_bytes = sum(int(a.size) * a.dtype.itemsize for a in inputs)
    scratch_bytes = 4 * (T * R * 8 * H + T * R * 2 * H + R * T * 2 * H)
    out_bytes = 4 * Bp * Ppad
    vmem_limit = int(min(48 << 20,
                         max(16 << 20, 2 * (in_bytes + out_bytes) + scratch_bytes + (4 << 20))))
    # TODO(synk): for very large T the resident fc1 weight / gx scratch exceed this budget;
    #             that regime needs a K-tiled FC-head kernel and bf16 gx storage.

    cost = pl.CostEstimate(
        flops=int(2 * (2 * T * Bp * 3 * Cin * 64 + T * Bp * 64 * 8 * H + T * Bp * 2 * H * 8 * H
                       + 2 * 2 * T * Bp * H * 4 * H + Bp * T * 2 * H * 256 + Bp * 256 * Ppad)),
        transcendentals=int(2 * 2 * T * Bp * 5 * H),
        bytes_accessed=int(in_bytes + out_bytes))

    out = pl.pallas_call(
        functools.partial(_fused_kernel, R=R, T=T),
        grid=(nb,),
        in_specs=in_specs,
        out_specs=pl.BlockSpec((R, Ppad), lambda j: (j, 0)),
        out_shape=jax.ShapeDtypeStruct((Bp, Ppad), jnp.float32),
        scratch_shapes=[pltpu.VMEM((T * R, 8 * H), jnp.float32),   # hoisted input-projection gates
                        pltpu.VMEM((T * R, 2 * H), jnp.float32),   # layer-0 bidirectional output
                        pltpu.VMEM((R, T * 2 * H), jnp.float32)],  # layer-1 output in fc1 layout
        compiler_params=pltpu.CompilerParams(
            dimension_semantics=("parallel",),
            vmem_limit_bytes=vmem_limit),
        cost_estimate=cost,
    )(*inputs)

    return out[:B, :pred_len]


# ----------------------------------------------------------------------------
# Pure-JAX fp32 reference (same math, no Pallas) for the correctness check
# ----------------------------------------------------------------------------
def forward_reference(x, p):
    B, S, _ = x.shape
    xp = jnp.pad(x, ((0, 0), (1, 1), (0, 0)))
    y = sum(jnp.einsum("btc,cd->btd", xp[:, k:k + S], p["conv_w"][k], precision=HIGHEST)
            for k in range(3)) + p["conv_b"]
    s1 = p["bn1_gamma"] / jnp.sqrt(p["bn1_var"] + EPS)
    y = jnp.maximum((y - p["bn1_mean"]) * s1 + p["bn1_beta"], 0.0)
    y = jnp.max(y.reshape(B, S // 2, 2, -1), axis=2)        # maxpool(2)

    def run_dir(x_seq, wih, whh, b):
        H = whh.shape[0]

        def step(carry, xt):
            h, c = carry
            g_all = (jnp.dot(xt, wih, precision=HIGHEST)
                     + jnp.dot(h, whh, precision=HIGHEST) + b)
            i = jax.nn.sigmoid(g_all[:, :H])
            f = jax.nn.sigmoid(g_all[:, H:2 * H])
            g = jnp.tanh(g_all[:, 2 * H:3 * H])
            o = jax.nn.sigmoid(g_all[:, 3 * H:])
            c = f * c + i * g
            h = o * jnp.tanh(c)
            return (h, c), h

        init = (jnp.zeros((B, H), jnp.float32), jnp.zeros((B, H), jnp.float32))
        _, hs = jax.lax.scan(step, init, x_seq)
        return hs

    h = jnp.transpose(y, (1, 0, 2))
    for layer in range(2):
        fwd_p, bwd_p = p["lstm"][layer]
        hf = run_dir(h, fwd_p["wih"], fwd_p["whh"], fwd_p["b"])
        hb = jnp.flip(run_dir(jnp.flip(h, 0), bwd_p["wih"], bwd_p["whh"], bwd_p["b"]), 0)
        h = jnp.concatenate([hf, hb], axis=-1)

    flat = jnp.transpose(h, (1, 0, 2)).reshape(B, -1)
    s2 = p["bn2_gamma"] / jnp.sqrt(p["bn2_var"] + EPS)
    z = jnp.dot(flat, p["fc1_w"], precision=HIGHEST) + p["fc1_b"]
    z = jnp.maximum((z - p["bn2_mean"]) * s2 + p["bn2_beta"], 0.0)
    return jnp.dot(z, p["fc2_w"], precision=HIGHEST) + p["fc2_b"]


# ----------------------------------------------------------------------------
# Deterministic parameter initialization (shapes from the PyTorch __init__)
# ----------------------------------------------------------------------------
def init_params(key, input_size, seq_len, pred_len):
    ks = jax.random.split(key, 20)

    def u(k, shape, fan_in):
        bound = 1.0 / jnp.sqrt(jnp.float32(fan_in))
        return jax.random.uniform(k, shape, jnp.float32, -bound, bound)

    p = {}
    # Conv1d(Cin -> 64, k=3): PyTorch weight (64, Cin, 3) stored here as (3, Cin, 64)
    p["conv_w"] = u(ks[0], (3, input_size, 64), 3 * input_size)
    p["conv_b"] = u(ks[1], (64,), 3 * input_size)
    p["bn1_gamma"] = 1.0 + 0.1 * jax.random.normal(ks[2], (64,), jnp.float32)
    p["bn1_beta"] = 0.1 * jax.random.normal(ks[3], (64,), jnp.float32)
    p["bn1_mean"] = 0.05 * jax.random.normal(ks[4], (64,), jnp.float32)
    p["bn1_var"] = 1.0 + 0.1 * jax.random.uniform(ks[5], (64,), jnp.float32)

    # Bidirectional 2-layer LSTM, hidden=128, gate order i,f,g,o.
    H = HIDDEN
    lstm = []
    kidx = 6
    for layer in range(2):
        din = 64 if layer == 0 else 2 * H
        dirs = []
        for _d in range(2):
            kk = jax.random.split(ks[kidx], 4)
            kidx += 1
            wih = u(kk[0], (din, 4 * H), H)          # PyTorch weight_ih (4H, Din) transposed
            whh = u(kk[1], (H, 4 * H), H)            # PyTorch weight_hh (4H, H) transposed
            b_ih = u(kk[2], (4 * H,), H)
            b_hh = u(kk[3], (4 * H,), H)
            dirs.append({"wih": wih, "whh": whh, "b": (b_ih + b_hh).reshape(1, 4 * H)})
        lstm.append(dirs)
    p["lstm"] = lstm

    d_flat = 2 * H * (seq_len // 2)
    p["fc1_w"] = u(ks[12], (d_flat, 256), d_flat)    # PyTorch Linear weight (256, d_flat) transposed
    p["fc1_b"] = u(ks[13], (256,), d_flat)
    p["bn2_gamma"] = 1.0 + 0.1 * jax.random.normal(ks[14], (256,), jnp.float32)
    p["bn2_beta"] = 0.1 * jax.random.normal(ks[15], (256,), jnp.float32)
    p["bn2_mean"] = 0.05 * jax.random.normal(ks[16], (256,), jnp.float32)
    p["bn2_var"] = 1.0 + 0.1 * jax.random.uniform(ks[17], (256,), jnp.float32)
    p["fc2_w"] = u(ks[18], (256, pred_len), 256)
    p["fc2_b"] = u(ks[19], (pred_len,), 256)
    return p


if __name__ == "__main__":
    B, SEQ_LEN, INPUT_SIZE, PRED_LEN = 2, 8, 4, 1

    key = jax.random.PRNGKey(0)
    kx, kp = jax.random.split(key)
    x = jax.random.normal(kx, (B, SEQ_LEN, INPUT_SIZE), jnp.float32)
    params = init_params(kp, INPUT_SIZE, SEQ_LEN, PRED_LEN)

    out = jax.jit(forward_pallas)(x, params)
    out = jax.block_until_ready(out)
    assert out.shape == (B, PRED_LEN), out.shape

    ref = forward_reference(x, params)
    err = float(jnp.max(jnp.abs(out - ref)))
    # bf16 MXU operands (f32 accumulation) vs. an fp32 HIGHEST reference.
    assert err < 3e-2, f"Pallas vs reference mismatch: max abs err = {err}"

    print("KERNEL_OK")
</pallas_src>

<mosaic_0001>
module attributes {stable_mosaic.version = 11 : i64} {
  func.func @_fused_kernel(%arg0: i32, %arg1: memref<1x64x12xbf16, #tpu.memory_space<vmem>>, %arg2: memref<12x64xbf16, #tpu.memory_space<vmem>>, %arg3: memref<1x64xf32, #tpu.memory_space<vmem>>, %arg4: memref<1x64xf32, #tpu.memory_space<vmem>>, %arg5: memref<64x1024xbf16, #tpu.memory_space<vmem>>, %arg6: memref<1x1024xf32, #tpu.memory_space<vmem>>, %arg7: memref<128x512xbf16, #tpu.memory_space<vmem>>, %arg8: memref<128x512xbf16, #tpu.memory_space<vmem>>, %arg9: memref<256x1024xbf16, #tpu.memory_space<vmem>>, %arg10: memref<1x1024xf32, #tpu.memory_space<vmem>>, %arg11: memref<128x512xbf16, #tpu.memory_space<vmem>>, %arg12: memref<128x512xbf16, #tpu.memory_space<vmem>>, %arg13: memref<1024x256xbf16, #tpu.memory_space<vmem>>, %arg14: memref<1x256xf32, #tpu.memory_space<vmem>>, %arg15: memref<1x256xf32, #tpu.memory_space<vmem>>, %arg16: memref<256x128xbf16, #tpu.memory_space<vmem>>, %arg17: memref<1x128xf32, #tpu.memory_space<vmem>>, %arg18: memref<8x128xf32, #tpu.memory_space<vmem>>, %arg19: memref<32x1024xf32, #tpu.memory_space<vmem>>, %arg20: memref<32x256xf32, #tpu.memory_space<vmem>>, %arg21: memref<8x1024xf32, #tpu.memory_space<vmem>>) attributes {dimension_semantics = [#tpu.dimension_semantics<parallel>], iteration_bounds = array<i64: 1>, scalar_prefetch = 0 : i64, scratch_operands = 3 : i64, tpu.core_type = #tpu.core_type<tc>, window_params = [{transform_indices = @transform_0, window_bounds = array<i64: 1, 64, 12>}, {pipeline_mode = #tpu.pipeline_mode<synchronous>, transform_indices = @transform_1, window_bounds = array<i64: 12, 64>}, {pipeline_mode = #tpu.pipeline_mode<synchronous>, transform_indices = @transform_2, window_bounds = array<i64: 1, 64>}, {pipeline_mode = #tpu.pipeline_mode<synchronous>, transform_indices = @transform_3, window_bounds = array<i64: 1, 64>}, {pipeline_mode = #tpu.pipeline_mode<synchronous>, transform_indices = @transform_4, window_bounds = array<i64: 64, 1024>}, {pipeline_mode = #tpu.pipeline_mode<synchronous>, transform_indices = @transform_5, window_bounds = array<i64: 1, 1024>}, {pipeline_mode = #tpu.pipeline_mode<synchronous>, transform_indices = @transform_6, window_bounds = array<i64: 128, 512>}, {pipeline_mode = #tpu.pipeline_mode<synchronous>, transform_indices = @transform_7, window_bounds = array<i64: 128, 512>}, {pipeline_mode = #tpu.pipeline_mode<synchronous>, transform_indices = @transform_8, window_bounds = array<i64: 256, 1024>}, {pipeline_mode = #tpu.pipeline_mode<synchronous>, transform_indices = @transform_9, window_bounds = array<i64: 1, 1024>}, {pipeline_mode = #tpu.pipeline_mode<synchronous>, transform_indices = @transform_10, window_bounds = array<i64: 128, 512>}, {pipeline_mode = #tpu.pipeline_mode<synchronous>, transform_indices = @transform_11, window_bounds = array<i64: 128, 512>}, {pipeline_mode = #tpu.pipeline_mode<synchronous>, transform_indices = @transform_12, window_bounds = array<i64: 1024, 256>}, {pipeline_mode = #tpu.pipeline_mode<synchronous>, transform_indices = @transform_13, window_bounds = array<i64: 1, 256>}, {pipeline_mode = #tpu.pipeline_mode<synchronous>, transform_indices = @transform_14, window_bounds = array<i64: 1, 256>}, {pipeline_mode = #tpu.pipeline_mode<synchronous>, transform_indices = @transform_15, window_bounds = array<i64: 256, 128>}, {pipeline_mode = #tpu.pipeline_mode<synchronous>, transform_indices = @transform_16, window_bounds = array<i64: 1, 128>}, {transform_indices = @transform_17, window_bounds = array<i64: 8, 128>}]} {
    %c0 = arith.constant 0 : index
    %c0_0 = arith.constant 0 : index
    %c0_1 = arith.constant 0 : index
    %0 = vector.load %arg1[%c0, %c0_0, %c0_1] : memref<1x64x12xbf16, #tpu.memory_space<vmem>>, vector<1x64x12xbf16>
    %1 = vector.shape_cast %0 : vector<1x64x12xbf16> to vector<64x12xbf16>
    %c0_2 = arith.constant 0 : index
    %c0_3 = arith.constant 0 : index
    %2 = vector.load %arg2[%c0_2, %c0_3] : memref<12x64xbf16, #tpu.memory_space<vmem>>, vector<12x64xbf16>
    %cst = arith.constant dense<0.000000e+00> : vector<64x64xf32>
    %3 = tpu.matmul %1, %2, %cst {dimension_numbers = #tpu.dot_dimension_numbers<[1], [0], [0], [1], [0, 0, 1, 1], [], []>} : vector<64x12xbf16>, vector<12x64xbf16>, vector<64x64xf32> -> vector<64x64xf32>
    %c0_4 = arith.constant 0 : index
    %c0_5 = arith.constant 0 : index
    %4 = vector.load %arg3[%c0_4, %c0_5] : memref<1x64xf32, #tpu.memory_space<vmem>>, vector<1x64xf32>
    %c0_6 = arith.constant 0 : index
    %c0_7 = arith.constant 0 : index
    %5 = vector.load %arg4[%c0_6, %c0_7] : memref<1x64xf32, #tpu.memory_space<vmem>>, vector<1x64xf32>
    %6 = vector.extract_strided_slice %3 {offsets = [0, 0], sizes = [32, 64], strides = [1, 1]} : vector<64x64xf32> to vector<32x64xf32>
    %7 = vector.broadcast %4 : vector<1x64xf32> to vector<32x64xf32>
    %8 = arith.mulf %6, %7 : vector<32x64xf32>
    %9 = vector.broadcast %5 : vector<1x64xf32> to vector<32x64xf32>
    %10 = arith.addf %8, %9 : vector<32x64xf32>
    %11 = vector.extract_strided_slice %3 {offsets = [32, 0], sizes = [32, 64], strides = [1, 1]} : vector<64x64xf32> to vector<32x64xf32>
    %12 = vector.broadcast %4 : vector<1x64xf32> to vector<32x64xf32>
    %13 = arith.mulf %11, %12 : vector<32x64xf32>
    %14 = vector.broadcast %5 : vector<1x64xf32> to vector<32x64xf32>
    %15 = arith.addf %13, %14 : vector<32x64xf32>
    %16 = arith.maximumf %10, %15 : vector<32x64xf32>
    %cst_8 = arith.constant 0.000000e+00 : f32
    %17 = vector.broadcast %cst_8 : f32 to vector<32x64xf32>
    %18 = arith.maximumf %16, %17 : vector<32x64xf32>
    %19 = arith.truncf %18 : vector<32x64xf32> to vector<32x64xbf16>
    %c0_9 = arith.constant 0 : index
    %c0_10 = arith.constant 0 : index
    %20 = vector.load %arg5[%c0_9, %c0_10] : memref<64x1024xbf16, #tpu.memory_space<vmem>>, vector<64x1024xbf16>
    %cst_11 = arith.constant dense<0.000000e+00> : vector<32x1024xf32>
    %21 = tpu.matmul %19, %20, %cst_11 {dimension_numbers = #tpu.dot_dimension_numbers<[1], [0], [0], [1], [0, 0, 1, 1], [], []>} : vector<32x64xbf16>, vector<64x1024xbf16>, vector<32x1024xf32> -> vector<32x1024xf32>
    %c0_12 = arith.constant 0 : index
    %c0_13 = arith.constant 0 : index
    %22 = vector.load %arg6[%c0_12, %c0_13] : memref<1x1024xf32, #tpu.memory_space<vmem>>, vector<1x1024xf32>
    %23 = vector.broadcast %22 : vector<1x1024xf32> to vector<32x1024xf32>
    %24 = arith.addf %21, %23 : vector<32x1024xf32>
    %c0_14 = arith.constant 0 : index
    %c0_15 = arith.constant 0 : index
    %25 = vector.load %arg19[%c0_14, %c0_15] : memref<32x1024xf32, #tpu.memory_space<vmem>>, vector<32x1024xf32>
    tpu.vector_store %arg19[%c0_14, %c0_15], %24 {strides = array<i32>} : memref<32x1024xf32, #tpu.memory_space<vmem>>, vector<32x1024xf32>,
    %c0_16 = arith.constant 0 : index
    %c0_17 = arith.constant 0 : index
    %26 = vector.load %arg7[%c0_16, %c0_17] : memref<128x512xbf16, #tpu.memory_space<vmem>>, vector<128x512xbf16>
    %c0_18 = arith.constant 0 : index
    %c0_19 = arith.constant 0 : index
    %27 = vector.load %arg8[%c0_18, %c0_19] : memref<128x512xbf16, #tpu.memory_space<vmem>>, vector<128x512xbf16>
    %cst_20 = arith.constant 0.000000e+00 : f32
    %28 = vector.broadcast %cst_20 : f32 to vector<8x128xf32>
    %29 = arith.truncf %28 : vector<8x128xf32> to vector<8x128xbf16>
    %cst_21 = arith.constant dense<0.000000e+00> : vector<8x512xf32>
    %30 = tpu.matmul %29, %26, %cst_21 {dimension_numbers = #tpu.dot_dimension_numbers<[1], [0], [0], [1], [0, 0, 1, 1], [], []>} : vector<8x128xbf16>, vector<128x512xbf16>, vector<8x512xf32> -> vector<8x512xf32>
    %c0_22 = arith.constant 0 : index
    %c0_23 = arith.constant 0 : index
    %31 = vector.load %arg19[%c0_22, %c0_23] : memref<32x1024xf32, #tpu.memory_space<vmem>>, vector<8x512xf32>
    %32 = arith.addf %30, %31 : vector<8x512xf32>
    %33 = arith.truncf %28 : vector<8x128xf32> to vector<8x128xbf16>
    %cst_24 = arith.constant dense<0.000000e+00> : vector<8x512xf32>
    %34 = tpu.matmul %33, %27, %cst_24 {dimension_numbers = #tpu.dot_dimension_numbers<[1], [0], [0], [1], [0, 0, 1, 1], [], []>} : vector<8x128xbf16>, vector<128x512xbf16>, vector<8x512xf32> -> vector<8x512xf32>
    %c24 = arith.constant 24 : index
    %c512 = arith.constant 512 : index
    %35 = vector.load %arg19[%c24, %c512] : memref<32x1024xf32, #tpu.memory_space<vmem>>, vector<8x512xf32>
    %36 = arith.addf %34, %35 : vector<8x512xf32>
    %37 = vector.extract_strided_slice %32 {offsets = [0, 0], sizes = [8, 128], strides = [1, 1]} : vector<8x512xf32> to vector<8x128xf32>
    %38 = arith.negf %37 : vector<8x128xf32>
    %39 = math.exp %38 : vector<8x128xf32>
    %cst_25 = arith.constant 1.000000e+00 : f32
    %40 = vector.broadcast %cst_25 : f32 to vector<8x128xf32>
    %41 = arith.addf %40, %39 : vector<8x128xf32>
    %42 = arith.divf %40, %41 : vector<8x128xf32>
    %43 = vector.extract_strided_slice %32 {offsets = [0, 128], sizes = [8, 128], strides = [1, 1]} : vector<8x512xf32> to vector<8x128xf32>
    %44 = arith.negf %43 : vector<8x128xf32>
    %45 = math.exp %44 : vector<8x128xf32>
    %cst_26 = arith.constant 1.000000e+00 : f32
    %46 = vector.broadcast %cst_26 : f32 to vector<8x128xf32>
    %47 = arith.addf %46, %45 : vector<8x128xf32>
    %48 = arith.divf %46, %47 : vector<8x128xf32>
    %49 = vector.extract_strided_slice %32 {offsets = [0, 256], sizes = [8, 128], strides = [1, 1]} : vector<8x512xf32> to vector<8x128xf32>
    %50 = math.tanh %49 : vector<8x128xf32>
    %51 = vector.extract_strided_slice %32 {offsets = [0, 384], sizes = [8, 128], strides = [1, 1]} : vector<8x512xf32> to vector<8x128xf32>
    %52 = arith.negf %51 : vector<8x128xf32>
    %53 = math.exp %52 : vector<8x128xf32>
    %cst_27 = arith.constant 1.000000e+00 : f32
    %54 = vector.broadcast %cst_27 : f32 to vector<8x128xf32>
    %55 = arith.addf %54, %53 : vector<8x128xf32>
    %56 = arith.divf %54, %55 : vector<8x128xf32>
    %57 = arith.mulf %48, %28 : vector<8x128xf32>
    %58 = arith.mulf %42, %50 : vector<8x128xf32>
    %59 = arith.addf %57, %58 : vector<8x128xf32>
    %60 = math.tanh %59 : vector<8x128xf32>
    %61 = arith.mulf %56, %60 : vector<8x128xf32>
    %62 = vector.extract_strided_slice %36 {offsets = [0, 0], sizes = [8, 128], strides = [1, 1]} : vector<8x512xf32> to vector<8x128xf32>
    %63 = arith.negf %62 : vector<8x128xf32>
    %64 = math.exp %63 : vector<8x128xf32>
    %cst_28 = arith.constant 1.000000e+00 : f32
    %65 = vector.broadcast %cst_28 : f32 to vector<8x128xf32>
    %66 = arith.addf %65, %64 : vector<8x128xf32>
    %67 = arith.divf %65, %66 : vector<8x128xf32>
    %68 = vector.extract_strided_slice %36 {offsets = [0, 128], sizes = [8, 128], strides = [1, 1]} : vector<8x512xf32> to vector<8x128xf32>
    %69 = arith.negf %68 : vector<8x128xf32>
    %70 = math.exp %69 : vector<8x128xf32>
    %cst_29 = arith.constant 1.000000e+00 : f32
    %71 = vector.broadcast %cst_29 : f32 to vector<8x128xf32>
    %72 = arith.addf %71, %70 : vector<8x128xf32>
    %73 = arith.divf %71, %72 : vector<8x128xf32>
    %74 = vector.extract_strided_slice %36 {offsets = [0, 256], sizes = [8, 128], strides = [1, 1]} : vector<8x512xf32> to vector<8x128xf32>
    %75 = math.tanh %74 : vector<8x128xf32>
    %76 = vector.extract_strided_slice %36 {offsets = [0, 384], sizes = [8, 128], strides = [1, 1]} : vector<8x512xf32> to vector<8x128xf32>
    %77 = arith.negf %76 : vector<8x128xf32>
    %78 = math.exp %77 : vector<8x128xf32>
    %cst_30 = arith.constant 1.000000e+00 : f32
    %79 = vector.broadcast %cst_30 : f32 to vector<8x128xf32>
    %80 = arith.addf %79, %78 : vector<8x128xf32>
    %81 = arith.divf %79, %80 : vector<8x128xf32>
    %82 = arith.mulf %73, %28 : vector<8x128xf32>
    %83 = arith.mulf %67, %75 : vector<8x128xf32>
    %84 = arith.addf %82, %83 : vector<8x128xf32>
    %85 = math.tanh %84 : vector<8x128xf32>
    %86 = arith.mulf %81, %85 : vector<8x128xf32>
    %c0_31 = arith.constant 0 : index
    %c0_32 = arith.constant 0 : index
    %87 = vector.load %arg20[%c0_31, %c0_32] : memref<32x256xf32, #tpu.memory_space<vmem>>, vector<8x128xf32>
    tpu.vector_store %arg20[%c0_31, %c0_32], %61 {strides = array<i32>} : memref<32x256xf32, #tpu.memory_space<vmem>>, vector<8x128xf32>,
    %c24_33 = arith.constant 24 : index
    %c128 = arith.constant 128 : index
    %88 = vector.load %arg20[%c24_33, %c128] : memref<32x256xf32, #tpu.memory_space<vmem>>, vector<8x128xf32>
    tpu.vector_store %arg20[%c24_33, %c128], %86 {strides = array<i32>} : memref<32x256xf32, #tpu.memory_space<vmem>>, vector<8x128xf32>,
    %89 = arith.truncf %61 : vector<8x128xf32> to vector<8x128xbf16>
    %cst_34 = arith.constant dense<0.000000e+00> : vector<8x512xf32>
    %90 = tpu.matmul %89, %26, %cst_34 {dimension_numbers = #tpu.dot_dimension_numbers<[1], [0], [0], [1], [0, 0, 1, 1], [], []>} : vector<8x128xbf16>, vector<128x512xbf16>, vector<8x512xf32> -> vector<8x512xf32>
    %c8 = arith.constant 8 : index
    %c0_35 = arith.constant 0 : index
    %91 = vector.load %arg19[%c8, %c0_35] : memref<32x1024xf32, #tpu.memory_space<vmem>>, vector<8x512xf32>
    %92 = arith.addf %90, %91 : vector<8x512xf32>
    %93 = arith.truncf %86 : vector<8x128xf32> to vector<8x128xbf16>
    %cst_36 = arith.constant dense<0.000000e+00> : vector<8x512xf32>
    %94 = tpu.matmul %93, %27, %cst_36 {dimension_numbers = #tpu.dot_dimension_numbers<[1], [0], [0], [1], [0, 0, 1, 1], [], []>} : vector<8x128xbf16>, vector<128x512xbf16>, vector<8x512xf32> -> vector<8x512xf32>
    %c16 = arith.constant 16 : index
    %c512_37 = arith.constant 512 : index
    %95 = vector.load %arg19[%c16, %c512_37] : memref<32x1024xf32, #tpu.memory_space<vmem>>, vector<8x512xf32>
    %96 = arith.addf %94, %95 : vector<8x512xf32>
    %97 = vector.extract_strided_slice %92 {offsets = [0, 0], sizes = [8, 128], strides = [1, 1]} : vector<8x512xf32> to vector<8x128xf32>
    %98 = arith.negf %97 : vector<8x128xf32>
    %99 = math.exp %98 : vector<8x128xf32>
    %cst_38 = arith.constant 1.000000e+00 : f32
    %100 = vector.broadcast %cst_38 : f32 to vector<8x128xf32>
    %101 = arith.addf %100, %99 : vector<8x128xf32>
    %102 = arith.divf %100, %101 : vector<8x128xf32>
    %103 = vector.extract_strided_slice %92 {offsets = [0, 128], sizes = [8, 128], strides = [1, 1]} : vector<8x512xf32> to vector<8x128xf32>
    %104 = arith.negf %103 : vector<8x128xf32>
    %105 = math.exp %104 : vector<8x128xf32>
    %cst_39 = arith.constant 1.000000e+00 : f32
    %106 = vector.broadcast %cst_39 : f32 to vector<8x128xf32>
    %107 = arith.addf %106, %105 : vector<8x128xf32>
    %108 = arith.divf %106, %107 : vector<8x128xf32>
    %109 = vector.extract_strided_slice %92 {offsets = [0, 256], sizes = [8, 128], strides = [1, 1]} : vector<8x512xf32> to vector<8x128xf32>
    %110 = math.tanh %109 : vector<8x128xf32>
    %111 = vector.extract_strided_slice %92 {offsets = [0, 384], sizes = [8, 128], strides = [1, 1]} : vector<8x512xf32> to vector<8x128xf32>
    %112 = arith.negf %111 : vector<8x128xf32>
    %113 = math.exp %112 : vector<8x128xf32>
    %cst_40 = arith.constant 1.000000e+00 : f32
    %114 = vector.broadcast %cst_40 : f32 to vector<8x128xf32>
    %115 = arith.addf %114, %113 : vector<8x128xf32>
    %116 = arith.divf %114, %115 : vector<8x128xf32>
    %117 = arith.mulf %108, %59 : vector<8x128xf32>
    %118 = arith.mulf %102, %110 : vector<8x128xf32>
    %119 = arith.addf %117, %118 : vector<8x128xf32>
    %120 = math.tanh %119 : vector<8x128xf32>
    %121 = arith.mulf %116, %120 : vector<8x128xf32>
    %122 = vector.extract_strided_slice %96 {offsets = [0, 0], sizes = [8, 128], strides = [1, 1]} : vector<8x512xf32> to vector<8x128xf32>
    %123 = arith.negf %122 : vector<8x128xf32>
    %124 = math.exp %123 : vector<8x128xf32>
    %cst_41 = arith.constant 1.000000e+00 : f32
    %125 = vector.broadcast %cst_41 : f32 to vector<8x128xf32>
    %126 = arith.addf %125, %124 : vector<8x128xf32>
    %127 = arith.divf %125, %126 : vector<8x128xf32>
    %128 = vector.extract_strided_slice %96 {offsets = [0, 128], sizes = [8, 128], strides = [1, 1]} : vector<8x512xf32> to vector<8x128xf32>
    %129 = arith.negf %128 : vector<8x128xf32>
    %130 = math.exp %129 : vector<8x128xf32>
    %cst_42 = arith.constant 1.000000e+00 : f32
    %131 = vector.broadcast %cst_42 : f32 to vector<8x128xf32>
    %132 = arith.addf %131, %130 : vector<8x128xf32>
    %133 = arith.divf %131, %132 : vector<8x128xf32>
    %134 = vector.extract_strided_slice %96 {offsets = [0, 256], sizes = [8, 128], strides = [1, 1]} : vector<8x512xf32> to vector<8x128xf32>
    %135 = math.tanh %134 : vector<8x128xf32>
    %136 = vector.extract_strided_slice %96 {offsets = [0, 384], sizes = [8, 128], strides = [1, 1]} : vector<8x512xf32> to vector<8x128xf32>
    %137 = arith.negf %136 : vector<8x128xf32>
    %138 = math.exp %137 : vector<8x128xf32>
    %cst_43 = arith.constant 1.000000e+00 : f32
    %139 = vector.broadcast %cst_43 : f32 to vector<8x128xf32>
    %140 = arith.addf %139, %138 : vector<8x128xf32>
    %141 = arith.divf %139, %140 : vector<8x128xf32>
    %142 = arith.mulf %133, %84 : vector<8x128xf32>
    %143 = arith.mulf %127, %135 : vector<8x128xf32>
    %144 = arith.addf %142, %143 : vector<8x128xf32>
    %145 = math.tanh %144 : vector<8x128xf32>
    %146 = arith.mulf %141, %145 : vector<8x128xf32>
    %c8_44 = arith.constant 8 : index
    %c0_45 = arith.constant 0 : index
    %147 = vector.load %arg20[%c8_44, %c0_45] : memref<32x256xf32, #tpu.memory_space<vmem>>, vector<8x128xf32>
    tpu.vector_store %arg20[%c8_44, %c0_45], %121 {strides = array<i32>} : memref<32x256xf32, #tpu.memory_space<vmem>>, vector<8x128xf32>,
    %c16_46 = arith.constant 16 : index
    %c128_47 = arith.constant 128 : index
    %148 = vector.load %arg20[%c16_46, %c128_47] : memref<32x256xf32, #tpu.memory_space<vmem>>, vector<8x128xf32>
    tpu.vector_store %arg20[%c16_46, %c128_47], %146 {strides = array<i32>} : memref<32x256xf32, #tpu.memory_space<vmem>>, vector<8x128xf32>,
    %149 = arith.truncf %121 : vector<8x128xf32> to vector<8x128xbf16>
    %cst_48 = arith.constant dense<0.000000e+00> : vector<8x512xf32>
    %150 = tpu.matmul %149, %26, %cst_48 {dimension_numbers = #tpu.dot_dimension_numbers<[1], [0], [0], [1], [0, 0, 1, 1], [], []>} : vector<8x128xbf16>, vector<128x512xbf16>, vector<8x512xf32> -> vector<8x512xf32>
    %c16_49 = arith.constant 16 : index
    %c0_50 = arith.constant 0 : index
    %151 = vector.load %arg19[%c16_49, %c0_50] : memref<32x1024xf32, #tpu.memory_space<vmem>>, vector<8x512xf32>
    %152 = arith.addf %150, %151 : vector<8x512xf32>
    %153 = arith.truncf %146 : vector<8x128xf32> to vector<8x128xbf16>
    %cst_51 = arith.constant dense<0.000000e+00> : vector<8x512xf32>
    %154 = tpu.matmul %153, %27, %cst_51 {dimension_numbers = #tpu.dot_dimension_numbers<[1], [0], [0], [1], [0, 0, 1, 1], [], []>} : vector<8x128xbf16>, vector<128x512xbf16>, vector<8x512xf32> -> vector<8x512xf32>
    %c8_52 = arith.constant 8 : index
    %c512_53 = arith.constant 512 : index
    %155 = vector.load %arg19[%c8_52, %c512_53] : memref<32x1024xf32, #tpu.memory_space<vmem>>, vector<8x512xf32>
    %156 = arith.addf %154, %155 : vector<8x512xf32>
    %157 = vector.extract_strided_slice %152 {offsets = [0, 0], sizes = [8, 128], strides = [1, 1]} : vector<8x512xf32> to vector<8x128xf32>
    %158 = arith.negf %157 : vector<8x128xf32>
    %159 = math.exp %158 : vector<8x128xf32>
    %cst_54 = arith.constant 1.000000e+00 : f32
    %160 = vector.broadcast %cst_54 : f32 to vector<8x128xf32>
    %161 = arith.addf %160, %159 : vector<8x128xf32>
    %162 = arith.divf %160, %161 : vector<8x128xf32>
    %163 = vector.extract_strided_slice %152 {offsets = [0, 128], sizes = [8, 128], strides = [1, 1]} : vector<8x512xf32> to vector<8x128xf32>
    %164 = arith.negf %163 : vector<8x128xf32>
    %165 = math.exp %164 : vector<8x128xf32>
    %cst_55 = arith.constant 1.000000e+00 : f32
    %166 = vector.broadcast %cst_55 : f32 to vector<8x128xf32>
    %167 = arith.addf %166, %165 : vector<8x128xf32>
    %168 = arith.divf %166, %167 : vector<8x128xf32>
    %169 = vector.extract_strided_slice %152 {offsets = [0, 256], sizes = [8, 128], strides = [1, 1]} : vector<8x512xf32> to vector<8x128xf32>
    %170 = math.tanh %169 : vector<8x128xf32>
    %171 = vector.extract_strided_slice %152 {offsets = [0, 384], sizes = [8, 128], strides = [1, 1]} : vector<8x512xf32> to vector<8x128xf32>
    %172 = arith.negf %171 : vector<8x128xf32>
    %173 = math.exp %172 : vector<8x128xf32>
    %cst_56 = arith.constant 1.000000e+00 : f32
    %174 = vector.broadcast %cst_56 : f32 to vector<8x128xf32>
    %175 = arith.addf %174, %173 : vector<8x128xf32>
    %176 = arith.divf %174, %175 : vector<8x128xf32>
    %177 = arith.mulf %168, %119 : vector<8x128xf32>
    %178 = arith.mulf %162, %170 : vector<8x128xf32>
    %179 = arith.addf %177, %178 : vector<8x128xf32>
    %180 = math.tanh %179 : vector<8x128xf32>
    %181 = arith.mulf %176, %180 : vector<8x128xf32>
    %182 = vector.extract_strided_slice %156 {offsets = [0, 0], sizes = [8, 128], strides = [1, 1]} : vector<8x512xf32> to vector<8x128xf32>
    %183 = arith.negf %182 : vector<8x128xf32>
    %184 = math.exp %183 : vector<8x128xf32>
    %cst_57 = arith.constant 1.000000e+00 : f32
    %185 = vector.broadcast %cst_57 : f32 to vector<8x128xf32>
    %186 = arith.addf %185, %184 : vector<8x128xf32>
    %187 = arith.divf %185, %186 : vector<8x128xf32>
    %188 = vector.extract_strided_slice %156 {offsets = [0, 128], sizes = [8, 128], strides = [1, 1]} : vector<8x512xf32> to vector<8x128xf32>
    %189 = arith.negf %188 : vector<8x128xf32>
    %190 = math.exp %189 : vector<8x128xf32>
    %cst_58 = arith.constant 1.000000e+00 : f32
    %191 = vector.broadcast %cst_58 : f32 to vector<8x128xf32>
    %192 = arith.addf %191, %190 : vector<8x128xf32>
    %193 = arith.divf %191, %192 : vector<8x128xf32>
    %194 = vector.extract_strided_slice %156 {offsets = [0, 256], sizes = [8, 128], strides = [1, 1]} : vector<8x512xf32> to vector<8x128xf32>
    %195 = math.tanh %194 : vector<8x128xf32>
    %196 = vector.extract_strided_slice %156 {offsets = [0, 384], sizes = [8, 128], strides = [1, 1]} : vector<8x512xf32> to vector<8x128xf32>
    %197 = arith.negf %196 : vector<8x128xf32>
    %198 = math.exp %197 : vector<8x128xf32>
    %cst_59 = arith.constant 1.000000e+00 : f32
    %199 = vector.broadcast %cst_59 : f32 to vector<8x128xf32>
    %200 = arith.addf %199, %198 : vector<8x128xf32>
    %201 = arith.divf %199, %200 : vector<8x128xf32>
    %202 = arith.mulf %193, %144 : vector<8x128xf32>
    %203 = arith.mulf %187, %195 : vector<8x128xf32>
    %204 = arith.addf %202, %203 : vector<8x128xf32>
    %205 = math.tanh %204 : vector<8x128xf32>
    %206 = arith.mulf %201, %205 : vector<8x128xf32>
    %c16_60 = arith.constant 16 : index
    %c0_61 = arith.constant 0 : index
    %207 = vector.load %arg20[%c16_60, %c0_61] : memref<32x256xf32, #tpu.memory_space<vmem>>, vector<8x128xf32>
    tpu.vector_store %arg20[%c16_60, %c0_61], %181 {strides = array<i32>} : memref<32x256xf32, #tpu.memory_space<vmem>>, vector<8x128xf32>,
    %c8_62 = arith.constant 8 : index
    %c128_63 = arith.constant 128 : index
    %208 = vector.load %arg20[%c8_62, %c128_63] : memref<32x256xf32, #tpu.memory_space<vmem>>, vector<8x128xf32>
    tpu.vector_store %arg20[%c8_62, %c128_63], %206 {strides = array<i32>} : memref<32x256xf32, #tpu.memory_space<vmem>>, vector<8x128xf32>,
    %209 = arith.truncf %181 : vector<8x128xf32> to vector<8x128xbf16>
    %cst_64 = arith.constant dense<0.000000e+00> : vector<8x512xf32>
    %210 = tpu.matmul %209, %26, %cst_64 {dimension_numbers = #tpu.dot_dimension_numbers<[1], [0], [0], [1], [0, 0, 1, 1], [], []>} : vector<8x128xbf16>, vector<128x512xbf16>, vector<8x512xf32> -> vector<8x512xf32>
    %c24_65 = arith.constant 24 : index
    %c0_66 = arith.constant 0 : index
    %211 = vector.load %arg19[%c24_65, %c0_66] : memref<32x1024xf32, #tpu.memory_space<vmem>>, vector<8x512xf32>
    %212 = arith.addf %210, %211 : vector<8x512xf32>
    %213 = arith.truncf %206 : vector<8x128xf32> to vector<8x128xbf16>
    %cst_67 = arith.constant dense<0.000000e+00> : vector<8x512xf32>
    %214 = tpu.matmul %213, %27, %cst_67 {dimension_numbers = #tpu.dot_dimension_numbers<[1], [0], [0], [1], [0, 0, 1, 1], [], []>} : vector<8x128xbf16>, vector<128x512xbf16>, vector<8x512xf32> -> vector<8x512xf32>
    %c0_68 = arith.constant 0 : index
    %c512_69 = arith.constant 512 : index
    %215 = vector.load %arg19[%c0_68, %c512_69] : memref<32x1024xf32, #tpu.memory_space<vmem>>, vector<8x512xf32>
    %216 = arith.addf %214, %215 : vector<8x512xf32>
    %217 = vector.extract_strided_slice %212 {offsets = [0, 0], sizes = [8, 128], strides = [1, 1]} : vector<8x512xf32> to vector<8x128xf32>
    %218 = arith.negf %217 : vector<8x128xf32>
    %219 = math.exp %218 : vector<8x128xf32>
    %cst_70 = arith.constant 1.000000e+00 : f32
    %220 = vector.broadcast %cst_70 : f32 to vector<8x128xf32>
    %221 = arith.addf %220, %219 : vector<8x128xf32>
    %222 = arith.divf %220, %221 : vector<8x128xf32>
    %223 = vector.extract_strided_slice %212 {offsets = [0, 128], sizes = [8, 128], strides = [1, 1]} : vector<8x512xf32> to vector<8x128xf32>
    %224 = arith.negf %223 : vector<8x128xf32>
    %225 = math.exp %224 : vector<8x128xf32>
    %cst_71 = arith.constant 1.000000e+00 : f32
    %226 = vector.broadcast %cst_71 : f32 to vector<8x128xf32>
    %227 = arith.addf %226, %225 : vector<8x128xf32>
    %228 = arith.divf %226, %227 : vector<8x128xf32>
    %229 = vector.extract_strided_slice %212 {offsets = [0, 256], sizes = [8, 128], strides = [1, 1]} : vector<8x512xf32> to vector<8x128xf32>
    %230 = math.tanh %229 : vector<8x128xf32>
    %231 = vector.extract_strided_slice %212 {offsets = [0, 384], sizes = [8, 128], strides = [1, 1]} : vector<8x512xf32> to vector<8x128xf32>
    %232 = arith.negf %231 : vector<8x128xf32>
    %233 = math.exp %232 : vector<8x128xf32>
    %cst_72 = arith.constant 1.000000e+00 : f32
    %234 = vector.broadcast %cst_72 : f32 to vector<8x128xf32>
    %235 = arith.addf %234, %233 : vector<8x128xf32>
    %236 = arith.divf %234, %235 : vector<8x128xf32>
    %237 = arith.mulf %228, %179 : vector<8x128xf32>
    %238 = arith.mulf %222, %230 : vector<8x128xf32>
    %239 = arith.addf %237, %238 : vector<8x128xf32>
    %240 = math.tanh %239 : vector<8x128xf32>
    %241 = arith.mulf %236, %240 : vector<8x128xf32>
    %242 = vector.extract_strided_slice %216 {offsets = [0, 0], sizes = [8, 128], strides = [1, 1]} : vector<8x512xf32> to vector<8x128xf32>
    %243 = arith.negf %242 : vector<8x128xf32>
    %244 = math.exp %243 : vector<8x128xf32>
    %cst_73 = arith.constant 1.000000e+00 : f32
    %245 = vector.broadcast %cst_73 : f32 to vector<8x128xf32>
    %246 = arith.addf %245, %244 : vector<8x128xf32>
    %247 = arith.divf %245, %246 : vector<8x128xf32>
    %248 = vector.extract_strided_slice %216 {offsets = [0, 128], sizes = [8, 128], strides = [1, 1]} : vector<8x512xf32> to vector<8x128xf32>
    %249 = arith.negf %248 : vector<8x128xf32>
    %250 = math.exp %249 : vector<8x128xf32>
    %cst_74 = arith.constant 1.000000e+00 : f32
    %251 = vector.broadcast %cst_74 : f32 to vector<8x128xf32>
    %252 = arith.addf %251, %250 : vector<8x128xf32>
    %253 = arith.divf %251, %252 : vector<8x128xf32>
    %254 = vector.extract_strided_slice %216 {offsets = [0, 256], sizes = [8, 128], strides = [1, 1]} : vector<8x512xf32> to vector<8x128xf32>
    %255 = math.tanh %254 : vector<8x128xf32>
    %256 = vector.extract_strided_slice %216 {offsets = [0, 384], sizes = [8, 128], strides = [1, 1]} : vector<8x512xf32> to vector<8x128xf32>
    %257 = arith.negf %256 : vector<8x128xf32>
    %258 = math.exp %257 : vector<8x128xf32>
    %cst_75 = arith.constant 1.000000e+00 : f32
    %259 = vector.broadcast %cst_75 : f32 to vector<8x128xf32>
    %260 = arith.addf %259, %258 : vector<8x128xf32>
    %261 = arith.divf %259, %260 : vector<8x128xf32>
    %262 = arith.mulf %253, %204 : vector<8x128xf32>
    %263 = arith.mulf %247, %255 : vector<8x128xf32>
    %264 = arith.addf %262, %263 : vector<8x128xf32>
    %265 = math.tanh %264 : vector<8x128xf32>
    %266 = arith.mulf %261, %265 : vector<8x128xf32>
    %c24_76 = arith.constant 24 : index
    %c0_77 = arith.constant 0 : index
    %267 = vector.load %arg20[%c24_76, %c0_77] : memref<32x256xf32, #tpu.memory_space<vmem>>, vector<8x128xf32>
    tpu.vector_store %arg20[%c24_76, %c0_77], %241 {strides = array<i32>} : memref<32x256xf32, #tpu.memory_space<vmem>>, vector<8x128xf32>,
    %c0_78 = arith.constant 0 : index
    %c128_79 = arith.constant 128 : index
    %268 = vector.load %arg20[%c0_78, %c128_79] : memref<32x256xf32, #tpu.memory_space<vmem>>, vector<8x128xf32>
    tpu.vector_store %arg20[%c0_78, %c128_79], %266 {strides = array<i32>} : memref<32x256xf32, #tpu.memory_space<vmem>>, vector<8x128xf32>,
    %c0_80 = arith.constant 0 : index
    %c0_81 = arith.constant 0 : index
    %269 = vector.load %arg20[%c0_80, %c0_81] : memref<32x256xf32, #tpu.memory_space<vmem>>, vector<32x256xf32>
    %270 = arith.truncf %269 : vector<32x256xf32> to vector<32x256xbf16>
    %c0_82 = arith.constant 0 : index
    %c0_83 = arith.constant 0 : index
    %271 = vector.load %arg9[%c0_82, %c0_83] : memref<256x1024xbf16, #tpu.memory_space<vmem>>, vector<256x1024xbf16>
    %cst_84 = arith.constant dense<0.000000e+00> : vector<32x1024xf32>
    %272 = tpu.matmul %270, %271, %cst_84 {dimension_numbers = #tpu.dot_dimension_numbers<[1], [0], [0], [1], [0, 0, 1, 1], [], []>} : vector<32x256xbf16>, vector<256x1024xbf16>, vector<32x1024xf32> -> vector<32x1024xf32>
    %c0_85 = arith.constant 0 : index
    %c0_86 = arith.constant 0 : index
    %273 = vector.load %arg10[%c0_85, %c0_86] : memref<1x1024xf32, #tpu.memory_space<vmem>>, vector<1x1024xf32>
    %274 = vector.broadcast %273 : vector<1x1024xf32> to vector<32x1024xf32>
    %275 = arith.addf %272, %274 : vector<32x1024xf32>
    %c0_87 = arith.constant 0 : index
    %c0_88 = arith.constant 0 : index
    %276 = vector.load %arg19[%c0_87, %c0_88] : memref<32x1024xf32, #tpu.memory_space<vmem>>, vector<32x1024xf32>
    tpu.vector_store %arg19[%c0_87, %c0_88], %275 {strides = array<i32>} : memref<32x1024xf32, #tpu.memory_space<vmem>>, vector<32x1024xf32>,
    %c0_89 = arith.constant 0 : index
    %c0_90 = arith.constant 0 : index
    %277 = vector.load %arg11[%c0_89, %c0_90] : memref<128x512xbf16, #tpu.memory_space<vmem>>, vector<128x512xbf16>
    %c0_91 = arith.constant 0 : index
    %c0_92 = arith.constant 0 : index
    %278 = vector.load %arg12[%c0_91, %c0_92] : memref<128x512xbf16, #tpu.memory_space<vmem>>, vector<128x512xbf16>
    %cst_93 = arith.constant 0.000000e+00 : f32
    %279 = vector.broadcast %cst_93 : f32 to vector<8x128xf32>
    %280 = arith.truncf %279 : vector<8x128xf32> to vector<8x128xbf16>
    %cst_94 = arith.constant dense<0.000000e+00> : vector<8x512xf32>
    %281 = tpu.matmul %280, %277, %cst_94 {dimension_numbers = #tpu.dot_dimension_numbers<[1], [0], [0], [1], [0, 0, 1, 1], [], []>} : vector<8x128xbf16>, vector<128x512xbf16>, vector<8x512xf32> -> vector<8x512xf32>
    %c0_95 = arith.constant 0 : index
    %c0_96 = arith.constant 0 : index
    %282 = vector.load %arg19[%c0_95, %c0_96] : memref<32x1024xf32, #tpu.memory_space<vmem>>, vector<8x512xf32>
    %283 = arith.addf %281, %282 : vector<8x512xf32>
    %284 = arith.truncf %279 : vector<8x128xf32> to vector<8x128xbf16>
    %cst_97 = arith.constant dense<0.000000e+00> : vector<8x512xf32>
    %285 = tpu.matmul %284, %278, %cst_97 {dimension_numbers = #tpu.dot_dimension_numbers<[1], [0], [0], [1], [0, 0, 1, 1], [], []>} : vector<8x128xbf16>, vector<128x512xbf16>, vector<8x512xf32> -> vector<8x512xf32>
    %c24_98 = arith.constant 24 : index
    %c512_99 = arith.constant 512 : index
    %286 = vector.load %arg19[%c24_98, %c512_99] : memref<32x1024xf32, #tpu.memory_space<vmem>>, vector<8x512xf32>
    %287 = arith.addf %285, %286 : vector<8x512xf32>
    %288 = vector.extract_strided_slice %283 {offsets = [0, 0], sizes = [8, 128], strides = [1, 1]} : vector<8x512xf32> to vector<8x128xf32>
    %289 = arith.negf %288 : vector<8x128xf32>
    %290 = math.exp %289 : vector<8x128xf32>
    %cst_100 = arith.constant 1.000000e+00 : f32
    %291 = vector.broadcast %cst_100 : f32 to vector<8x128xf32>
    %292 = arith.addf %291, %290 : vector<8x128xf32>
    %293 = arith.divf %291, %292 : vector<8x128xf32>
    %294 = vector.extract_strided_slice %283 {offsets = [0, 128], sizes = [8, 128], strides = [1, 1]} : vector<8x512xf32> to vector<8x128xf32>
    %295 = arith.negf %294 : vector<8x128xf32>
    %296 = math.exp %295 : vector<8x128xf32>
    %cst_101 = arith.constant 1.000000e+00 : f32
    %297 = vector.broadcast %cst_101 : f32 to vector<8x128xf32>
    %298 = arith.addf %297, %296 : vector<8x128xf32>
    %299 = arith.divf %297, %298 : vector<8x128xf32>
    %300 = vector.extract_strided_slice %283 {offsets = [0, 256], sizes = [8, 128], strides = [1, 1]} : vector<8x512xf32> to vector<8x128xf32>
    %301 = math.tanh %300 : vector<8x128xf32>
    %302 = vector.extract_strided_slice %283 {offsets = [0, 384], sizes = [8, 128], strides = [1, 1]} : vector<8x512xf32> to vector<8x128xf32>
    %303 = arith.negf %302 : vector<8x128xf32>
    %304 = math.exp %303 : vector<8x128xf32>
    %cst_102 = arith.constant 1.000000e+00 : f32
    %305 = vector.broadcast %cst_102 : f32 to vector<8x128xf32>
    %306 = arith.addf %305, %304 : vector<8x128xf32>
    %307 = arith.divf %305, %306 : vector<8x128xf32>
    %308 = arith.mulf %299, %279 : vector<8x128xf32>
    %309 = arith.mulf %293, %301 : vector<8x128xf32>
    %310 = arith.addf %308, %309 : vector<8x128xf32>
    %311 = math.tanh %310 : vector<8x128xf32>
    %312 = arith.mulf %307, %311 : vector<8x128xf32>
    %313 = vector.extract_strided_slice %287 {offsets = [0, 0], sizes = [8, 128], strides = [1, 1]} : vector<8x512xf32> to vector<8x128xf32>
    %314 = arith.negf %313 : vector<8x128xf32>
    %315 = math.exp %314 : vector<8x128xf32>
    %cst_103 = arith.constant 1.000000e+00 : f32
    %316 = vector.broadcast %cst_103 : f32 to vector<8x128xf32>
    %317 = arith.addf %316, %315 : vector<8x128xf32>
    %318 = arith.divf %316, %317 : vector<8x128xf32>
    %319 = vector.extract_strided_slice %287 {offsets = [0, 128], sizes = [8, 128], strides = [1, 1]} : vector<8x512xf32> to vector<8x128xf32>
    %320 = arith.negf %319 : vector<8x128xf32>
    %321 = math.exp %320 : vector<8x128xf32>
    %cst_104 = arith.constant 1.000000e+00 : f32
    %322 = vector.broadcast %cst_104 : f32 to vector<8x128xf32>
    %323 = arith.addf %322, %321 : vector<8x128xf32>
    %324 = arith.divf %322, %323 : vector<8x128xf32>
    %325 = vector.extract_strided_slice %287 {offsets = [0, 256], sizes = [8, 128], strides = [1, 1]} : vector<8x512xf32> to vector<8x128xf32>
    %326 = math.tanh %325 : vector<8x128xf32>
    %327 = vector.extract_strided_slice %287 {offsets = [0, 384], sizes = [8, 128], strides = [1, 1]} : vector<8x512xf32> to vector<8x128xf32>
    %328 = arith.negf %327 : vector<8x128xf32>
    %329 = math.exp %328 : vector<8x128xf32>
    %cst_105 = arith.constant 1.000000e+00 : f32
    %330 = vector.broadcast %cst_105 : f32 to vector<8x128xf32>
    %331 = arith.addf %330, %329 : vector<8x128xf32>
    %332 = arith.divf %330, %331 : vector<8x128xf32>
    %333 = arith.mulf %324, %279 : vector<8x128xf32>
    %334 = arith.mulf %318, %326 : vector<8x128xf32>
    %335 = arith.addf %333, %334 : vector<8x128xf32>
    %336 = math.tanh %335 : vector<8x128xf32>
    %337 = arith.mulf %332, %336 : vector<8x128xf32>
    %c0_106 = arith.constant 0 : index
    %c0_107 = arith.constant 0 : index
    %338 = vector.load %arg21[%c0_106, %c0_107] : memref<8x1024xf32, #tpu.memory_space<vmem>>, vector<8x128xf32>
    tpu.vector_store %arg21[%c0_106, %c0_107], %312 {strides = array<i32>} : memref<8x1024xf32, #tpu.memory_space<vmem>>, vector<8x128xf32>,
    %c0_108 = arith.constant 0 : index
    %c896 = arith.constant 896 : index
    %339 = vector.load %arg21[%c0_108, %c896] : memref<8x1024xf32, #tpu.memory_space<vmem>>, vector<8x128xf32>
    tpu.vector_store %arg21[%c0_108, %c896], %337 {strides = array<i32>} : memref<8x1024xf32, #tpu.memory_space<vmem>>, vector<8x128xf32>,
    %340 = arith.truncf %312 : vector<8x128xf32> to vector<8x128xbf16>
    %cst_109 = arith.constant dense<0.000000e+00> : vector<8x512xf32>
    %341 = tpu.matmul %340, %277, %cst_109 {dimension_numbers = #tpu.dot_dimension_numbers<[1], [0], [0], [1], [0, 0, 1, 1], [], []>} : vector<8x128xbf16>, vector<128x512xbf16>, vector<8x512xf32> -> vector<8x512xf32>
    %c8_110 = arith.constant 8 : index
    %c0_111 = arith.constant 0 : index
    %342 = vector.load %arg19[%c8_110, %c0_111] : memref<32x1024xf32, #tpu.memory_space<vmem>>, vector<8x512xf32>
    %343 = arith.addf %341, %342 : vector<8x512xf32>
    %344 = arith.truncf %337 : vector<8x128xf32> to vector<8x128xbf16>
    %cst_112 = arith.constant dense<0.000000e+00> : vector<8x512xf32>
    %345 = tpu.matmul %344, %278, %cst_112 {dimension_numbers = #tpu.dot_dimension_numbers<[1], [0], [0], [1], [0, 0, 1, 1], [], []>} : vector<8x128xbf16>, vector<128x512xbf16>, vector<8x512xf32> -> vector<8x512xf32>
    %c16_113 = arith.constant 16 : index
    %c512_114 = arith.constant 512 : index
    %346 = vector.load %arg19[%c16_113, %c512_114] : memref<32x1024xf32, #tpu.memory_space<vmem>>, vector<8x512xf32>
    %347 = arith.addf %345, %346 : vector<8x512xf32>
    %348 = vector.extract_strided_slice %343 {offsets = [0, 0], sizes = [8, 128], strides = [1, 1]} : vector<8x512xf32> to vector<8x128xf32>
    %349 = arith.negf %348 : vector<8x128xf32>
    %350 = math.exp %349 : vector<8x128xf32>
    %cst_115 = arith.constant 1.000000e+00 : f32
    %351 = vector.broadcast %cst_115 : f32 to vector<8x128xf32>
    %352 = arith.addf %351, %350 : vector<8x128xf32>
    %353 = arith.divf %351, %352 : vector<8x128xf32>
    %354 = vector.extract_strided_slice %343 {offsets = [0, 128], sizes = [8, 128], strides = [1, 1]} : vector<8x512xf32> to vector<8x128xf32>
    %355 = arith.negf %354 : vector<8x128xf32>
    %356 = math.exp %355 : vector<8x128xf32>
    %cst_116 = arith.constant 1.000000e+00 : f32
    %357 = vector.broadcast %cst_116 : f32 to vector<8x128xf32>
    %358 = arith.addf %357, %356 : vector<8x128xf32>
    %359 = arith.divf %357, %358 : vector<8x128xf32>
    %360 = vector.extract_strided_slice %343 {offsets = [0, 256], sizes = [8, 128], strides = [1, 1]} : vector<8x512xf32> to vector<8x128xf32>
    %361 = math.tanh %360 : vector<8x128xf32>
    %362 = vector.extract_strided_slice %343 {offsets = [0, 384], sizes = [8, 128], strides = [1, 1]} : vector<8x512xf32> to vector<8x128xf32>
    %363 = arith.negf %362 : vector<8x128xf32>
    %364 = math.exp %363 : vector<8x128xf32>
    %cst_117 = arith.constant 1.000000e+00 : f32
    %365 = vector.broadcast %cst_117 : f32 to vector<8x128xf32>
    %366 = arith.addf %365, %364 : vector<8x128xf32>
    %367 = arith.divf %365, %366 : vector<8x128xf32>
    %368 = arith.mulf %359, %310 : vector<8x128xf32>
    %369 = arith.mulf %353, %361 : vector<8x128xf32>
    %370 = arith.addf %368, %369 : vector<8x128xf32>
    %371 = math.tanh %370 : vector<8x128xf32>
    %372 = arith.mulf %367, %371 : vector<8x128xf32>
    %373 = vector.extract_strided_slice %347 {offsets = [0, 0], sizes = [8, 128], strides = [1, 1]} : vector<8x512xf32> to vector<8x128xf32>
    %374 = arith.negf %373 : vector<8x128xf32>
    %375 = math.exp %374 : vector<8x128xf32>
    %cst_118 = arith.constant 1.000000e+00 : f32
    %376 = vector.broadcast %cst_118 : f32 to vector<8x128xf32>
    %377 = arith.addf %376, %375 : vector<8x128xf32>
    %378 = arith.divf %376, %377 : vector<8x128xf32>
    %379 = vector.extract_strided_slice %347 {offsets = [0, 128], sizes = [8, 128], strides = [1, 1]} : vector<8x512xf32> to vector<8x128xf32>
    %380 = arith.negf %379 : vector<8x128xf32>
    %381 = math.exp %380 : vector<8x128xf32>
    %cst_119 = arith.constant 1.000000e+00 : f32
    %382 = vector.broadcast %cst_119 : f32 to vector<8x128xf32>
    %383 = arith.addf %382, %381 : vector<8x128xf32>
    %384 = arith.divf %382, %383 : vector<8x128xf32>
    %385 = vector.extract_strided_slice %347 {offsets = [0, 256], sizes = [8, 128], strides = [1, 1]} : vector<8x512xf32> to vector<8x128xf32>
    %386 = math.tanh %385 : vector<8x128xf32>
    %387 = vector.extract_strided_slice %347 {offsets = [0, 384], sizes = [8, 128], strides = [1, 1]} : vector<8x512xf32> to vector<8x128xf32>
    %388 = arith.negf %387 : vector<8x128xf32>
    %389 = math.exp %388 : vector<8x128xf32>
    %cst_120 = arith.constant 1.000000e+00 : f32
    %390 = vector.broadcast %cst_120 : f32 to vector<8x128xf32>
    %391 = arith.addf %390, %389 : vector<8x128xf32>
    %392 = arith.divf %390, %391 : vector<8x128xf32>
    %393 = arith.mulf %384, %335 : vector<8x128xf32>
    %394 = arith.mulf %378, %386 : vector<8x128xf32>
    %395 = arith.addf %393, %394 : vector<8x128xf32>
    %396 = math.tanh %395 : vector<8x128xf32>
    %397 = arith.mulf %392, %396 : vector<8x128xf32>
    %c0_121 = arith.constant 0 : index
    %c256 = arith.constant 256 : index
    %398 = vector.load %arg21[%c0_121, %c256] : memref<8x1024xf32, #tpu.memory_space<vmem>>, vector<8x128xf32>
    tpu.vector_store %arg21[%c0_121, %c256], %372 {strides = array<i32>} : memref<8x1024xf32, #tpu.memory_space<vmem>>, vector<8x128xf32>,
    %c0_122 = arith.constant 0 : index
    %c640 = arith.constant 640 : index
    %399 = vector.load %arg21[%c0_122, %c640] : memref<8x1024xf32, #tpu.memory_space<vmem>>, vector<8x128xf32>
    tpu.vector_store %arg21[%c0_122, %c640], %397 {strides = array<i32>} : memref<8x1024xf32, #tpu.memory_space<vmem>>, vector<8x128xf32>,
    %400 = arith.truncf %372 : vector<8x128xf32> to vector<8x128xbf16>
    %cst_123 = arith.constant dense<0.000000e+00> : vector<8x512xf32>
    %401 = tpu.matmul %400, %277, %cst_123 {dimension_numbers = #tpu.dot_dimension_numbers<[1], [0], [0], [1], [0, 0, 1, 1], [], []>} : vector<8x128xbf16>, vector<128x512xbf16>, vector<8x512xf32> -> vector<8x512xf32>
    %c16_124 = arith.constant 16 : index
    %c0_125 = arith.constant 0 : index
    %402 = vector.load %arg19[%c16_124, %c0_125] : memref<32x1024xf32, #tpu.memory_space<vmem>>, vector<8x512xf32>
    %403 = arith.addf %401, %402 : vector<8x512xf32>
    %404 = arith.truncf %397 : vector<8x128xf32> to vector<8x128xbf16>
    %cst_126 = arith.constant dense<0.000000e+00> : vector<8x512xf32>
    %405 = tpu.matmul %404, %278, %cst_126 {dimension_numbers = #tpu.dot_dimension_numbers<[1], [0], [0], [1], [0, 0, 1, 1], [], []>} : vector<8x128xbf16>, vector<128x512xbf16>, vector<8x512xf32> -> vector<8x512xf32>
    %c8_127 = arith.constant 8 : index
    %c512_128 = arith.constant 512 : index
    %406 = vector.load %arg19[%c8_127, %c512_128] : memref<32x1024xf32, #tpu.memory_space<vmem>>, vector<8x512xf32>
    %407 = arith.addf %405, %406 : vector<8x512xf32>
    %408 = vector.extract_strided_slice %403 {offsets = [0, 0], sizes = [8, 128], strides = [1, 1]} : vector<8x512xf32> to vector<8x128xf32>
    %409 = arith.negf %408 : vector<8x128xf32>
    %410 = math.exp %409 : vector<8x128xf32>
    %cst_129 = arith.constant 1.000000e+00 : f32
    %411 = vector.broadcast %cst_129 : f32 to vector<8x128xf32>
    %412 = arith.addf %411, %410 : vector<8x128xf32>
    %413 = arith.divf %411, %412 : vector<8x128xf32>
    %414 = vector.extract_strided_slice %403 {offsets = [0, 128], sizes = [8, 128], strides = [1, 1]} : vector<8x512xf32> to vector<8x128xf32>
    %415 = arith.negf %414 : vector<8x128xf32>
    %416 = math.exp %415 : vector<8x128xf32>
    %cst_130 = arith.constant 1.000000e+00 : f32
    %417 = vector.broadcast %cst_130 : f32 to vector<8x128xf32>
    %418 = arith.addf %417, %416 : vector<8x128xf32>
    %419 = arith.divf %417, %418 : vector<8x128xf32>
    %420 = vector.extract_strided_slice %403 {offsets = [0, 256], sizes = [8, 128], strides = [1, 1]} : vector<8x512xf32> to vector<8x128xf32>
    %421 = math.tanh %420 : vector<8x128xf32>
    %422 = vector.extract_strided_slice %403 {offsets = [0, 384], sizes = [8, 128], strides = [1, 1]} : vector<8x512xf32> to vector<8x128xf32>
    %423 = arith.negf %422 : vector<8x128xf32>
    %424 = math.exp %423 : vector<8x128xf32>
    %cst_131 = arith.constant 1.000000e+00 : f32
    %425 = vector.broadcast %cst_131 : f32 to vector<8x128xf32>
    %426 = arith.addf %425, %424 : vector<8x128xf32>
    %427 = arith.divf %425, %426 : vector<8x128xf32>
    %428 = arith.mulf %419, %370 : vector<8x128xf32>
    %429 = arith.mulf %413, %421 : vector<8x128xf32>
    %430 = arith.addf %428, %429 : vector<8x128xf32>
    %431 = math.tanh %430 : vector<8x128xf32>
    %432 = arith.mulf %427, %431 : vector<8x128xf32>
    %433 = vector.extract_strided_slice %407 {offsets = [0, 0], sizes = [8, 128], strides = [1, 1]} : vector<8x512xf32> to vector<8x128xf32>
    %434 = arith.negf %433 : vector<8x128xf32>
    %435 = math.exp %434 : vector<8x128xf32>
    %cst_132 = arith.constant 1.000000e+00 : f32
    %436 = vector.broadcast %cst_132 : f32 to vector<8x128xf32>
    %437 = arith.addf %436, %435 : vector<8x128xf32>
    %438 = arith.divf %436, %437 : vector<8x128xf32>
    %439 = vector.extract_strided_slice %407 {offsets = [0, 128], sizes = [8, 128], strides = [1, 1]} : vector<8x512xf32> to vector<8x128xf32>
    %440 = arith.negf %439 : vector<8x128xf32>
    %441 = math.exp %440 : vector<8x128xf32>
    %cst_133 = arith.constant 1.000000e+00 : f32
    %442 = vector.broadcast %cst_133 : f32 to vector<8x128xf32>
    %443 = arith.addf %442, %441 : vector<8x128xf32>
    %444 = arith.divf %442, %443 : vector<8x128xf32>
    %445 = vector.extract_strided_slice %407 {offsets = [0, 256], sizes = [8, 128], strides = [1, 1]} : vector<8x512xf32> to vector<8x128xf32>
    %446 = math.tanh %445 : vector<8x128xf32>
    %447 = vector.extract_strided_slice %407 {offsets = [0, 384], sizes = [8, 128], strides = [1, 1]} : vector<8x512xf32> to vector<8x128xf32>
    %448 = arith.negf %447 : vector<8x128xf32>
    %449 = math.exp %448 : vector<8x128xf32>
    %cst_134 = arith.constant 1.000000e+00 : f32
    %450 = vector.broadcast %cst_134 : f32 to vector<8x128xf32>
    %451 = arith.addf %450, %449 : vector<8x128xf32>
    %452 = arith.divf %450, %451 : vector<8x128xf32>
    %453 = arith.mulf %444, %395 : vector<8x128xf32>
    %454 = arith.mulf %438, %446 : vector<8x128xf32>
    %455 = arith.addf %453, %454 : vector<8x128xf32>
    %456 = math.tanh %455 : vector<8x128xf32>
    %457 = arith.mulf %452, %456 : vector<8x128xf32>
    %c0_135 = arith.constant 0 : index
    %c512_136 = arith.constant 512 : index
    %458 = vector.load %arg21[%c0_135, %c512_136] : memref<8x1024xf32, #tpu.memory_space<vmem>>, vector<8x128xf32>
    tpu.vector_store %arg21[%c0_135, %c512_136], %432 {strides = array<i32>} : memref<8x1024xf32, #tpu.memory_space<vmem>>, vector<8x128xf32>,
    %c0_137 = arith.constant 0 : index
    %c384 = arith.constant 384 : index
    %459 = vector.load %arg21[%c0_137, %c384] : memref<8x1024xf32, #tpu.memory_space<vmem>>, vector<8x128xf32>
    tpu.vector_store %arg21[%c0_137, %c384], %457 {strides = array<i32>} : memref<8x1024xf32, #tpu.memory_space<vmem>>, vector<8x128xf32>,
    %460 = arith.truncf %432 : vector<8x128xf32> to vector<8x128xbf16>
    %cst_138 = arith.constant dense<0.000000e+00> : vector<8x512xf32>
    %461 = tpu.matmul %460, %277, %cst_138 {dimension_numbers = #tpu.dot_dimension_numbers<[1], [0], [0], [1], [0, 0, 1, 1], [], []>} : vector<8x128xbf16>, vector<128x512xbf16>, vector<8x512xf32> -> vector<8x512xf32>
    %c24_139 = arith.constant 24 : index
    %c0_140 = arith.constant 0 : index
    %462 = vector.load %arg19[%c24_139, %c0_140] : memref<32x1024xf32, #tpu.memory_space<vmem>>, vector<8x512xf32>
    %463 = arith.addf %461, %462 : vector<8x512xf32>
    %464 = arith.truncf %457 : vector<8x128xf32> to vector<8x128xbf16>
    %cst_141 = arith.constant dense<0.000000e+00> : vector<8x512xf32>
    %465 = tpu.matmul %464, %278, %cst_141 {dimension_numbers = #tpu.dot_dimension_numbers<[1], [0], [0], [1], [0, 0, 1, 1], [], []>} : vector<8x128xbf16>, vector<128x512xbf16>, vector<8x512xf32> -> vector<8x512xf32>
    %c0_142 = arith.constant 0 : index
    %c512_143 = arith.constant 512 : index
    %466 = vector.load %arg19[%c0_142, %c512_143] : memref<32x1024xf32, #tpu.memory_space<vmem>>, vector<8x512xf32>
    %467 = arith.addf %465, %466 : vector<8x512xf32>
    %468 = vector.extract_strided_slice %463 {offsets = [0, 0], sizes = [8, 128], strides = [1, 1]} : vector<8x512xf32> to vector<8x128xf32>
    %469 = arith.negf %468 : vector<8x128xf32>
    %470 = math.exp %469 : vector<8x128xf32>
    %cst_144 = arith.constant 1.000000e+00 : f32
    %471 = vector.broadcast %cst_144 : f32 to vector<8x128xf32>
    %472 = arith.addf %471, %470 : vector<8x128xf32>
    %473 = arith.divf %471, %472 : vector<8x128xf32>
    %474 = vector.extract_strided_slice %463 {offsets = [0, 128], sizes = [8, 128], strides = [1, 1]} : vector<8x512xf32> to vector<8x128xf32>
    %475 = arith.negf %474 : vector<8x128xf32>
    %476 = math.exp %475 : vector<8x128xf32>
    %cst_145 = arith.constant 1.000000e+00 : f32
    %477 = vector.broadcast %cst_145 : f32 to vector<8x128xf32>
    %478 = arith.addf %477, %476 : vector<8x128xf32>
    %479 = arith.divf %477, %478 : vector<8x128xf32>
    %480 = vector.extract_strided_slice %463 {offsets = [0, 256], sizes = [8, 128], strides = [1, 1]} : vector<8x512xf32> to vector<8x128xf32>
    %481 = math.tanh %480 : vector<8x128xf32>
    %482 = vector.extract_strided_slice %463 {offsets = [0, 384], sizes = [8, 128], strides = [1, 1]} : vector<8x512xf32> to vector<8x128xf32>
    %483 = arith.negf %482 : vector<8x128xf32>
    %484 = math.exp %483 : vector<8x128xf32>
    %cst_146 = arith.constant 1.000000e+00 : f32
    %485 = vector.broadcast %cst_146 : f32 to vector<8x128xf32>
    %486 = arith.addf %485, %484 : vector<8x128xf32>
    %487 = arith.divf %485, %486 : vector<8x128xf32>
    %488 = arith.mulf %479, %430 : vector<8x128xf32>
    %489 = arith.mulf %473, %481 : vector<8x128xf32>
    %490 = arith.addf %488, %489 : vector<8x128xf32>
    %491 = math.tanh %490 : vector<8x128xf32>
    %492 = arith.mulf %487, %491 : vector<8x128xf32>
    %493 = vector.extract_strided_slice %467 {offsets = [0, 0], sizes = [8, 128], strides = [1, 1]} : vector<8x512xf32> to vector<8x128xf32>
    %494 = arith.negf %493 : vector<8x128xf32>
    %495 = math.exp %494 : vector<8x128xf32>
    %cst_147 = arith.constant 1.000000e+00 : f32
    %496 = vector.broadcast %cst_147 : f32 to vector<8x128xf32>
    %497 = arith.addf %496, %495 : vector<8x128xf32>
    %498 = arith.divf %496, %497 : vector<8x128xf32>
    %499 = vector.extract_strided_slice %467 {offsets = [0, 128], sizes = [8, 128], strides = [1, 1]} : vector<8x512xf32> to vector<8x128xf32>
    %500 = arith.negf %499 : vector<8x128xf32>
    %501 = math.exp %500 : vector<8x128xf32>
    %cst_148 = arith.constant 1.000000e+00 : f32
    %502 = vector.broadcast %cst_148 : f32 to vector<8x128xf32>
    %503 = arith.addf %502, %501 : vector<8x128xf32>
    %504 = arith.divf %502, %503 : vector<8x128xf32>
    %505 = vector.extract_strided_slice %467 {offsets = [0, 256], sizes = [8, 128], strides = [1, 1]} : vector<8x512xf32> to vector<8x128xf32>
    %506 = math.tanh %505 : vector<8x128xf32>
    %507 = vector.extract_strided_slice %467 {offsets = [0, 384], sizes = [8, 128], strides = [1, 1]} : vector<8x512xf32> to vector<8x128xf32>
    %508 = arith.negf %507 : vector<8x128xf32>
    %509 = math.exp %508 : vector<8x128xf32>
    %cst_149 = arith.constant 1.000000e+00 : f32
    %510 = vector.broadcast %cst_149 : f32 to vector<8x128xf32>
    %511 = arith.addf %510, %509 : vector<8x128xf32>
    %512 = arith.divf %510, %511 : vector<8x128xf32>
    %513 = arith.mulf %504, %455 : vector<8x128xf32>
    %514 = arith.mulf %498, %506 : vector<8x128xf32>
    %515 = arith.addf %513, %514 : vector<8x128xf32>
    %516 = math.tanh %515 : vector<8x128xf32>
    %517 = arith.mulf %512, %516 : vector<8x128xf32>
    %c0_150 = arith.constant 0 : index
    %c768 = arith.constant 768 : index
    %518 = vector.load %arg21[%c0_150, %c768] : memref<8x1024xf32, #tpu.memory_space<vmem>>, vector<8x128xf32>
    tpu.vector_store %arg21[%c0_150, %c768], %492 {strides = array<i32>} : memref<8x1024xf32, #tpu.memory_space<vmem>>, vector<8x128xf32>,
    %c0_151 = arith.constant 0 : index
    %c128_152 = arith.constant 128 : index
    %519 = vector.load %arg21[%c0_151, %c128_152] : memref<8x1024xf32, #tpu.memory_space<vmem>>, vector<8x128xf32>
    tpu.vector_store %arg21[%c0_151, %c128_152], %517 {strides = array<i32>} : memref<8x1024xf32, #tpu.memory_space<vmem>>, vector<8x128xf32>,
    %c0_153 = arith.constant 0 : index
    %c0_154 = arith.constant 0 : index
    %520 = vector.load %arg21[%c0_153, %c0_154] : memref<8x1024xf32, #tpu.memory_space<vmem>>, vector<8x1024xf32>
    %521 = arith.truncf %520 : vector<8x1024xf32> to vector<8x1024xbf16>
    %c0_155 = arith.constant 0 : index
    %c0_156 = arith.constant 0 : index
    %522 = vector.load %arg13[%c0_155, %c0_156] : memref<1024x256xbf16, #tpu.memory_space<vmem>>, vector<1024x256xbf16>
    %cst_157 = arith.constant dense<0.000000e+00> : vector<8x256xf32>
    %523 = tpu.matmul %521, %522, %cst_157 {dimension_numbers = #tpu.dot_dimension_numbers<[1], [0], [0], [1], [0, 0, 1, 1], [], []>} : vector<8x1024xbf16>, vector<1024x256xbf16>, vector<8x256xf32> -> vector<8x256xf32>
    %c0_158 = arith.constant 0 : index
    %c0_159 = arith.constant 0 : index
    %524 = vector.load %arg14[%c0_158, %c0_159] : memref<1x256xf32, #tpu.memory_space<vmem>>, vector<1x256xf32>
    %525 = vector.broadcast %524 : vector<1x256xf32> to vector<8x256xf32>
    %526 = arith.mulf %523, %525 : vector<8x256xf32>
    %c0_160 = arith.constant 0 : index
    %c0_161 = arith.constant 0 : index
    %527 = vector.load %arg15[%c0_160, %c0_161] : memref<1x256xf32, #tpu.memory_space<vmem>>, vector<1x256xf32>
    %528 = vector.broadcast %527 : vector<1x256xf32> to vector<8x256xf32>
    %529 = arith.addf %526, %528 : vector<8x256xf32>
    %cst_162 = arith.constant 0.000000e+00 : f32
    %530 = vector.broadcast %cst_162 : f32 to vector<8x256xf32>
    %531 = arith.maximumf %529, %530 : vector<8x256xf32>
    %532 = arith.truncf %531 : vector<8x256xf32> to vector<8x256xbf16>
    %c0_163 = arith.constant 0 : index
    %c0_164 = arith.constant 0 : index
    %533 = vector.load %arg16[%c0_163, %c0_164] : memref<256x128xbf16, #tpu.memory_space<vmem>>, vector<256x128xbf16>
    %cst_165 = arith.constant dense<0.000000e+00> : vector<8x128xf32>
    %534 = tpu.matmul %532, %533, %cst_165 {dimension_numbers = #tpu.dot_dimension_numbers<[1], [0], [0], [1], [0, 0, 1, 1], [], []>} : vector<8x256xbf16>, vector<256x128xbf16>, vector<8x128xf32> -> vector<8x128xf32>
    %c0_166 = arith.constant 0 : index
    %c0_167 = arith.constant 0 : index
    %535 = vector.load %arg17[%c0_166, %c0_167] : memref<1x128xf32, #tpu.memory_space<vmem>>, vector<1x128xf32>
    %536 = vector.broadcast %535 : vector<1x128xf32> to vector<8x128xf32>
    %537 = arith.addf %534, %536 : vector<8x128xf32>
    %c0_168 = arith.constant 0 : index
    %c0_169 = arith.constant 0 : index
    %538 = vector.load %arg18[%c0_168, %c0_169] : memref<8x128xf32, #tpu.memory_space<vmem>>, vector<8x128xf32>
    tpu.vector_store %arg18[%c0_168, %c0_169], %537 {strides = array<i32>} : memref<8x128xf32, #tpu.memory_space<vmem>>, vector<8x128xf32>,
    return
  }
  func.func @transform_0(%arg0: i32) -> (i32, i32, i32) {
    %c0_i32 = arith.constant 0 : i32
    %c0_i32_0 = arith.constant 0 : i32
    %c0_i32_1 = arith.constant 0 : i32
    return %arg0, %c0_i32, %c0_i32_0 : i32, i32, i32
  }
  func.func @transform_1(%arg0: i32) -> (i32, i32) {
    %c0_i32 = arith.constant 0 : i32
    %c0_i32_0 = arith.constant 0 : i32
    %c0_i32_1 = arith.constant 0 : i32
    return %c0_i32, %c0_i32_0 : i32, i32
  }
  func.func @transform_2(%arg0: i32) -> (i32, i32) {
    %c0_i32 = arith.constant 0 : i32
    %c0_i32_0 = arith.constant 0 : i32
    %c0_i32_1 = arith.constant 0 : i32
    return %c0_i32, %c0_i32_0 : i32, i32
  }
  func.func @transform_3(%arg0: i32) -> (i32, i32) {
    %c0_i32 = arith.constant 0 : i32
    %c0_i32_0 = arith.constant 0 : i32
    %c0_i32_1 = arith.constant 0 : i32
    return %c0_i32, %c0_i32_0 : i32, i32
  }
  func.func @transform_4(%arg0: i32) -> (i32, i32) {
    %c0_i32 = arith.constant 0 : i32
    %c0_i32_0 = arith.constant 0 : i32
    %c0_i32_1 = arith.constant 0 : i32
    return %c0_i32, %c0_i32_0 : i32, i32
  }
  func.func @transform_5(%arg0: i32) -> (i32, i32) {
    %c0_i32 = arith.constant 0 : i32
    %c0_i32_0 = arith.constant 0 : i32
    %c0_i32_1 = arith.constant 0 : i32
    return %c0_i32, %c0_i32_0 : i32, i32
  }
  func.func @transform_6(%arg0: i32) -> (i32, i32) {
    %c0_i32 = arith.constant 0 : i32
    %c0_i32_0 = arith.constant 0 : i32
    %c0_i32_1 = arith.constant 0 : i32
    return %c0_i32, %c0_i32_0 : i32, i32
  }
  func.func @transform_7(%arg0: i32) -> (i32, i32) {
    %c0_i32 = arith.constant 0 : i32
    %c0_i32_0 = arith.constant 0 : i32
    %c0_i32_1 = arith.constant 0 : i32
    return %c0_i32, %c0_i32_0 : i32, i32
  }
  func.func @transform_8(%arg0: i32) -> (i32, i32) {
    %c0_i32 = arith.constant 0 : i32
    %c0_i32_0 = arith.constant 0 : i32
    %c0_i32_1 = arith.constant 0 : i32
    return %c0_i32, %c0_i32_0 : i32, i32
  }
  func.func @transform_9(%arg0: i32) -> (i32, i32) {
    %c0_i32 = arith.constant 0 : i32
    %c0_i32_0 = arith.constant 0 : i32
    %c0_i32_1 = arith.constant 0 : i32
    return %c0_i32, %c0_i32_0 : i32, i32
  }
  func.func @transform_10(%arg0: i32) -> (i32, i32) {
    %c0_i32 = arith.constant 0 : i32
    %c0_i32_0 = arith.constant 0 : i32
    %c0_i32_1 = arith.constant 0 : i32
    return %c0_i32, %c0_i32_0 : i32, i32
  }
  func.func @transform_11(%arg0: i32) -> (i32, i32) {
    %c0_i32 = arith.constant 0 : i32
    %c0_i32_0 = arith.constant 0 : i32
    %c0_i32_1 = arith.constant 0 : i32
    return %c0_i32, %c0_i32_0 : i32, i32
  }
  func.func @transform_12(%arg0: i32) -> (i32, i32) {
    %c0_i32 = arith.constant 0 : i32
    %c0_i32_0 = arith.constant 0 : i32
    %c0_i32_1 = arith.constant 0 : i32
    return %c0_i32, %c0_i32_0 : i32, i32
  }
  func.func @transform_13(%arg0: i32) -> (i32, i32) {
    %c0_i32 = arith.constant 0 : i32
    %c0_i32_0 = arith.constant 0 : i32
    %c0_i32_1 = arith.constant 0 : i32
    return %c0_i32, %c0_i32_0 : i32, i32
  }
  func.func @transform_14(%arg0: i32) -> (i32, i32) {
    %c0_i32 = arith.constant 0 : i32
    %c0_i32_0 = arith.constant 0 : i32
    %c0_i32_1 = arith.constant 0 : i32
    return %c0_i32, %c0_i32_0 : i32, i32
  }
  func.func @transform_15(%arg0: i32) -> (i32, i32) {
    %c0_i32 = arith.constant 0 : i32
    %c0_i32_0 = arith.constant 0 : i32
    %c0_i32_1 = arith.constant 0 : i32
    return %c0_i32, %c0_i32_0 : i32, i32
  }
  func.func @transform_16(%arg0: i32) -> (i32, i32) {
    %c0_i32 = arith.constant 0 : i32
    %c0_i32_0 = arith.constant 0 : i32
    %c0_i32_1 = arith.constant 0 : i32
    return %c0_i32, %c0_i32_0 : i32, i32
  }
  func.func @transform_17(%arg0: i32) -> (i32, i32) {
    %c0_i32 = arith.constant 0 : i32
    %c0_i32_0 = arith.constant 0 : i32
    return %arg0, %c0_i32 : i32, i32
  }
}

</mosaic_0001>

<bundles_post_ra>
// kernel: forward_pallas.1
= control target key start
LH: loop header
LB: loop body
LE: loop exit
PB: predicated region body
PF: predicated region fallthrough
CT: control target
= control target key end

     0   :  { %vm105_vm0 = vcmask 1045504   ;;  %vm92_vm1 = vcmask 97280   ;;  %v9633_v43 = vmov 0   ;;  %vm448_vm2 = vcmask 523264   ;;  %s9614_s1 = inlined_call_operand.vmem [shape: bf16[12,64], index: 1, kind: input, shape index: {}]   ;;  %s9615_s0 = inlined_call_operand.vmem [shape: bf16[1,64,12], index: 0, kind: input, shape index: {}]   ;;  %s9616_s4 = inlined_call_operand.vmem [shape: bf16[64,1024], index: 4, kind: input, shape index: {}]   ;;  %s9617_s7 = inlined_call_operand.vmem [shape: bf16[128,512], index: 7, kind: input, shape index: {}]   ;;  %s9618_s6 = inlined_call_operand.vmem [shape: bf16[128,512], index: 6, kind: input, shape index: {}]   ;;  %s9619_s2 = inlined_call_operand.vmem [shape: f32[1,64], index: 2, kind: input, shape index: {}]   ;;  %s9620_s3 = inlined_call_operand.vmem [shape: f32[1,64], index: 3, kind: input, shape index: {}]   ;;  %s9621_s5 = inlined_call_operand.vmem [shape: f32[1,1024], index: 5, kind: input, shape index: {}]   ;;  %s9622_s8 = inlined_call_operand.vmem [shape: bf16[256,1024], index: 8, kind: input, shape index: {}]   ;;  %s9623_s10 = inlined_call_operand.vmem [shape: bf16[128,512], index: 10, kind: input, shape index: {}]   ;;  %s9624_s11 = inlined_call_operand.vmem [shape: bf16[128,512], index: 11, kind: input, shape index: {}]   ;;  %s9625_s9 = inlined_call_operand.vmem [shape: f32[1,1024], index: 9, kind: input, shape index: {}]   ;;  %s9626_s12 = inlined_call_operand.vmem [shape: bf16[1024,256], index: 12, kind: input, shape index: {}]   ;;  %s9627_s15 = inlined_call_operand.vmem [shape: bf16[256,128], index: 15, kind: input, shape index: {}]   ;;  %s9628_s13 = inlined_call_operand.vmem [shape: f32[1,256], index: 13, kind: input, shape index: {}]   ;;  %s9629_s14 = inlined_call_operand.vmem [shape: f32[1,256], index: 14, kind: input, shape index: {}]   ;;  %s9630_s16 = inlined_call_operand.vmem [shape: f32[1,128], index: 16, kind: input, shape index: {}]   ;;  %s9631_s17 = inlined_call_operand.vmem [shape: f32[8,128], index: 17, kind: output, shape index: {}]  }
   0x1   :  { %9738 = sst [smem:[#allocation63_spill]] %s9614_s1  ;;  %v214_v6 = vld [vmem:[%s9616_s4] sm:$0xff]  ;;  %v216_v8 = vld [vmem:[%s9616_s4 + $0x10] sm:$0xff]  ;;  %v215_v38 = vld [vmem:[%s9616_s4 + $0x8] sm:$0xff]  ;;  %593 = vmatprep.mubr.bf16.mxu1 %v9633_v43 }
   0x2   :  { %9739 = sst [smem:[#allocation64_spill]] %s9615_s0  ;;  %s9740_s26 = sld [smem:[#allocation63_spill]]  ;;  %v218_v7 = vld [vmem:[%s9616_s4 + $0x20] sm:$0xff]  ;;  %v220_v10 = vld [vmem:[%s9616_s4 + $0x30] sm:$0xff]  ;;  %v219_v39 = vld [vmem:[%s9616_s4 + $0x28] sm:$0xff] }
   0x3   :  { %s9741_s29 = sld [smem:[#allocation64_spill]]  ;;  %v5493_v9 = vcombine.high %v214_v6, %v218_v7  ;;  %v5492_v11 = vcombine.low %v214_v6, %v218_v7  ;;  %v5497_v12 = vcombine.high %v216_v8, %v220_v10  ;;  %v5496_v13 = vcombine.low %v216_v8, %v220_v10  ;;  %v222_v14 = vld [vmem:[%s9616_s4 + $0x40] sm:$0xff]  ;;  %v224_v16 = vld [vmem:[%s9616_s4 + $0x50] sm:$0xff] }
   0x4   :  { %v226_v15 = vld [vmem:[%s9616_s4 + $0x60] sm:$0xff]  ;;  %v228_v18 = vld [vmem:[%s9616_s4 + $0x70] sm:$0xff]  ;;  %v5495_v40 = vcombine.high %v215_v38, %v219_v39  ;;  %v5494_v42 = vcombine.low %v215_v38, %v219_v39  ;;  %v225_v39 = vld [vmem:[%s9616_s4 + $0x58] sm:$0xff] }
   0x5   :  { %561 = vmatprep.subr.bf16.mxu1 %v5497_v12  ;;  %v5501_v17 = vcombine.high %v222_v14, %v226_v15  ;;  %v5500_v19 = vcombine.low %v222_v14, %v226_v15  ;;  %v5505_v20 = vcombine.high %v224_v16, %v228_v18  ;;  %v5504_v21 = vcombine.low %v224_v16, %v228_v18  ;;  %v230_v22 = vld [vmem:[%s9616_s4 + $0x80] sm:$0xff]  ;;  %v232_v24 = vld [vmem:[%s9616_s4 + $0x90] sm:$0xff]  ;;  %v223_v12 = vld [vmem:[%s9616_s4 + $0x48] sm:$0xff] }
   0x6   :  { %562 = vmatpush1.bf16.msra.mxu1 %v5496_v13  ;;  %v234_v23 = vld [vmem:[%s9616_s4 + $0xa0] sm:$0xff]  ;;  %v236_v26 = vld [vmem:[%s9616_s4 + $0xb0] sm:$0xff]  ;;  %v227_v13 = vld [vmem:[%s9616_s4 + $0x68] sm:$0xff] }
   0x7   :  { %563 = vmatprep.subr.bf16.mxu1 %v5505_v20  ;;  %v5509_v25 = vcombine.high %v230_v22, %v234_v23  ;;  %v5508_v27 = vcombine.low %v230_v22, %v234_v23  ;;  %v5513_v28 = vcombine.high %v232_v24, %v236_v26  ;;  %v5512_v29 = vcombine.low %v232_v24, %v236_v26  ;;  %v238_v30 = vld [vmem:[%s9616_s4 + $0xc0] sm:$0xff]  ;;  %v240_v32 = vld [vmem:[%s9616_s4 + $0xd0] sm:$0xff]  ;;  %v235_v22 = vld [vmem:[%s9616_s4 + $0xa8] sm:$0xff] }
   0x8   :  { %v6032_v0 = vld [vmem:[%s9740_s26] sm:$0x3f]   ;;  %v244_v34 = vld [vmem:[%s9616_s4 + $0xf0] sm:$0xff]  ;;  %v5502_v23 = vcombine.low %v223_v12, %v227_v13 }
   0x9   :  { %v6033_v1 = vld [vmem:[%s9741_s29] sm:$0xff]   ;;  %6030 = vmatprep.subr.msk.bf16.mxu0 %vm105_vm0, %v6032_v0  ;;  %v107_v2 = vsel %vm105_vm0, %v6032_v0, 0  ;;  %v6034_v3 = vld [vmem:[%s9741_s29 + $0x8] sm:$0xff]   ;;  %v6035_v4 = vld [vmem:[%s9741_s29 + $0x10] sm:$0xff]   ;;  %v5521_v36 = vcombine.high %v240_v32, %v244_v34  ;;  %v5520_v37 = vcombine.low %v240_v32, %v244_v34 }
   0xa   :  { %6009 = vmatpush3.bf16.msra.mxu0 %v107_v2  ;;  %6010 = vmatprep.mubr.msk.bf16.mxu0 %vm92_vm1, %v6033_v1  ;;  %v6036_v5 = vld [vmem:[%s9741_s29 + $0x18] sm:$0xff]   ;;  %v242_v31 = vld [vmem:[%s9616_s4 + $0xe0] sm:$0xff] }
   0xb   :  { %455 = vmatprep.subr.bf16.mxu0 %v5493_v9  ;;  %564 = vmatpush1.bf16.msra.mxu1 %v5504_v21  ;;  %v5517_v33 = vcombine.high %v238_v30, %v242_v31  ;;  %v5516_v35 = vcombine.low %v238_v30, %v242_v31  ;;  %v6911_v41 = vld [vmem:[%s9617_s7 + $0x4] ss:$16 sps:$4 sm:$0xff]   ;;  %v5490_v48 = vld [vmem:[%s9619_s2] ss:$0 sm:$0xff]  ;;  %v231_v21 = vld [vmem:[%s9616_s4 + $0x88] sm:$0xff] }
   0xc   :  { %565 = vmatprep.subr.bf16.mxu1 %v5513_v28  ;;  %v5491_v50 = vld [vmem:[%s9620_s3] ss:$0 sm:$0xff]  ;;  %v6940_v20 = vld [vmem:[%s9617_s7 + $0x24] ss:$16 sps:$4 sm:$0xff]   ;;  %v243_v28 = vld [vmem:[%s9616_s4 + $0xe8] sm:$0xff] }
   0xd   :  { %6011 = vmatmul.mubr.msk.bf16.vlgmr.msra.gmra.mrb[0].mxu0 %vm92_vm1, %v6034_v3  ;;  %v6956_v24 = vld [vmem:[%s9617_s7 + $0x20] ss:$16 sps:$4 sm:$0xff]   ;;  %v6962_v26 = vld [vmem:[%s9617_s7 + $0x44] ss:$16 sps:$4 sm:$0xff]   ;;  %v221_v34 = vld [vmem:[%s9616_s4 + $0x38] sm:$0xff] }
   0xe   :  { %6014 = vmatprep.mubr.msk.bf16.mxu0 %vm92_vm1, %v6035_v4  ;;  %456 = vmatpush1.bf16.msra.mxu0 %v5492_v11  ;;  %v6976_v30 = vld [vmem:[%s9617_s7 + $0x40] ss:$16 sps:$4 sm:$0xff]   ;;  %v6982_v32 = vld [vmem:[%s9617_s7 + $0x64] ss:$16 sps:$4 sm:$0xff]  }
   0xf   :  { %457 = vmatprep.subr.bf16.mxu0 %v5501_v17  ;;  %566 = vmatpush1.bf16.msra.mxu1 %v5512_v29  ;;  %v6933_v17 = vld [vmem:[%s9617_s7] ss:$16 sps:$4 sm:$0xff]   ;;  %v5510_v29 = vcombine.low %v231_v21, %v235_v22  ;;  %v7004_v38 = vld [vmem:[%s9617_s7 + $0x84] ss:$16 sps:$4 sm:$0xff]  }
  0x10   :  { %567 = vmatprep.subr.bf16.mxu1 %v5521_v36  ;;  %v6998_v36 = vld [vmem:[%s9617_s7 + $0x60] ss:$16 sps:$4 sm:$0xff]  }
  0x12   :  { %458 = vmatpush1.bf16.msra.mxu0 %v5500_v19  ;;  %v5503_v19 = vcombine.high %v223_v12, %v227_v13  ;;  %v7189_v12 = vld [vmem:[%s9618_s6 + $0xe0] ss:$16 sps:$4 sm:$0xff]   ;;  %v7195_v13 = vld [vmem:[%s9618_s6 + $0xc] ss:$16 sps:$4 sm:$0xff]  }
  0x13   :  { %459 = vmatprep.subr.bf16.mxu0 %v5509_v25  ;;  %568 = vmatpush1.bf16.msra.mxu1 %v5520_v37  ;;  %v5511_v25 = vcombine.high %v231_v21, %v235_v22  ;;  %9755 = vst [vmem:[#allocation18_spill] sm:$0xff] %v7189_v12  ;;  %v7243_v21 = vld [vmem:[%s9618_s6 + $0x68] ss:$16 sps:$4 sm:$0xff]   ;;  %v7249_v22 = vld [vmem:[%s9618_s6 + $0x8c] ss:$16 sps:$4 sm:$0xff]  }
  0x14   :  { %1173 = vmatprep.subr.bf16.mxu1 %v6911_v41  ;;  %9761 = vst [vmem:[#allocation24_spill] sm:$0xff] %v7243_v21  ;;  %9762 = vst [vmem:[#allocation25_spill] sm:$0xff] %v7249_v22 }
  0x15   :  { %6015 = vmatmul.mubr.msk.bf16.gmra.mrb[4].mxu0 %vm92_vm1, %v6036_v5 }
  0x16   :  { %460 = vmatpush1.bf16.msra.mxu0 %v5508_v27  ;;  %487 = vmatprep.mubr.bf16.mxu0 %v9633_v43  ;;  %v239_v27 = vld [vmem:[%s9616_s4 + $0xc8] sm:$0xff] }
  0x17   :  { %461 = vmatprep.subr.bf16.mxu0 %v5517_v33  ;;  %v5519_v31 = vcombine.high %v239_v27, %v243_v28  ;;  %v217_v33 = vld [vmem:[%s9616_s4 + $0x18] sm:$0xff] }
  0x18   :  { %v5499_v37 = vcombine.high %v217_v33, %v221_v34 }
  0x1a   :  { %462 = vmatpush1.bf16.msra.mxu0 %v5516_v35  ;;  %v5518_v35 = vcombine.low %v239_v27, %v243_v28  ;;  %v7267_v27 = vld [vmem:[%s9618_s6 + $0xa8] ss:$16 sps:$4 sm:$0xff]   ;;  %v7273_v28 = vld [vmem:[%s9618_s6 + $0xcc] ss:$16 sps:$4 sm:$0xff]  }
  0x1b   :  { %508 = vmatprep.subr.bf16.mxu0 %v5495_v40  ;;  %v229_v40 = vld [vmem:[%s9616_s4 + $0x78] sm:$0xff]  ;;  %9765 = vst [vmem:[#allocation28_spill] sm:$0xff] %v7267_v27  ;;  %9766 = vst [vmem:[#allocation29_spill] sm:$0xff] %v7273_v28 }
  0xe0   :  { %v6012_v44 = vpop.f32.mrb[0].mxu0 }
  0xe1   :  { %v143_v45 = vpop.f32.mrb[1].mxu0  ;;  %v184_v49 = vmul.f32 %v6012_v44, %v5490_v48  ;;  %v7018_v44 = vld [vmem:[%s9617_s7 + $0x80] ss:$16 sps:$4 sm:$0xff]  }
  0xe2   :  { %v6013_v46 = vpop.f32.mrb[2].mxu0  ;;  %v182_v51 = vmul.f32 %v5490_v48, %v143_v45  ;;  %v5507_v45 = vcombine.high %v225_v39, %v229_v40 }
  0xe3   :  { %v146_v47 = vpop.f32.mrb[3].mxu0  ;;  %v185_v53 = vmul.f32 %v6013_v46, %v5490_v48  ;;  %v194_v59 = vadd.f32 %v5491_v50, %v184_v49  ;;  %v7024_v46 = vld [vmem:[%s9617_s7 + $0xa4] ss:$16 sps:$4 sm:$0xff]   ;;  %v5506_v49 = vcombine.low %v225_v39, %v229_v40  ;;  %v7316_v39 = vld [vmem:[%s9617_s7 + $0x28] ss:$16 sps:$4 sm:$0xff]  }
  0xe4   :  { %v183_v56 = vmul.f32 %v5490_v48, %v146_v47  ;;  %v192_v63 = vadd.f32 %v5491_v50, %v182_v51  ;;  %v233_v47 = vld [vmem:[%s9616_s4 + $0x98] sm:$0xff] }
  0xe5   :  { %v195_v2 = vadd.f32 %v5491_v50, %v185_v53  ;;  %v241_v53 = vld [vmem:[%s9616_s4 + $0xd8] sm:$0xff] }
  0xe6   :  { %v193_v5 = vadd.f32 %v5491_v50, %v183_v56  ;;  %v7057_v56 = vld [vmem:[%s9617_s7 + $0xc0] ss:$16 sps:$4 sm:$0xff]   ;;  %v7323_v40 = vld [vmem:[%s9617_s7 + $0x4c] ss:$16 sps:$4 sm:$0xff]  }
  0xe8   :  { %v6016_v52 = vpop.f32.mrb[4].mxu0 }
  0xe9   :  { %v198_v54 = vmul.f32 %v6016_v52, %v5490_v48  ;;  %v159_v55 = vpop.f32.mrb[5].mxu0  ;;  %v7044_v52 = vld [vmem:[%s9617_s7 + $0xc4] ss:$16 sps:$4 sm:$0xff]  }
  0xea   :  { %v196_v57 = vmul.f32 %v5490_v48, %v159_v55  ;;  %v6017_v58 = vpop.f32.mrb[6].mxu0 }
  0xeb   :  { %v202_v60 = vadd.f32 %v5491_v50, %v198_v54  ;;  %v199_v61 = vmul.f32 %v6017_v58, %v5490_v48  ;;  %v162_v62 = vpop.f32.mrb[7].mxu0  ;;  %v245_v54 = vld [vmem:[%s9616_s4 + $0xf8] sm:$0xff]  ;;  %v7063_v58 = vld [vmem:[%s9617_s7 + $0xe4] ss:$16 sps:$4 sm:$0xff]  }
  0xec   :  { %v200_v0 = vadd.f32 %v5491_v50, %v196_v57  ;;  %v197_v1 = vmul.f32 %v5490_v48, %v162_v62  ;;  %v237_v48 = vld [vmem:[%s9616_s4 + $0xb8] sm:$0xff]  ;;  %v5523_v57 = vcombine.high %v241_v53, %v245_v54  ;;  %v7084_v62 = vld [vmem:[%s9618_s6] ss:$16 sps:$4 sm:$0xff]  }
  0xed   :  { %v206_v3 = vmax.f32 %v194_v59, %v202_v60  ;;  %v203_v4 = vadd.f32 %v5491_v50, %v199_v61  ;;  %v5515_v51 = vcombine.high %v233_v47, %v237_v48  ;;  %v5514_v55 = vcombine.low %v233_v47, %v237_v48  ;;  %v7071_v60 = vld [vmem:[%s9617_s7 + $0xe0] ss:$16 sps:$4 sm:$0xff]   ;;  %v7077_v61 = vld [vmem:[%s9618_s6 + $0x4] ss:$16 sps:$4 sm:$0xff]   ;;  %v7341_v47 = vld [vmem:[%s9617_s7 + $0x68] ss:$16 sps:$4 sm:$0xff]  }
  0xee   :  { %v204_v6 = vmax.f32 %v192_v63, %v200_v0  ;;  %v201_v7 = vadd.f32 %v5491_v50, %v197_v1  ;;  %v7038_v50 = vld [vmem:[%s9617_s7 + $0xa0] ss:$16 sps:$4 sm:$0xff]   ;;  %v5522_v59 = vcombine.low %v241_v53, %v245_v54  ;;  %v7090_v63 = vld [vmem:[%s9618_s6 + $0x24] ss:$16 sps:$4 sm:$0xff]   ;;  %v7347_v48 = vld [vmem:[%s9617_s7 + $0x8c] ss:$16 sps:$4 sm:$0xff]  }
  0xef   :  { %v207_v8 = vmax.f32 %v195_v2, %v203_v4  ;;  %v210_v10 = vmax.f32 %v206_v3, 0.0  ;;  %9742 = vst [vmem:[#allocation5_spill] sm:$0xff] %v7090_v63  ;;  %v7100_v0 = vld [vmem:[%s9618_s6 + $0x20] ss:$16 sps:$4 sm:$0xff]   ;;  %v7107_v1 = vld [vmem:[%s9618_s6 + $0x44] ss:$16 sps:$4 sm:$0xff]  }
  0xf0   :  { %v205_v9 = vmax.f32 %v193_v5, %v201_v7  ;;  %v208_v14 = vmax.f32 %v204_v6, 0.0  ;;  %9743 = vst [vmem:[#allocation6_spill] sm:$0xff] %v7100_v0  ;;  %9744 = vst [vmem:[#allocation7_spill] sm:$0xff] %v7107_v1  ;;  %v7116_v2 = vld [vmem:[%s9618_s6 + $0x40] ss:$16 sps:$4 sm:$0xff]  }
  0xf1   :  { %v211_v11 = vmax.f32 %v207_v8, 0.0  ;;  %9745 = vst [vmem:[#allocation8_spill] sm:$0xff] %v7116_v2  ;;  %v7122_v3 = vld [vmem:[%s9618_s6 + $0x64] ss:$16 sps:$4 sm:$0xff]   ;;  %v7132_v4 = vld [vmem:[%s9618_s6 + $0x60] ss:$16 sps:$4 sm:$0xff]  }
  0xf2   :  { %v209_v15 = vmax.f32 %v205_v9, 0.0  ;;  %9746 = vst [vmem:[#allocation9_spill] sm:$0xff] %v7122_v3  ;;  %9747 = vst [vmem:[#allocation10_spill] sm:$0xff] %v7132_v4  ;;  %v7139_v5 = vld [vmem:[%s9618_s6 + $0x84] ss:$16 sps:$4 sm:$0xff]  }
  0xf3   :  { %v6928_v16 = vpack.c.bf16 %v211_v11, %v210_v10  ;;  %9748 = vst [vmem:[#allocation11_spill] sm:$0xff] %v7139_v5  ;;  %v7147_v6 = vld [vmem:[%s9618_s6 + $0x80] ss:$16 sps:$4 sm:$0xff]   ;;  %v7153_v7 = vld [vmem:[%s9618_s6 + $0xa4] ss:$16 sps:$4 sm:$0xff]  }
  0xf4   :  { %v6935_v18 = vpack.c.bf16 %v209_v15, %v208_v14  ;;  %9749 = vst [vmem:[#allocation12_spill] sm:$0xff] %v7147_v6  ;;  %9750 = vst [vmem:[#allocation13_spill] sm:$0xff] %v7153_v7  ;;  %v7161_v8 = vld [vmem:[%s9618_s6 + $0xa0] ss:$16 sps:$4 sm:$0xff]   ;;  %v7167_v9 = vld [vmem:[%s9618_s6 + $0xc4] ss:$16 sps:$4 sm:$0xff]  }
  0xf5   :  { %9751 = vst [vmem:[#allocation14_spill] sm:$0xff] %v7161_v8  ;;  %9752 = vst [vmem:[#allocation15_spill] sm:$0xff] %v7167_v9  ;;  %v7175_v10 = vld [vmem:[%s9618_s6 + $0xc0] ss:$16 sps:$4 sm:$0xff]   ;;  %v7181_v11 = vld [vmem:[%s9618_s6 + $0xe4] ss:$16 sps:$4 sm:$0xff]  }
  0xf6   :  { %5524 = vmatmul.mubr.msk.bf16.vlgmr.msra.gmra.mrb[8].mxu0 %vm448_vm2, %v6935_v18  ;;  %5528 = vmatmul.mubr.msk.bf16.vlgmr.msra.gmra.mrb[0].mxu1 %vm448_vm2, %v6935_v18  ;;  %9753 = vst [vmem:[#allocation16_spill] sm:$0xff] %v7175_v10  ;;  %9754 = vst [vmem:[#allocation17_spill] sm:$0xff] %v7181_v11  ;;  %v7203_v14 = vld [vmem:[%s9618_s6 + $0x8] ss:$16 sps:$4 sm:$0xff]   ;;  %v7209_v15 = vld [vmem:[%s9618_s6 + $0x2c] ss:$16 sps:$4 sm:$0xff]  }
  0xf7   :  { %509 = vmatpush1.bf16.msra.mxu0 %v5494_v42  ;;  %1174 = vmatpush1.bf16.msra.mxu1 %v6933_v17  ;;  %v5498_v42 = vcombine.low %v217_v33, %v221_v34  ;;  %9756 = vst [vmem:[#allocation19_spill] sm:$0xff] %v7209_v15  ;;  %v7291_v33 = vld [vmem:[%s9618_s6 + $0xe8] ss:$16 sps:$4 sm:$0xff]   ;;  %v7297_v34 = vld [vmem:[%s9617_s7 + $0xc] ss:$16 sps:$4 sm:$0xff]  }
  0xf8   :  { %510 = vmatprep.subr.bf16.mxu0 %v5503_v19  ;;  %1175 = vmatprep.subr.bf16.mxu1 %v6940_v20  ;;  %v7237_v19 = vld [vmem:[%s9618_s6 + $0x6c] ss:$16 sps:$4 sm:$0xff]   ;;  %9769 = vst [vmem:[#allocation32_spill] sm:$0xff] %v7291_v33  ;;  %9770 = vst [vmem:[#allocation33_spill] sm:$0xff] %v7297_v34  ;;  %v7365_v53 = vld [vmem:[%s9617_s7 + $0xa8] ss:$16 sps:$4 sm:$0xff]  }
  0xf9   :  { %497 = vmatprep.mubr.bf16.mxu0 %v9633_v43  ;;  %603 = vmatprep.mubr.bf16.mxu1 %v9633_v43  ;;  %9760 = vst [vmem:[#allocation23_spill] sm:$0xff] %v7237_v19  ;;  %v7371_v54 = vld [vmem:[%s9617_s7 + $0xcc] ss:$16 sps:$4 sm:$0xff]  }
  0xfb   :  { %511 = vmatpush1.bf16.msra.mxu0 %v5502_v23  ;;  %1176 = vmatpush1.bf16.msra.mxu1 %v6956_v24  ;;  %v7255_v23 = vld [vmem:[%s9618_s6 + $0x88] ss:$16 sps:$4 sm:$0xff]  }
  0xfc   :  { %512 = vmatprep.subr.bf16.mxu0 %v5511_v25  ;;  %1177 = vmatprep.subr.bf16.mxu1 %v6962_v26  ;;  %9763 = vst [vmem:[#allocation26_spill] sm:$0xff] %v7255_v23  ;;  %v7261_v25 = vld [vmem:[%s9618_s6 + $0xac] ss:$16 sps:$4 sm:$0xff]  }
  0xfd   :  { %9764 = vst [vmem:[#allocation27_spill] sm:$0xff] %v7261_v25 }
  0xfe   :  { %5525 = vmatmul.mubr.msk.bf16.gmra.mrb[12].mxu0 %vm448_vm2, %v6928_v16  ;;  %5529 = vmatmul.mubr.msk.bf16.gmra.mrb[4].mxu1 %vm448_vm2, %v6928_v16 }
  0xff   :  { %513 = vmatpush1.bf16.msra.mxu0 %v5510_v29  ;;  %1178 = vmatpush1.bf16.msra.mxu1 %v6976_v30  ;;  %v7279_v29 = vld [vmem:[%s9618_s6 + $0xc8] ss:$16 sps:$4 sm:$0xff]  }
 0x100   :  { %514 = vmatprep.subr.bf16.mxu0 %v5519_v31  ;;  %1179 = vmatprep.subr.bf16.mxu1 %v6982_v32  ;;  %9767 = vst [vmem:[#allocation30_spill] sm:$0xff] %v7279_v29  ;;  %v7285_v31 = vld [vmem:[%s9618_s6 + $0xec] ss:$16 sps:$4 sm:$0xff]  }
 0x101   :  { %540 = vmatprep.mubr.bf16.mxu0 %v9633_v43  ;;  %1205 = vmatprep.mubr.bf16.mxu1 %v9633_v43  ;;  %9768 = vst [vmem:[#allocation31_spill] sm:$0xff] %v7285_v31 }
 0x103   :  { %515 = vmatpush1.bf16.msra.mxu0 %v5518_v35  ;;  %1180 = vmatpush1.bf16.msra.mxu1 %v6998_v36  ;;  %v7303_v35 = vld [vmem:[%s9617_s7 + $0x8] ss:$16 sps:$4 sm:$0xff]  }
 0x104   :  { %614 = vmatprep.subr.bf16.mxu0 %v5499_v37  ;;  %1181 = vmatprep.subr.bf16.mxu1 %v7004_v38  ;;  %v7309_v37 = vld [vmem:[%s9617_s7 + $0x2c] ss:$16 sps:$4 sm:$0xff]  }
 0x106   :  { %5526 = vmatmul.mubr.msk.bf16.vlgmr.msra.gmra.mrb[16].mxu0 %vm448_vm2, %v6935_v18 }
 0x107   :  { %615 = vmatpush1.bf16.msra.mxu0 %v5498_v42  ;;  %1182 = vmatpush1.bf16.msra.mxu1 %v7018_v44  ;;  %v7329_v42 = vld [vmem:[%s9617_s7 + $0x48] ss:$16 sps:$4 sm:$0xff]  }
 0x108   :  { %616 = vmatprep.subr.bf16.mxu0 %v5507_v45  ;;  %1183 = vmatprep.subr.bf16.mxu1 %v7024_v46  ;;  %v7335_v45 = vld [vmem:[%s9617_s7 + $0x6c] ss:$16 sps:$4 sm:$0xff]  }
 0x109   :  { %550 = vmatprep.mubr.bf16.mxu0 %v9633_v43 }
 0x10b   :  { %617 = vmatpush1.bf16.msra.mxu0 %v5506_v49  ;;  %1184 = vmatpush1.bf16.msra.mxu1 %v7038_v50  ;;  %v7353_v49 = vld [vmem:[%s9617_s7 + $0x88] ss:$16 sps:$4 sm:$0xff]  }
 0x10c   :  { %618 = vmatprep.subr.bf16.mxu0 %v5515_v51  ;;  %1185 = vmatprep.subr.bf16.mxu1 %v7044_v52  ;;  %v7359_v51 = vld [vmem:[%s9617_s7 + $0xac] ss:$16 sps:$4 sm:$0xff]  }
 0x10e   :  { %5527 = vmatmul.mubr.msk.bf16.gmra.mrb[20].mxu0 %vm448_vm2, %v6928_v16 }
 0x10f   :  { %619 = vmatpush1.bf16.msra.mxu0 %v5514_v55  ;;  %1186 = vmatpush1.bf16.msra.mxu1 %v7057_v56  ;;  %v7377_v55 = vld [vmem:[%s9617_s7 + $0xc8] ss:$16 sps:$4 sm:$0xff]  }
 0x110   :  { %620 = vmatprep.subr.bf16.mxu0 %v5523_v57  ;;  %1187 = vmatprep.subr.bf16.mxu1 %v7063_v58  ;;  %v7383_v57 = vld [vmem:[%s9617_s7 + $0xec] ss:$16 sps:$4 sm:$0xff]  }
 0x111   :  { %646 = vmatprep.mubr.bf16.mxu0 %v9633_v43 }
 0x113   :  { %621 = vmatpush1.bf16.msra.mxu0 %v5522_v59  ;;  %1188 = vmatpush1.bf16.msra.mxu1 %v7071_v60  ;;  %v7389_v59 = vld [vmem:[%s9617_s7 + $0xe8] ss:$16 sps:$4 sm:$0xff]  }
 0x114   :  { %927 = vmatprep.subr.bf16.mxu0 %v7077_v61  ;;  %1310 = vmatprep.subr.bf16.mxu1 %v7077_v61 }
 0x116   :  { %1206 = vmatmul.mubr.bf16.vlgmr.msra.gmra.mrb[8].mxu1 %v9633_v43  ;;  %5530 = vmatmul.mubr.msk.bf16.vlgmr.msra.gmra.mrb[24].mxu0 %vm448_vm2, %v6935_v18  ;;  %v7225_v18 = vld [vmem:[%s9618_s6 + $0x4c] ss:$16 sps:$4 sm:$0xff]  }
 0x117   :  { %928 = vmatpush1.bf16.msra.mxu0 %v7084_v62  ;;  %656 = vmatprep.mubr.bf16.mxu0 %v9633_v43  ;;  %9758 = vst [vmem:[#allocation21_spill] sm:$0xff] %v7225_v18 }
 0x118   :  { %929 = vmatprep.subr.bf16.mxu0 %v7090_v63  ;;  %1311 = vmatpush1.bf16.msra.mxu1 %v7084_v62 }
 0x119   :  { %1312 = vmatprep.subr.bf16.mxu1 %v7090_v63  ;;  %1342 = vmatprep.mubr.bf16.mxu1 %v9633_v43 }
 0x11b   :  { %930 = vmatpush1.bf16.msra.mxu0 %v7100_v0 }
 0x11c   :  { %931 = vmatprep.subr.bf16.mxu0 %v7107_v1  ;;  %1313 = vmatpush1.bf16.msra.mxu1 %v7100_v0 }
 0x11d   :  { %1314 = vmatprep.subr.bf16.mxu1 %v7107_v1 }
 0x11e   :  { %5531 = vmatmul.mubr.msk.bf16.gmra.mrb[28].mxu0 %vm448_vm2, %v6928_v16  ;;  %v7218_v16 = vld [vmem:[%s9618_s6 + $0x28] ss:$16 sps:$4 sm:$0xff]  }
 0x11f   :  { %932 = vmatpush1.bf16.msra.mxu0 %v7116_v2  ;;  %959 = vmatprep.mubr.bf16.mxu0 %v9633_v43  ;;  %9757 = vst [vmem:[#allocation20_spill] sm:$0xff] %v7218_v16 }
 0x120   :  { %933 = vmatprep.subr.bf16.mxu0 %v7122_v3  ;;  %1315 = vmatpush1.bf16.msra.mxu1 %v7116_v2 }
 0x121   :  { %1316 = vmatprep.subr.bf16.mxu1 %v7122_v3 }
 0x123   :  { %934 = vmatpush1.bf16.msra.mxu0 %v7132_v4 }
 0x124   :  { %935 = vmatprep.subr.bf16.mxu0 %v7139_v5  ;;  %1317 = vmatpush1.bf16.msra.mxu1 %v7132_v4 }
 0x125   :  { %1318 = vmatprep.subr.bf16.mxu1 %v7139_v5 }
 0x127   :  { %936 = vmatpush1.bf16.msra.mxu0 %v7147_v6 }
 0x128   :  { %937 = vmatprep.subr.bf16.mxu0 %v7153_v7  ;;  %1319 = vmatpush1.bf16.msra.mxu1 %v7147_v6 }
 0x129   :  { %1320 = vmatprep.subr.bf16.mxu1 %v7153_v7 }
 0x12b   :  { %938 = vmatpush1.bf16.msra.mxu0 %v7161_v8 }
 0x12c   :  { %939 = vmatprep.subr.bf16.mxu0 %v7167_v9  ;;  %1321 = vmatpush1.bf16.msra.mxu1 %v7161_v8 }
 0x12d   :  { %1322 = vmatprep.subr.bf16.mxu1 %v7167_v9 }
 0x12f   :  { %940 = vmatpush1.bf16.msra.mxu0 %v7175_v10 }
 0x130   :  { %941 = vmatprep.subr.bf16.mxu0 %v7181_v11  ;;  %1323 = vmatpush1.bf16.msra.mxu1 %v7175_v10  ;;  %v246_v10 = vld [vmem:[%s9621_s5] sm:$0xff] }
 0x131   :  { %1324 = vmatprep.subr.bf16.mxu1 %v7181_v11 }
 0x133   :  { %942 = vmatpush1.bf16.msra.mxu0 %v7189_v12 }
 0x134   :  { %968 = vmatprep.subr.bf16.mxu0 %v7195_v13  ;;  %1325 = vmatpush1.bf16.msra.mxu1 %v7189_v12 }
 0x135   :  { %1397 = vmatprep.subr.bf16.mxu1 %v6911_v41  ;;  %v7231_v41 = vld [vmem:[%s9618_s6 + $0x48] ss:$16 sps:$4 sm:$0xff]  }
 0x136   :  { %960 = vmatmul.mubr.bf16.vlgmr.msra.gmra.mrb[32].mxu0 %v9633_v43  ;;  %9759 = vst [vmem:[#allocation22_spill] sm:$0xff] %v7231_v41 }
 0x137   :  { %969 = vmatpush1.bf16.msra.mxu0 %v7203_v14  ;;  %1000 = vmatprep.mubr.bf16.mxu0 %v9633_v43 }
 0x138   :  { %970 = vmatprep.subr.bf16.mxu0 %v7209_v15 }
 0x13b   :  { %971 = vmatpush1.bf16.msra.mxu0 %v7218_v16 }
 0x13c   :  { %972 = vmatprep.subr.bf16.mxu0 %v7225_v18 }
 0x13f   :  { %973 = vmatpush1.bf16.msra.mxu0 %v7231_v41 }
 0x140   :  { %974 = vmatprep.subr.bf16.mxu0 %v7237_v19 }
 0x143   :  { %975 = vmatpush1.bf16.msra.mxu0 %v7243_v21 }
 0x144   :  { %976 = vmatprep.subr.bf16.mxu0 %v7249_v22 }
 0x147   :  { %977 = vmatpush1.bf16.msra.mxu0 %v7255_v23 }
 0x148   :  { %978 = vmatprep.subr.bf16.mxu0 %v7261_v25 }
 0x14b   :  { %979 = vmatpush1.bf16.msra.mxu0 %v7267_v27 }
 0x14c   :  { %980 = vmatprep.subr.bf16.mxu0 %v7273_v28 }
 0x14f   :  { %981 = vmatpush1.bf16.msra.mxu0 %v7279_v29 }
 0x150   :  { %982 = vmatprep.subr.bf16.mxu0 %v7285_v31 }
 0x153   :  { %983 = vmatpush1.bf16.msra.mxu0 %v7291_v33 }
 0x154   :  { %1214 = vmatprep.subr.bf16.mxu0 %v7297_v34 }
 0x156   :  { %1001 = vmatmul.mubr.bf16.vlgmr.msra.gmra.mrb[36].mxu0 %v9633_v43 }
 0x157   :  { %1215 = vmatpush1.bf16.msra.mxu0 %v7303_v35  ;;  %1246 = vmatprep.mubr.bf16.mxu0 %v9633_v43 }
 0x158   :  { %1216 = vmatprep.subr.bf16.mxu0 %v7309_v37 }
 0x15b   :  { %1217 = vmatpush1.bf16.msra.mxu0 %v7316_v39 }
 0x15c   :  { %1218 = vmatprep.subr.bf16.mxu0 %v7323_v40 }
 0x15f   :  { %1219 = vmatpush1.bf16.msra.mxu0 %v7329_v42 }
 0x160   :  { %1220 = vmatprep.subr.bf16.mxu0 %v7335_v45 }
 0x163   :  { %1221 = vmatpush1.bf16.msra.mxu0 %v7341_v47 }
 0x164   :  { %1222 = vmatprep.subr.bf16.mxu0 %v7347_v48 }
 0x167   :  { %1223 = vmatpush1.bf16.msra.mxu0 %v7353_v49 }
 0x168   :  { %1224 = vmatprep.subr.bf16.mxu0 %v7359_v51 }
 0x16b   :  { %1225 = vmatpush1.bf16.msra.mxu0 %v7365_v53 }
 0x16c   :  { %1226 = vmatprep.subr.bf16.mxu0 %v7371_v54 }
 0x16f   :  { %1227 = vmatpush1.bf16.msra.mxu0 %v7377_v55 }
 0x170   :  { %1228 = vmatprep.subr.bf16.mxu0 %v7383_v57 }
 0x173   :  { %1229 = vmatpush1.bf16.msra.mxu0 %v7389_v59 }
 0x174   :  { %1351 = vmatprep.subr.bf16.mxu0 %v7195_v13 }
 0x176   :  { %1247 = vmatmul.mubr.bf16.vlgmr.msra.gmra.mrb[40].mxu0 %v9633_v43 }
 0x177   :  { %1352 = vmatpush1.bf16.msra.mxu0 %v7203_v14  ;;  %1383 = vmatprep.mubr.bf16.mxu0 %v9633_v43  ;;  %v248_v43 = vlaneseq }
 0x178   :  { %1353 = vmatprep.subr.bf16.mxu0 %v7209_v15 }
 0x179   :  { %v7412_v12 = vshrl.u32 %v248_v43, 7 }
 0x17b   :  { %1354 = vmatpush1.bf16.msra.mxu0 %v7218_v16  ;;  %9771 = vst [vmem:[#allocation34_spill] sm:$0xff] %v7412_v12  ;;  %v9663_v11 = vsub.s32 4, %v7412_v12  ;;  %v9668_v9 = vsub.s32 5, %v7412_v12  ;;  %v9697_v2 = vsub.s32 6, %v7412_v12 }
 0x17c   :  { %1355 = vmatprep.subr.bf16.mxu0 %v7225_v18 }
 0x17d   :  { %v271_v43 = vrot.slane %v246_v10, %v9668_v9 }
 0x17f   :  { %1356 = vmatpush1.bf16.msra.mxu0 %v7231_v41 }
 0x180   :  { %1357 = vmatprep.subr.bf16.mxu0 %v7237_v19 }
 0x183   :  { %1358 = vmatpush1.bf16.msra.mxu0 %v7243_v21 }
 0x184   :  { %1359 = vmatprep.subr.bf16.mxu0 %v7249_v22 }
 0x187   :  { %1360 = vmatpush1.bf16.msra.mxu0 %v7255_v23 }
 0x188   :  { %1361 = vmatprep.subr.bf16.mxu0 %v7261_v25 }
 0x18b   :  { %1362 = vmatpush1.bf16.msra.mxu0 %v7267_v27 }
 0x18c   :  { %1363 = vmatprep.subr.bf16.mxu0 %v7273_v28  ;;  %v7420_v28 = vsub.s32 0, %v7412_v12 }
 0x18e   :  { %9772 = vst [vmem:[#allocation35_spill] sm:$0xff] %v7420_v28  ;;  %v7432_v27 = vrot.slane %v246_v10, %v7420_v28 }
 0x18f   :  { %1364 = vmatpush1.bf16.msra.mxu0 %v7279_v29 }
 0x190   :  { %1365 = vmatprep.subr.bf16.mxu0 %v7285_v31  ;;  %v267_v31 = vrot.slane %v246_v10, %v9663_v11 }
 0x193   :  { %1366 = vmatpush1.bf16.msra.mxu0 %v7291_v33  ;;  %v7425_v33 = vsub.s32 1, %v7412_v12 }
 0x194   :  { %1438 = vmatprep.subr.bf16.mxu0 %v7297_v34 }
 0x195   :  { %9773 = vst [vmem:[#allocation36_spill] sm:$0xff] %v7425_v33  ;;  %v7439_v23 = vrot.slane %v246_v10, %v7425_v33 }
 0x1c9   :  { %v7429_v34 = vpop.f32.mrb[8].mxu0  ;;  %v595_v29 = vpop.f32.mrb[0].mxu1 }
 0x1ca   :  { %v7434_v8 = vadd.f32 %v595_v29, %v267_v31  ;;  %v7436_v25 = vpop.f32.mrb[9].mxu0  ;;  %v597_v7 = vpop.f32.mrb[1].mxu1 }
 0x1cb   :  { %v7441_v11 = vadd.f32 %v597_v7, %v271_v43  ;;  %v493_v6 = vpop.f32.mrb[10].mxu0  ;;  %v599_v22 = vpop.f32.mrb[2].mxu1 }
 0x1cc   :  { %9774 = vst [vmem:[#allocation37_spill] sm:$0xff] %v7434_v8  ;;  %v7444_v9 = vadd.f32 %v493_v6, %v7432_v27  ;;  %v7446_v5 = vadd.f32 %v599_v22, %v267_v31  ;;  %v495_v21 = vpop.f32.mrb[11].mxu0  ;;  %v601_v28 = vpop.f32.mrb[3].mxu1 }
 0x1cd   :  { %9775 = vst [vmem:[#allocation38_spill] sm:$0xff] %v7441_v11  ;;  %v7449_v29 = vadd.f32 %v495_v21, %v7439_v23  ;;  %v7451_v8 = vadd.f32 %v601_v28, %v271_v43 }
 0x1ce   :  { %9776 = vst [vmem:[#allocation39_spill] sm:$0xff] %v7444_v9  ;;  %9777 = vst [vmem:[#allocation40_spill] sm:$0xff] %v7446_v5 }
 0x1cf   :  { %9778 = vst [vmem:[#allocation41_spill] sm:$0xff] %v7449_v29  ;;  %9779 = vst [vmem:[#allocation42_spill] sm:$0xff] %v7451_v8 }
 0x1d1   :  { %v499_v4 = vpop.f32.mrb[12].mxu0  ;;  %v605_v19 = vpop.f32.mrb[4].mxu1 }
 0x1d2   :  { %v7454_v33 = vadd.f32 %v499_v4, %v7432_v27  ;;  %v7456_v7 = vadd.f32 %v605_v19, %v267_v31  ;;  %v501_v11 = vpop.f32.mrb[13].mxu0  ;;  %v607_v3 = vpop.f32.mrb[5].mxu1  ;;  %v9691_v4 = vsub.s32 2, %v7412_v12  ;;  %v9694_v19 = vsub.s32 3, %v7412_v12 }
 0x1d3   :  { %v7459_v6 = vadd.f32 %v501_v11, %v7439_v23  ;;  %v7461_v22 = vadd.f32 %v607_v3, %v271_v43  ;;  %v503_v5 = vpop.f32.mrb[14].mxu0  ;;  %v609_v9 = vpop.f32.mrb[6].mxu1 }
 0x1d4   :  { %9780 = vst [vmem:[#allocation43_spill] sm:$0xff] %v7454_v33  ;;  %9781 = vst [vmem:[#allocation44_spill] sm:$0xff] %v7456_v7  ;;  %v7464_v21 = vadd.f32 %v503_v5, %v7432_v27  ;;  %v505_v28 = vpop.f32.mrb[15].mxu0  ;;  %v611_v8 = vpop.f32.mrb[7].mxu1  ;;  %v259_v11 = vrot.slane %v246_v10, %v9691_v4  ;;  %v9702_v4 = vsub.s32 7, %v7412_v12 }
 0x1d5   :  { %9782 = vst [vmem:[#allocation45_spill] sm:$0xff] %v7459_v6  ;;  %9783 = vst [vmem:[#allocation46_spill] sm:$0xff] %v7461_v22  ;;  %v7467_v29 = vadd.f32 %v505_v28, %v7439_v23  ;;  %v263_v6 = vrot.slane %v246_v10, %v9694_v19 }
 0x1d6   :  { %9784 = vst [vmem:[#allocation47_spill] sm:$0xff] %v7464_v21 }
 0x1d7   :  { %9785 = vst [vmem:[#allocation48_spill] sm:$0xff] %v7467_v29 }
 0x1d9   :  { %v542_v33 = vpop.f32.mrb[16].mxu0 }
 0x1da   :  { %v544_v3 = vpop.f32.mrb[17].mxu0 }
 0x1db   :  { %v546_v22 = vpop.f32.mrb[18].mxu0  ;;  %v545_v63 = vadd.f32 %v544_v3, %v263_v6 }
 0x1dc   :  { %v7475_v5 = vadd.f32 %v546_v22, %v259_v11  ;;  %v548_v21 = vpop.f32.mrb[19].mxu0  ;;  %v7491_v22 = vrot.slane %v246_v10, %v9697_v2 }
 0x1dd   :  { %v7477_v7 = vadd.f32 %v548_v21, %v263_v6  ;;  %v7495_v21 = vrot.slane %v246_v10, %v9702_v4 }
 0x1de   :  { %9786 = vst [vmem:[#allocation49_spill] sm:$0xff] %v7475_v5 }
 0x1df   :  { %9787 = vst [vmem:[#allocation50_spill] sm:$0xff] %v7477_v7 }
 0x1e1   :  { %v552_v28 = vpop.f32.mrb[20].mxu0 }
 0x1e2   :  { %v7479_v29 = vadd.f32 %v552_v28, %v259_v11  ;;  %v554_v41 = vpop.f32.mrb[21].mxu0  ;;  %v610_v28 = vadd.f32 %v609_v9, %v267_v31 }
 0x1e3   :  { %v7482_v18 = vadd.f32 %v554_v41, %v263_v6  ;;  %v556_v1 = vpop.f32.mrb[22].mxu0 }
 0x1e4   :  { %9788 = vst [vmem:[#allocation51_spill] sm:$0xff] %v7479_v29  ;;  %v7485_v16 = vadd.f32 %v556_v1, %v259_v11  ;;  %v558_v19 = vpop.f32.mrb[23].mxu0  ;;  %v612_v29 = vadd.f32 %v611_v8, %v271_v43 }
 0x1e5   :  { %9789 = vst [vmem:[#allocation52_spill] sm:$0xff] %v7482_v18  ;;  %v7487_v0 = vadd.f32 %v558_v19, %v263_v6 }
 0x1e6   :  { %9790 = vst [vmem:[#allocation53_spill] sm:$0xff] %v7485_v16 }
 0x1e7   :  { %9791 = vst [vmem:[#allocation54_spill] sm:$0xff] %v7487_v0 }
 0x1e9   :  { %v1207_v41 = vpop.f32.mrb[8].mxu1  ;;  %v648_v18 = vpop.f32.mrb[24].mxu0 }
 0x1ea   :  { %v1208_v7 = vadd.f32 %v1207_v41, %v610_v28  ;;  %v7498_v5 = vadd.f32 %v648_v18, %v7491_v22  ;;  %v1209_v1 = vpop.f32.mrb[9].mxu1  ;;  %v650_v16 = vpop.f32.mrb[25].mxu0 }
 0x1eb   :  { %v1210_v19 = vadd.f32 %v1209_v1, %v612_v29  ;;  %v7501_v0 = vadd.f32 %v650_v16, %v7495_v21  ;;  %v652_v2 = vpop.f32.mrb[26].mxu0  ;;  %v1211_v15 = vpop.f32.mrb[10].mxu1 }
 0x1ec   :  { %9792 = vst [vmem:[#allocation55_spill] sm:$0xff] %v7498_v5  ;;  %v7504_v12 = vadd.f32 %v652_v2, %v7491_v22  ;;  %v654_v10 = vpop.f32.mrb[27].mxu0  ;;  %v1212_v9 = vpop.f32.mrb[11].mxu1  ;;  %v490_v15 = vadd.f32 %v7429_v34, %v7432_v27  ;;  %v492_v2 = vadd.f32 %v7436_v25, %v7439_v23 }
 0x1ed   :  { %9793 = vst [vmem:[#allocation56_spill] sm:$0xff] %v7501_v0  ;;  %v7507_v8 = vadd.f32 %v654_v10, %v7495_v21 }
 0x1ee   :  { %9794 = vst [vmem:[#allocation57_spill] sm:$0xff] %v7504_v12 }
 0x1ef   :  { %9795 = vst [vmem:[#allocation58_spill] sm:$0xff] %v7507_v8 }
 0x1f1   :  { %v658_v31 = vpop.f32.mrb[28].mxu0 }
 0x1f2   :  { %v7510_v18 = vadd.f32 %v658_v31, %v7491_v22  ;;  %v660_v43 = vpop.f32.mrb[29].mxu0 }
 0x1f3   :  { %v7513_v29 = vadd.f32 %v660_v43, %v7495_v21  ;;  %v662_v16 = vpop.f32.mrb[30].mxu0 }
 0x1f4   :  { %9796 = vst [vmem:[#allocation59_spill] sm:$0xff] %v7510_v18  ;;  %v664_v28 = vpop.f32.mrb[31].mxu0  ;;  %v543_v18 = vadd.f32 %v542_v33, %v259_v11 }
 0x1f5   :  { %9797 = vst [vmem:[#allocation60_spill] sm:$0xff] %v7513_v29 }
 0x209   :  { %v961_v41 = vpop.f32.mrb[32].mxu0 }
 0x20a   :  { %v962_v1 = vadd.f32 %v961_v41, %v490_v15  ;;  %v963_v10 = vpop.f32.mrb[33].mxu0 }
 0x20b   :  { %v964_v9 = vadd.f32 %v963_v10, %v492_v2  ;;  %v965_v4 = vpop.f32.mrb[34].mxu0  ;;  %v5599_v10 = vmul.f32 -1.442695, %v1208_v7  ;;  %v663_v7 = vadd.f32 %v662_v16, %v7491_v22 }
 0x20c   :  { %v966_v0 = vpop.f32.mrb[35].mxu0  ;;  %v5596_v5 = vmul.f32 -1.442695, %v962_v1 }
 0x20d   :  { %v5597_v31 = vmul.f32 -1.442695, %v964_v9 }
 0x20f   :  { %6437 = vpow2.f32 %v5597_v31 }
 0x210   :  { %6439 = vpow2.f32 %v5596_v5  ;;  %v5600_v5 = vmul.f32 -1.442695, %v1210_v19 }
 0x219   :  { %v6438_v43 = vpop.eup %6437 }
 0x21a   :  { %v6440_v8 = vpop.eup %6439  ;;  %v1264_v12 = vadd.f32 1.0, %v6438_v43  ;;  %v665_v43 = vadd.f32 %v664_v28, %v7495_v21  ;;  %v9799_v21 = vmov 0  }
 0x21b   :  { %v1258_v29 = vadd.f32 1.0, %v6440_v8 }
 0x21c   :  { %6441 = vrcp.f32 %v1264_v12 }
 0x21d   :  { %6443 = vrcp.f32 %v1258_v29 }
 0x226   :  { %v6442_v2 = vpop.eup %6441 }
 0x227   :  { %v6444_v41 = vpop.eup %6443  ;;  %v1274_v9 = vmul.f32 0.0, %v6442_v2 }
 0x229   :  { %v1002_v27 = vpop.f32.mrb[36].mxu0 }
 0x22a   :  { %v1003_v34 = vadd.f32 %v1002_v27, %v543_v18  ;;  %v1004_v23 = vpop.f32.mrb[37].mxu0 }
 0x22b   :  { %v1005_v25 = vadd.f32 %v1004_v23, %v545_v63  ;;  %v1006_v15 = vpop.f32.mrb[38].mxu0 }
 0x22c   :  { %6445 = vtanh.f32 %v1003_v34  ;;  %v1007_v4 = vpop.f32.mrb[39].mxu0 }
 0x22d   :  { %v5598_v0 = vmul.f32 -1.442695, %v1005_v25 }
 0x22f   :  { %6447 = vpow2.f32 %v5598_v0 }
 0x230   :  { %6449 = vpow2.f32 %v5600_v5 }
 0x231   :  { %6451 = vpow2.f32 %v5599_v10  ;;  %v9802_v10 = vld [vmem:[#allocation19_spill] sm:$0xff] }
 0x236   :  { %v6446_v1 = vpop.eup %6445 }
 0x237   :  { %v1275_v8 = vmul.f32 %v6446_v1, %v6444_v41  ;;  %v9801_v1 = vld [vmem:[#allocation5_spill] sm:$0xff] }
 0x239   :  { %v6448_v33 = vpop.eup %6447  ;;  %v7519_v6 = vadd.f32 %v1275_v8, %v1274_v9  ;;  %v9803_v9 = vld [vmem:[#allocation6_spill] sm:$0xff]  ;;  %v9804_v8 = vld [vmem:[#allocation20_spill] sm:$0xff] }
 0x23a   :  { %v1271_v12 = vadd.f32 1.0, %v6448_v33  ;;  %v6450_v63 = vpop.eup %6449  ;;  %v9805_v33 = vld [vmem:[#allocation7_spill] sm:$0xff] }
 0x23b   :  { %6453 = vtanh.f32 %v7519_v6  ;;  %v6452_v11 = vpop.eup %6451  ;;  %v1288_v29 = vadd.f32 1.0, %v6450_v63  ;;  %v9807_v63 = vld [vmem:[#allocation8_spill] sm:$0xff] }
 0x23c   :  { %6455 = vrcp.f32 %v1271_v12  ;;  %v1282_v31 = vadd.f32 1.0, %v6452_v11  ;;  %v9806_v12 = vld [vmem:[#allocation21_spill] sm:$0xff]  ;;  %v9808_v11 = vld [vmem:[#allocation22_spill] sm:$0xff] }
 0x23d   :  { %6457 = vrcp.f32 %v1288_v29  ;;  %v9811_v29 = vld [vmem:[#allocation10_spill] sm:$0xff] }
 0x23e   :  { %6459 = vrcp.f32 %v1282_v31  ;;  %v9812_v31 = vld [vmem:[#allocation24_spill] sm:$0xff] }
 0x245   :  { %v6454_v3 = vpop.eup %6453 }
 0x246   :  { %v6456_v18 = vpop.eup %6455 }
 0x247   :  { %v7522_v19 = vmul.f32 %v6456_v18, %v6454_v3  ;;  %v9809_v3 = vld [vmem:[#allocation9_spill] sm:$0xff]  ;;  %v9810_v18 = vld [vmem:[#allocation23_spill] sm:$0xff] }
 0x249   :  { %9798 = vst [vmem:[#allocation61_spill] sm:$0xff] %v7522_v19  ;;  %v1248_v27 = vpop.f32.mrb[40].mxu0  ;;  %v1305_v34 = vpack.c.bf16 %v7522_v19, %v7522_v19 }
 0x24a   :  { %v1249_v23 = vadd.f32 %v1248_v27, %v663_v7  ;;  %v1250_v25 = vpop.f32.mrb[41].mxu0  ;;  %v9813_v7 = vld [vmem:[#allocation11_spill] sm:$0xff]  ;;  %v9815_v27 = vld [vmem:[#allocation12_spill] sm:$0xff] }
 0x24b   :  { %v1251_v15 = vadd.f32 %v1250_v25, %v665_v43  ;;  %v1252_v4 = vpop.f32.mrb[42].mxu0  ;;  %1343 = vmatmul.mubr.bf16.vlgmr.msra.gmra.mrb[12].mxu1 %v1305_v34  ;;  %1384 = vmatmul.mubr.bf16.vlgmr.msra.gmra.mrb[44].mxu0 %v1305_v34  ;;  %v9814_v43 = vld [vmem:[#allocation25_spill] sm:$0xff]  ;;  %v9816_v34 = vld [vmem:[#allocation26_spill] sm:$0xff]  ;;  %v9818_v25 = vld [vmem:[#allocation27_spill] sm:$0xff] }
 0x24c   :  { %6461 = vtanh.f32 %v1249_v23  ;;  %v1253_v0 = vpop.f32.mrb[43].mxu0  ;;  %1398 = vmatpush1.bf16.msra.mxu1 %v6933_v17  ;;  %1439 = vmatpush1.bf16.msra.mxu0 %v7303_v35  ;;  %v6458_v17 = vpop.eup %6457  ;;  %v9817_v23 = vld [vmem:[#allocation13_spill] sm:$0xff]  ;;  %v9820_v4 = vld [vmem:[#allocation28_spill] sm:$0xff] }
 0x24d   :  { %v5601_v22 = vmul.f32 -1.442695, %v1251_v15  ;;  %1399 = vmatprep.subr.bf16.mxu1 %v6940_v20  ;;  %1440 = vmatprep.subr.bf16.mxu0 %v7309_v37  ;;  %v6460_v20 = vpop.eup %6459  ;;  %v1298_v28 = vmul.f32 0.0, %v6458_v17  ;;  %v9819_v15 = vld [vmem:[#allocation14_spill] sm:$0xff]  ;;  %v9821_v0 = vld [vmem:[#allocation15_spill] sm:$0xff]  ;;  %v9823_v17 = vld [vmem:[#allocation16_spill] sm:$0xff] }
 0x24e   :  { %1429 = vmatprep.mubr.bf16.mxu1 %v9799_v21  ;;  %1470 = vmatprep.mubr.bf16.mxu0 %v9799_v21 }
 0x24f   :  { %6463 = vpow2.f32 %v5601_v22  ;;  %v9822_v22 = vld [vmem:[#allocation29_spill] sm:$0xff] }
 0x250   :  { %1400 = vmatpush1.bf16.msra.mxu1 %v6956_v24  ;;  %1441 = vmatpush1.bf16.msra.mxu0 %v7316_v39 }
 0x251   :  { %1401 = vmatprep.subr.bf16.mxu1 %v6962_v26  ;;  %1442 = vmatprep.subr.bf16.mxu0 %v7323_v40 }
 0x254   :  { %1402 = vmatpush1.bf16.msra.mxu1 %v6976_v30  ;;  %1443 = vmatpush1.bf16.msra.mxu0 %v7329_v42 }
 0x255   :  { %1403 = vmatprep.subr.bf16.mxu1 %v6982_v32  ;;  %1444 = vmatprep.subr.bf16.mxu0 %v7335_v45 }
 0x256   :  { %v6462_v16 = vpop.eup %6461 }
 0x257   :  { %v1299_v2 = vmul.f32 %v6462_v16, %v6460_v20  ;;  %v9824_v20 = vld [vmem:[#allocation30_spill] sm:$0xff]  ;;  %v9825_v16 = vld [vmem:[#allocation17_spill] sm:$0xff] }
 0x258   :  { %1404 = vmatpush1.bf16.msra.mxu1 %v6998_v36  ;;  %1445 = vmatpush1.bf16.msra.mxu0 %v7341_v47 }
 0x259   :  { %v6464_v24 = vpop.eup %6463  ;;  %v7544_v26 = vadd.f32 %v1299_v2, %v1298_v28  ;;  %1405 = vmatprep.subr.bf16.mxu1 %v7004_v38  ;;  %1446 = vmatprep.subr.bf16.mxu0 %v7347_v48  ;;  %v9826_v28 = vld [vmem:[#allocation31_spill] sm:$0xff]  ;;  %v9827_v2 = vld [vmem:[#allocation18_spill] sm:$0xff] }
 0x25a   :  { %v1295_v30 = vadd.f32 1.0, %v6464_v24  ;;  %v9828_v24 = vld [vmem:[#allocation32_spill] sm:$0xff] }
 0x25b   :  { %6465 = vtanh.f32 %v7544_v26 }
 0x25c   :  { %6467 = vrcp.f32 %v1295_v30  ;;  %1406 = vmatpush1.bf16.msra.mxu1 %v7018_v44  ;;  %1447 = vmatpush1.bf16.msra.mxu0 %v7353_v49  ;;  %v7604_v30 = vld [vmem:[%s9617_s7 + $0x4] ss:$16 sps:$4 sm:$0xff]  }
 0x25d   :  { %1407 = vmatprep.subr.bf16.mxu1 %v7024_v46  ;;  %1448 = vmatprep.subr.bf16.mxu0 %v7359_v51  ;;  %9829 = vst [vmem:[#allocation5_spill] sm:$0xff] %v7604_v30 }
 0x260   :  { %1408 = vmatpush1.bf16.msra.mxu1 %v7038_v50  ;;  %1449 = vmatpush1.bf16.msra.mxu0 %v7365_v53 }
 0x261   :  { %1409 = vmatprep.subr.bf16.mxu1 %v7044_v52  ;;  %1450 = vmatprep.subr.bf16.mxu0 %v7371_v54 }
 0x264   :  { %1410 = vmatpush1.bf16.msra.mxu1 %v7057_v56  ;;  %1451 = vmatpush1.bf16.msra.mxu0 %v7377_v55 }
 0x265   :  { %v6466_v32 = vpop.eup %6465  ;;  %1411 = vmatprep.subr.bf16.mxu1 %v7063_v58  ;;  %1452 = vmatprep.subr.bf16.mxu0 %v7383_v57 }
 0x266   :  { %v6468_v36 = vpop.eup %6467 }
 0x267   :  { %v7561_v41 = vmul.f32 %v6468_v36, %v6466_v32  ;;  %v9830_v32 = vld [vmem:[#allocation33_spill] sm:$0xff] }
 0x268   :  { %1412 = vmatpush1.bf16.msra.mxu1 %v7071_v60  ;;  %1453 = vmatpush1.bf16.msra.mxu0 %v7389_v59 }
 0x269   :  { %9800 = vst [vmem:[#allocation62_spill] sm:$0xff] %v7561_v41  ;;  %v1392_v5 = vpack.c.bf16 %v7561_v41, %v7561_v41  ;;  %1534 = vmatprep.subr.bf16.mxu1 %v7077_v61  ;;  %1575 = vmatprep.subr.bf16.mxu0 %v7195_v13  ;;  %v9831_v41 = vld [vmem:[#allocation39_spill] sm:$0xff] }
 0x26b   :  { %1430 = vmatmul.mubr.bf16.vlgmr.msra.gmra.mrb[16].mxu1 %v1392_v5  ;;  %1471 = vmatmul.mubr.bf16.vlgmr.msra.gmra.mrb[48].mxu0 %v1392_v5 }
 0x26c   :  { %1535 = vmatpush1.bf16.msra.mxu1 %v7084_v62  ;;  %1576 = vmatpush1.bf16.msra.mxu0 %v7203_v14 }
 0x26d   :  { %1536 = vmatprep.subr.bf16.mxu1 %v9801_v1  ;;  %1577 = vmatprep.subr.bf16.mxu0 %v9802_v10 }
 0x26e   :  { %1566 = vmatprep.mubr.bf16.mxu1 %v9799_v21  ;;  %1607 = vmatprep.mubr.bf16.mxu0 %v9799_v21 }
 0x270   :  { %1537 = vmatpush1.bf16.msra.mxu1 %v9803_v9  ;;  %1578 = vmatpush1.bf16.msra.mxu0 %v9804_v8 }
 0x271   :  { %1538 = vmatprep.subr.bf16.mxu1 %v9805_v33  ;;  %1579 = vmatprep.subr.bf16.mxu0 %v9806_v12 }
 0x274   :  { %1539 = vmatpush1.bf16.msra.mxu1 %v9807_v63  ;;  %1580 = vmatpush1.bf16.msra.mxu0 %v9808_v11 }
 0x275   :  { %1540 = vmatprep.subr.bf16.mxu1 %v9809_v3  ;;  %1581 = vmatprep.subr.bf16.mxu0 %v9810_v18 }
 0x278   :  { %1541 = vmatpush1.bf16.msra.mxu1 %v9811_v29  ;;  %1582 = vmatpush1.bf16.msra.mxu0 %v9812_v31 }
 0x279   :  { %1542 = vmatprep.subr.bf16.mxu1 %v9813_v7  ;;  %1583 = vmatprep.subr.bf16.mxu0 %v9814_v43 }
 0x27c   :  { %1543 = vmatpush1.bf16.msra.mxu1 %v9815_v27  ;;  %1584 = vmatpush1.bf16.msra.mxu0 %v9816_v34 }
 0x27d   :  { %1544 = vmatprep.subr.bf16.mxu1 %v9817_v23  ;;  %1585 = vmatprep.subr.bf16.mxu0 %v9818_v25 }
 0x280   :  { %1545 = vmatpush1.bf16.msra.mxu1 %v9819_v15  ;;  %1586 = vmatpush1.bf16.msra.mxu0 %v9820_v4 }
 0x281   :  { %1546 = vmatprep.subr.bf16.mxu1 %v9821_v0  ;;  %1587 = vmatprep.subr.bf16.mxu0 %v9822_v22 }
 0x284   :  { %1547 = vmatpush1.bf16.msra.mxu1 %v9823_v17  ;;  %1588 = vmatpush1.bf16.msra.mxu0 %v9824_v20 }
 0x285   :  { %1548 = vmatprep.subr.bf16.mxu1 %v9825_v16  ;;  %1589 = vmatprep.subr.bf16.mxu0 %v9826_v28  ;;  %v9832_v16 = vld [vmem:[#allocation49_spill] sm:$0xff] }
 0x288   :  { %1549 = vmatpush1.bf16.msra.mxu1 %v9827_v2  ;;  %1590 = vmatpush1.bf16.msra.mxu0 %v9828_v24  ;;  %v9833_v2 = vld [vmem:[#allocation41_spill] sm:$0xff]  ;;  %v9834_v24 = vld [vmem:[#allocation50_spill] sm:$0xff] }
 0x289   :  { %1621 = vmatprep.subr.bf16.mxu1 %v7604_v30  ;;  %1662 = vmatprep.subr.bf16.mxu0 %v9830_v32 }
 0x31e   :  { %v1344_v36 = vpop.f32.mrb[12].mxu1  ;;  %v1385_v5 = vpop.f32.mrb[44].mxu0 }
 0x31f   :  { %v1345_v19 = vadd.f32 %v1344_v36, %v9831_v41  ;;  %v1386_v20 = vadd.f32 %v1385_v5, %v9832_v16  ;;  %v1346_v28 = vpop.f32.mrb[13].mxu1  ;;  %v1387_v17 = vpop.f32.mrb[45].mxu0  ;;  %v9838_v5 = vld [vmem:[#allocation60_spill] sm:$0xff] }
 0x320   :  { %v1347_v22 = vadd.f32 %v1346_v28, %v9833_v2  ;;  %v1388_v0 = vadd.f32 %v1387_v17, %v9834_v24  ;;  %v1348_v4 = vpop.f32.mrb[14].mxu1  ;;  %v1389_v15 = vpop.f32.mrb[46].mxu0  ;;  %v9836_v24 = vld [vmem:[#allocation59_spill] sm:$0xff] }
 0x321   :  { %v5602_v25 = vmul.f32 -1.442695, %v1345_v19  ;;  %v1349_v23 = vpop.f32.mrb[15].mxu1  ;;  %v1390_v34 = vpop.f32.mrb[47].mxu0 }
 0x322   :  { %v5603_v30 = vmul.f32 -1.442695, %v1347_v22  ;;  %v5604_v32 = vmul.f32 -1.442695, %v1388_v0  ;;  %v9835_v22 = vld [vmem:[#allocation44_spill] sm:$0xff] }
 0x323   :  { %6469 = vpow2.f32 %v5602_v25 }
 0x324   :  { %6471 = vpow2.f32 %v5603_v30 }
 0x325   :  { %6473 = vpow2.f32 %v5604_v32  ;;  %v9837_v32 = vld [vmem:[#allocation46_spill] sm:$0xff] }
 0x326   :  { %6475 = vtanh.f32 %v1386_v20 }
 0x32d   :  { %v6470_v27 = vpop.eup %6469 }
 0x32e   :  { %v6472_v43 = vpop.eup %6471  ;;  %v1482_v41 = vadd.f32 1.0, %v6470_v27 }
 0x32f   :  { %v1488_v16 = vadd.f32 1.0, %v6472_v43  ;;  %v6474_v28 = vpop.eup %6473 }
 0x330   :  { %6477 = vrcp.f32 %v1482_v41  ;;  %v6476_v2 = vpop.eup %6475  ;;  %v1495_v19 = vadd.f32 1.0, %v6474_v28 }
 0x331   :  { %6479 = vrcp.f32 %v1488_v16 }
 0x332   :  { %6481 = vrcp.f32 %v1495_v19 }
 0x33a   :  { %v6478_v17 = vpop.eup %6477 }
 0x33b   :  { %v6480_v4 = vpop.eup %6479  ;;  %v1499_v15 = vmul.f32 %v6478_v17, %v6476_v2 }
 0x33c   :  { %v1498_v34 = vmul.f32 %v6480_v4, %v7519_v6 }
 0x33e   :  { %v7613_v23 = vadd.f32 %v1499_v15, %v1498_v34  ;;  %v1431_v25 = vpop.f32.mrb[16].mxu1  ;;  %v1472_v0 = vpop.f32.mrb[48].mxu0 }
 0x33f   :  { %v1432_v27 = vadd.f32 %v1431_v25, %v9835_v22  ;;  %v1473_v20 = vadd.f32 %v1472_v0, %v9836_v24  ;;  %v1433_v43 = vpop.f32.mrb[17].mxu1  ;;  %v1474_v30 = vpop.f32.mrb[49].mxu0 }
 0x340   :  { %6483 = vtanh.f32 %v7613_v23  ;;  %v1434_v36 = vadd.f32 %v1433_v43, %v9837_v32  ;;  %v1475_v41 = vadd.f32 %v1474_v30, %v9838_v5  ;;  %v1435_v16 = vpop.f32.mrb[18].mxu1  ;;  %v1476_v28 = vpop.f32.mrb[50].mxu0  ;;  %v7634_v32 = vld [vmem:[%s9617_s7 + $0x24] ss:$16 sps:$4 sm:$0xff]  }
 0x341   :  { %v5605_v6 = vmul.f32 -1.442695, %v1432_v27  ;;  %v1436_v2 = vpop.f32.mrb[19].mxu1  ;;  %v1477_v17 = vpop.f32.mrb[51].mxu0  ;;  %v7627_v27 = vld [vmem:[%s9617_s7] ss:$16 sps:$4 sm:$0xff]  }
 0x342   :  { %v5606_v4 = vmul.f32 -1.442695, %v1434_v36  ;;  %v6482_v15 = vpop.eup %6481  ;;  %v5607_v34 = vmul.f32 -1.442695, %v1475_v41  ;;  %v7650_v36 = vld [vmem:[%s9617_s7 + $0x44] ss:$16 sps:$4 sm:$0xff]  }
 0x343   :  { %6485 = vpow2.f32 %v5605_v6  ;;  %v7657_v41 = vld [vmem:[%s9617_s7 + $0x40] ss:$16 sps:$4 sm:$0xff]   ;;  %v7664_v28 = vld [vmem:[%s9617_s7 + $0x64] ss:$16 sps:$4 sm:$0xff]  }
 0x344   :  { %6487 = vpow2.f32 %v5606_v4 }
 0x345   :  { %6489 = vpow2.f32 %v5607_v34 }
 0x346   :  { %6491 = vtanh.f32 %v1473_v20  ;;  %v7643_v20 = vld [vmem:[%s9617_s7 + $0x20] ss:$16 sps:$4 sm:$0xff]  }
 0x34a   :  { %v6484_v19 = vpop.eup %6483 }
 0x34b   :  { %v7620_v25 = vmul.f32 %v6484_v19, %v6482_v15  ;;  %v7672_v19 = vld [vmem:[%s9617_s7 + $0x60] ss:$16 sps:$4 sm:$0xff]  }
 0x34d   :  { %v6486_v0 = vpop.eup %6485  ;;  %v1529_v22 = vpack.c.bf16 %v7620_v25, %v7620_v25 }
 0x34e   :  { %v6488_v24 = vpop.eup %6487  ;;  %v1506_v43 = vadd.f32 1.0, %v6486_v0 }
 0x34f   :  { %v1512_v30 = vadd.f32 1.0, %v6488_v24  ;;  %1567 = vmatmul.mubr.bf16.vlgmr.msra.gmra.mrb[20].mxu1 %v1529_v22  ;;  %1608 = vmatmul.mubr.bf16.vlgmr.msra.gmra.mrb[52].mxu0 %v1529_v22  ;;  %v6490_v5 = vpop.eup %6489 }
 0x350   :  { %6493 = vrcp.f32 %v1506_v43  ;;  %1622 = vmatpush1.bf16.msra.mxu1 %v7627_v27  ;;  %1663 = vmatpush1.bf16.msra.mxu0 %v7303_v35  ;;  %v6492_v16 = vpop.eup %6491  ;;  %v1519_v4 = vadd.f32 1.0, %v6490_v5 }
 0x351   :  { %6495 = vrcp.f32 %v1512_v30  ;;  %1623 = vmatprep.subr.bf16.mxu1 %v7634_v32  ;;  %1664 = vmatprep.subr.bf16.mxu0 %v7309_v37 }
 0x352   :  { %1653 = vmatprep.mubr.bf16.mxu1 %v9799_v21  ;;  %1694 = vmatprep.mubr.bf16.mxu0 %v9799_v21  ;;  %6497 = vrcp.f32 %v1519_v4 }
 0x354   :  { %1624 = vmatpush1.bf16.msra.mxu1 %v7643_v20  ;;  %1665 = vmatpush1.bf16.msra.mxu0 %v7316_v39 }
 0x355   :  { %1625 = vmatprep.subr.bf16.mxu1 %v7650_v36  ;;  %1666 = vmatprep.subr.bf16.mxu0 %v7323_v40 }
 0x358   :  { %1626 = vmatpush1.bf16.msra.mxu1 %v7657_v41  ;;  %1667 = vmatpush1.bf16.msra.mxu0 %v7329_v42 }
 0x359   :  { %1627 = vmatprep.subr.bf16.mxu1 %v7664_v28  ;;  %1668 = vmatprep.subr.bf16.mxu0 %v7335_v45 }
 0x35a   :  { %v6494_v6 = vpop.eup %6493 }
 0x35b   :  { %v6496_v2 = vpop.eup %6495  ;;  %v1523_v17 = vmul.f32 %v6494_v6, %v6492_v16 }
 0x35c   :  { %v1522_v15 = vmul.f32 %v6496_v2, %v7544_v26  ;;  %1628 = vmatpush1.bf16.msra.mxu1 %v7672_v19  ;;  %1669 = vmatpush1.bf16.msra.mxu0 %v7341_v47  ;;  %v9854_v26 = vld [vmem:[#allocation5_spill] sm:$0xff] }
 0x35d   :  { %1629 = vmatprep.subr.bf16.mxu1 %v7004_v38  ;;  %1670 = vmatprep.subr.bf16.mxu0 %v7347_v48  ;;  %v6498_v38 = vpop.eup %6497 }
 0x35e   :  { %v7678_v34 = vadd.f32 %v1523_v17, %v1522_v15 }
 0x360   :  { %6499 = vtanh.f32 %v7678_v34  ;;  %1630 = vmatpush1.bf16.msra.mxu1 %v7018_v44  ;;  %1671 = vmatpush1.bf16.msra.mxu0 %v7353_v49  ;;  %v9847_v49 = vld [vmem:[#allocation29_spill] sm:$0xff] }
 0x361   :  { %1631 = vmatprep.subr.bf16.mxu1 %v7024_v46  ;;  %1672 = vmatprep.subr.bf16.mxu0 %v7359_v51  ;;  %v9848_v51 = vld [vmem:[#allocation16_spill] sm:$0xff] }
 0x364   :  { %1632 = vmatpush1.bf16.msra.mxu1 %v7038_v50  ;;  %1673 = vmatpush1.bf16.msra.mxu0 %v7365_v53  ;;  %v9849_v53 = vld [vmem:[#allocation30_spill] sm:$0xff] }
 0x365   :  { %1633 = vmatprep.subr.bf16.mxu1 %v7044_v52  ;;  %1674 = vmatprep.subr.bf16.mxu0 %v7371_v54  ;;  %v9839_v52 = vld [vmem:[#allocation25_spill] sm:$0xff] }
 0x366   :  { %v9850_v54 = vld [vmem:[#allocation17_spill] sm:$0xff] }
 0x368   :  { %1634 = vmatpush1.bf16.msra.mxu1 %v7057_v56  ;;  %1675 = vmatpush1.bf16.msra.mxu0 %v7377_v55  ;;  %v9840_v56 = vld [vmem:[#allocation12_spill] sm:$0xff]  ;;  %v9851_v55 = vld [vmem:[#allocation31_spill] sm:$0xff] }
 0x369   :  { %1635 = vmatprep.subr.bf16.mxu1 %v7063_v58  ;;  %1676 = vmatprep.subr.bf16.mxu0 %v7383_v57  ;;  %v9841_v58 = vld [vmem:[#allocation26_spill] sm:$0xff] }
 0x36a   :  { %v6500_v44 = vpop.eup %6499  ;;  %v9852_v57 = vld [vmem:[#allocation18_spill] sm:$0xff] }
 0x36b   :  { %v7693_v46 = vmul.f32 %v6500_v44, %v6498_v38 }
 0x36c   :  { %1636 = vmatpush1.bf16.msra.mxu1 %v7071_v60  ;;  %1677 = vmatpush1.bf16.msra.mxu0 %v7389_v59  ;;  %v9842_v60 = vld [vmem:[#allocation13_spill] sm:$0xff]  ;;  %v9853_v59 = vld [vmem:[#allocation32_spill] sm:$0xff] }
 0x36d   :  { %v1616_v50 = vpack.c.bf16 %v7693_v46, %v7693_v46  ;;  %1758 = vmatprep.subr.bf16.mxu1 %v7077_v61  ;;  %1799 = vmatprep.subr.bf16.mxu0 %v7195_v13  ;;  %v9843_v61 = vld [vmem:[#allocation27_spill] sm:$0xff]  ;;  %v9845_v13 = vld [vmem:[#allocation28_spill] sm:$0xff] }
 0x36f   :  { %1654 = vmatmul.mubr.bf16.vlgmr.msra.gmra.mrb[24].mxu1 %v1616_v50  ;;  %1695 = vmatmul.mubr.bf16.vlgmr.msra.gmra.mrb[56].mxu0 %v1616_v50 }
 0x370   :  { %1759 = vmatpush1.bf16.msra.mxu1 %v7084_v62  ;;  %1800 = vmatpush1.bf16.msra.mxu0 %v7203_v14  ;;  %v9844_v62 = vld [vmem:[#allocation14_spill] sm:$0xff]  ;;  %v9846_v14 = vld [vmem:[#allocation15_spill] sm:$0xff] }
 0x371   :  { %1760 = vmatprep.subr.bf16.mxu1 %v9801_v1  ;;  %1801 = vmatprep.subr.bf16.mxu0 %v9802_v10  ;;  %v9855_v1 = vld [vmem:[#allocation33_spill] sm:$0xff] }
 0x372   :  { %1790 = vmatprep.mubr.bf16.mxu1 %v9799_v21  ;;  %1831 = vmatprep.mubr.bf16.mxu0 %v9799_v21 }
 0x374   :  { %1761 = vmatpush1.bf16.msra.mxu1 %v9803_v9  ;;  %1802 = vmatpush1.bf16.msra.mxu0 %v9804_v8  ;;  %v9856_v8 = vld [vmem:[#allocation43_spill] sm:$0xff] }
 0x375   :  { %1762 = vmatprep.subr.bf16.mxu1 %v9805_v33  ;;  %1803 = vmatprep.subr.bf16.mxu0 %v9806_v12  ;;  %v9857_v12 = vld [vmem:[#allocation51_spill] sm:$0xff] }
 0x378   :  { %1763 = vmatpush1.bf16.msra.mxu1 %v9807_v63  ;;  %1804 = vmatpush1.bf16.msra.mxu0 %v9808_v11 }
 0x379   :  { %1764 = vmatprep.subr.bf16.mxu1 %v9809_v3  ;;  %1805 = vmatprep.subr.bf16.mxu0 %v9810_v18  ;;  %v9858_v18 = vld [vmem:[#allocation45_spill] sm:$0xff] }
 0x37c   :  { %1765 = vmatpush1.bf16.msra.mxu1 %v9811_v29  ;;  %1806 = vmatpush1.bf16.msra.mxu0 %v9812_v31  ;;  %v9859_v31 = vld [vmem:[#allocation52_spill] sm:$0xff] }
 0x37d   :  { %1766 = vmatprep.subr.bf16.mxu1 %v9813_v7  ;;  %1807 = vmatprep.subr.bf16.mxu0 %v9839_v52 }
 0x380   :  { %1767 = vmatpush1.bf16.msra.mxu1 %v9840_v56  ;;  %1808 = vmatpush1.bf16.msra.mxu0 %v9841_v58 }
 0x381   :  { %1768 = vmatprep.subr.bf16.mxu1 %v9842_v60  ;;  %1809 = vmatprep.subr.bf16.mxu0 %v9843_v61 }
 0x384   :  { %1769 = vmatpush1.bf16.msra.mxu1 %v9844_v62  ;;  %1810 = vmatpush1.bf16.msra.mxu0 %v9845_v13  ;;  %v9860_v13 = vld [vmem:[#allocation40_spill] sm:$0xff] }
 0x385   :  { %1770 = vmatprep.subr.bf16.mxu1 %v9846_v14  ;;  %1811 = vmatprep.subr.bf16.mxu0 %v9847_v49  ;;  %v9861_v49 = vld [vmem:[#allocation57_spill] sm:$0xff] }
 0x388   :  { %1771 = vmatpush1.bf16.msra.mxu1 %v9848_v51  ;;  %1812 = vmatpush1.bf16.msra.mxu0 %v9849_v53 }
 0x389   :  { %1772 = vmatprep.subr.bf16.mxu1 %v9850_v54  ;;  %1813 = vmatprep.subr.bf16.mxu0 %v9851_v55  ;;  %v9862_v55 = vld [vmem:[#allocation42_spill] sm:$0xff] }
 0x38c   :  { %1773 = vmatpush1.bf16.msra.mxu1 %v9852_v57  ;;  %1814 = vmatpush1.bf16.msra.mxu0 %v9853_v59  ;;  %v9863_v59 = vld [vmem:[#allocation58_spill] sm:$0xff] }
 0x38d   :  { %1845 = vmatprep.subr.bf16.mxu1 %v9854_v26  ;;  %1886 = vmatprep.subr.bf16.mxu0 %v9855_v1 }
 0x422   :  { %v1568_v10 = vpop.f32.mrb[20].mxu1  ;;  %v1609_v9 = vpop.f32.mrb[52].mxu0 }
 0x423   :  { %v1569_v33 = vadd.f32 %v1568_v10, %v9856_v8  ;;  %v1610_v63 = vadd.f32 %v1609_v9, %v9857_v12  ;;  %v1570_v11 = vpop.f32.mrb[21].mxu1  ;;  %v1611_v3 = vpop.f32.mrb[53].mxu0 }
 0x424   :  { %v1571_v29 = vadd.f32 %v1570_v11, %v9858_v18  ;;  %v1612_v7 = vadd.f32 %v1611_v3, %v9859_v31  ;;  %v1572_v0 = vpop.f32.mrb[22].mxu1  ;;  %v1613_v22 = vpop.f32.mrb[54].mxu0 }
 0x425   :  { %v5608_v24 = vmul.f32 -1.442695, %v1569_v33  ;;  %v1573_v43 = vpop.f32.mrb[23].mxu1  ;;  %v1614_v30 = vpop.f32.mrb[55].mxu0 }
 0x426   :  { %v5609_v5 = vmul.f32 -1.442695, %v1571_v29  ;;  %v5610_v16 = vmul.f32 -1.442695, %v1612_v7  ;;  %v6711_v43 = vld [vmem:[%s9617_s7 + $0xc8] ss:$16 sps:$4 sm:$0xff]  }
 0x427   :  { %6501 = vpow2.f32 %v5608_v24  ;;  %v6710_v24 = vld [vmem:[%s9617_s7 + $0xc0] ss:$16 sps:$4 sm:$0xff]  }
 0x428   :  { %6503 = vpow2.f32 %v5609_v5  ;;  %v6712_v5 = vld [vmem:[%s9617_s7 + $0xe4] ss:$16 sps:$4 sm:$0xff]  }
 0x429   :  { %6505 = vpow2.f32 %v5610_v16  ;;  %v6713_v16 = vld [vmem:[%s9617_s7 + $0xec] ss:$16 sps:$4 sm:$0xff]  }
 0x42a   :  { %6507 = vtanh.f32 %v1610_v63 }
 0x431   :  { %v6502_v6 = vpop.eup %6501 }
 0x432   :  { %v6504_v2 = vpop.eup %6503  ;;  %v1706_v17 = vadd.f32 1.0, %v6502_v6 }
 0x433   :  { %v1712_v4 = vadd.f32 1.0, %v6504_v2  ;;  %v6506_v15 = vpop.eup %6505 }
 0x434   :  { %6509 = vrcp.f32 %v1706_v17  ;;  %v6508_v38 = vpop.eup %6507  ;;  %v1719_v56 = vadd.f32 1.0, %v6506_v15  ;;  %v6714_v17 = vld [vmem:[%s9617_s7 + $0xe0] ss:$16 sps:$4 sm:$0xff]  }
 0x435   :  { %6511 = vrcp.f32 %v1712_v4  ;;  %v6715_v4 = vld [vmem:[%s9617_s7 + $0xe8] ss:$16 sps:$4 sm:$0xff]  }
 0x436   :  { %6513 = vrcp.f32 %v1719_v56  ;;  %v1995_v56 = vld [vmem:[%s9622_s8 + $0x30] sm:$0xff] }
 0x43e   :  { %v6510_v44 = vpop.eup %6509 }
 0x43f   :  { %v6512_v50 = vpop.eup %6511  ;;  %v1723_v52 = vmul.f32 %v6510_v44, %v6508_v38  ;;  %v1989_v38 = vld [vmem:[%s9622_s8] sm:$0xff] }
 0x440   :  { %v1722_v58 = vmul.f32 %v6512_v50, %v7613_v23  ;;  %v6514_v12 = vpop.eup %6513  ;;  %v1993_v44 = vld [vmem:[%s9622_s8 + $0x20] sm:$0xff]  ;;  %v1991_v50 = vld [vmem:[%s9622_s8 + $0x10] sm:$0xff] }
 0x442   :  { %v7740_v60 = vadd.f32 %v1723_v52, %v1722_v58  ;;  %v1655_v61 = vpop.f32.mrb[24].mxu1  ;;  %v1696_v62 = vpop.f32.mrb[56].mxu0  ;;  %v5621_v52 = vcombine.high %v1989_v38, %v1993_v44  ;;  %v5620_v58 = vcombine.low %v1989_v38, %v1993_v44  ;;  %v2049_v38 = vld [vmem:[%s9622_s8 + $0x1e0] sm:$0xff]  ;;  %v2047_v44 = vld [vmem:[%s9622_s8 + $0x1d0] sm:$0xff] }
 0x443   :  { %v1656_v14 = vadd.f32 %v1655_v61, %v9860_v13  ;;  %v1697_v51 = vadd.f32 %v1696_v62, %v9861_v49  ;;  %v1657_v53 = vpop.f32.mrb[25].mxu1  ;;  %v1698_v54 = vpop.f32.mrb[57].mxu0  ;;  %v5624_v61 = vcombine.low %v1991_v50, %v1995_v56  ;;  %v5625_v62 = vcombine.high %v1991_v50, %v1995_v56  ;;  %v1997_v13 = vld [vmem:[%s9622_s8 + $0x40] sm:$0xff]  ;;  %v1999_v49 = vld [vmem:[%s9622_s8 + $0x50] sm:$0xff] }
 0x444   :  { %6515 = vtanh.f32 %v7740_v60  ;;  %v1658_v57 = vadd.f32 %v1657_v53, %v9862_v55  ;;  %v1699_v26 = vadd.f32 %v1698_v54, %v9863_v59  ;;  %v1659_v1 = vpop.f32.mrb[26].mxu1  ;;  %v1700_v10 = vpop.f32.mrb[58].mxu0  ;;  %v2003_v53 = vld [vmem:[%s9622_s8 + $0x70] sm:$0xff]  ;;  %v2005_v59 = vld [vmem:[%s9622_s8 + $0x80] sm:$0xff] }
 0x445   :  { %v5611_v23 = vmul.f32 -1.442695, %v1656_v14  ;;  %v1660_v9 = vpop.f32.mrb[27].mxu1  ;;  %v1701_v8 = vpop.f32.mrb[59].mxu0  ;;  %v2001_v14 = vld [vmem:[%s9622_s8 + $0x60] sm:$0xff]  ;;  %v5632_v55 = vcombine.low %v1999_v49, %v2003_v53  ;;  %v2007_v1 = vld [vmem:[%s9622_s8 + $0x90] sm:$0xff] }
 0x446   :  { %v5612_v33 = vmul.f32 -1.442695, %v1658_v57  ;;  %v5613_v11 = vmul.f32 -1.442695, %v1699_v26  ;;  %v5628_v54 = vcombine.low %v1997_v13, %v2001_v14  ;;  %v5633_v57 = vcombine.high %v1999_v49, %v2003_v53  ;;  %v2009_v26 = vld [vmem:[%s9622_s8 + $0xa0] sm:$0xff] }
 0x447   :  { %6517 = vpow2.f32 %v5611_v23  ;;  %v5637_v10 = vcombine.high %v2005_v59, %v2009_v26  ;;  %v2011_v23 = vld [vmem:[%s9622_s8 + $0xb0] sm:$0xff]  ;;  %v5636_v9 = vcombine.low %v2005_v59, %v2009_v26  ;;  %v2065_v59 = vld [vmem:[%s9622_s8 + $0x260] sm:$0xff] }
 0x448   :  { %6519 = vpow2.f32 %v5612_v33  ;;  %v5640_v8 = vcombine.low %v2007_v1, %v2011_v23  ;;  %v5641_v33 = vcombine.high %v2007_v1, %v2011_v23  ;;  %v2063_v26 = vld [vmem:[%s9622_s8 + $0x250] sm:$0xff] }
 0x449   :  { %6521 = vpow2.f32 %v5613_v11  ;;  %v2015_v11 = vld [vmem:[%s9622_s8 + $0xd0] sm:$0xff] }
 0x44a   :  { %6523 = vtanh.f32 %v1697_v51  ;;  %v5629_v51 = vcombine.high %v1997_v13, %v2001_v14  ;;  %v2057_v13 = vld [vmem:[%s9622_s8 + $0x220] sm:$0xff]  ;;  %v2055_v14 = vld [vmem:[%s9622_s8 + $0x210] sm:$0xff] }
 0x44e   :  { %v6516_v63 = vpop.eup %6515 }
 0x44f   :  { %v7747_v3 = vmul.f32 %v6516_v63, %v6514_v12  ;;  %v2013_v12 = vld [vmem:[%s9622_s8 + $0xc0] sm:$0xff] }
 0x450   :  { %v2017_v63 = vld [vmem:[%s9622_s8 + $0xe0] sm:$0xff] }
 0x451   :  { %v6518_v18 = vpop.eup %6517  ;;  %v1753_v29 = vpack.c.bf16 %v7747_v3, %v7747_v3 }
 0x452   :  { %v6520_v31 = vpop.eup %6519  ;;  %v1730_v7 = vadd.f32 1.0, %v6518_v18  ;;  %v5645_v18 = vcombine.high %v2013_v12, %v2017_v63 }
 0x453   :  { %v1736_v0 = vadd.f32 1.0, %v6520_v31  ;;  %1791 = vmatmul.mubr.bf16.vlgmr.msra.gmra.mrb[28].mxu1 %v1753_v29  ;;  %1832 = vmatmul.mubr.bf16.vlgmr.msra.gmra.mrb[60].mxu0 %v1753_v29  ;;  %v2019_v29 = vld [vmem:[%s9622_s8 + $0xf0] sm:$0xff]  ;;  %v5644_v31 = vcombine.low %v2013_v12, %v2017_v63  ;;  %v2073_v12 = vld [vmem:[%s9622_s8 + $0x2a0] sm:$0xff] }
 0x454   :  { %6525 = vrcp.f32 %v1730_v7  ;;  %1846 = vmatpush1.bf16.msra.mxu1 %v7627_v27  ;;  %1887 = vmatpush1.bf16.msra.mxu0 %v7303_v35  ;;  %v6522_v27 = vpop.eup %6521  ;;  %v5648_v7 = vcombine.low %v2015_v11, %v2019_v29  ;;  %v2071_v63 = vld [vmem:[%s9622_s8 + $0x290] sm:$0xff] }
 0x455   :  { %6527 = vrcp.f32 %v1736_v0  ;;  %1847 = vmatprep.subr.bf16.mxu1 %v7634_v32  ;;  %1888 = vmatprep.subr.bf16.mxu0 %v7309_v37  ;;  %v6524_v35 = vpop.eup %6523  ;;  %v5649_v0 = vcombine.high %v2015_v11, %v2019_v29 }
 0x456   :  { %1877 = vmatprep.mubr.bf16.mxu1 %v9799_v21  ;;  %1918 = vmatprep.mubr.bf16.mxu0 %v9799_v21 }
 0x458   :  { %1848 = vmatpush1.bf16.msra.mxu1 %v7643_v20  ;;  %1889 = vmatpush1.bf16.msra.mxu0 %v7316_v39  ;;  %v1743_v20 = vadd.f32 1.0, %v6522_v27  ;;  %v2021_v27 = vld [vmem:[%s9622_s8 + $0x100] sm:$0xff] }
 0x459   :  { %1849 = vmatprep.subr.bf16.mxu1 %v7650_v36  ;;  %1890 = vmatprep.subr.bf16.mxu0 %v7323_v40  ;;  %v6701_v40 = vld [vmem:[%s9617_s7 + $0x84] ss:$16 sps:$4 sm:$0xff]  }
 0x45a   :  { %6529 = vrcp.f32 %v1743_v20  ;;  %v6704_v36 = vld [vmem:[%s9617_s7 + $0xa4] ss:$16 sps:$4 sm:$0xff]  }
 0x45c   :  { %1850 = vmatpush1.bf16.msra.mxu1 %v7657_v41  ;;  %1891 = vmatpush1.bf16.msra.mxu0 %v7329_v42  ;;  %v6706_v41 = vld [vmem:[%s9617_s7 + $0xa0] ss:$16 sps:$4 sm:$0xff]  }
 0x45d   :  { %1851 = vmatprep.subr.bf16.mxu1 %v7664_v28  ;;  %1892 = vmatprep.subr.bf16.mxu0 %v7335_v45  ;;  %v6702_v45 = vld [vmem:[%s9617_s7 + $0x80] ss:$16 sps:$4 sm:$0xff]   ;;  %v6707_v28 = vld [vmem:[%s9617_s7 + $0xa8] ss:$16 sps:$4 sm:$0xff]  }
 0x45e   :  { %v6526_v37 = vpop.eup %6525 }
 0x45f   :  { %v6528_v32 = vpop.eup %6527  ;;  %v1747_v22 = vmul.f32 %v6526_v37, %v6524_v35  ;;  %v2025_v35 = vld [vmem:[%s9622_s8 + $0x120] sm:$0xff]  ;;  %v2023_v37 = vld [vmem:[%s9622_s8 + $0x110] sm:$0xff] }
 0x460   :  { %v1746_v39 = vmul.f32 %v6528_v32, %v7678_v34  ;;  %1852 = vmatpush1.bf16.msra.mxu1 %v7672_v19  ;;  %1893 = vmatpush1.bf16.msra.mxu0 %v7341_v47  ;;  %v6703_v47 = vld [vmem:[%s9617_s7 + $0x88] ss:$16 sps:$4 sm:$0xff]   ;;  %v6708_v19 = vld [vmem:[%s9617_s7 + $0xc4] ss:$16 sps:$4 sm:$0xff]   ;;  %v6709_v34 = vld [vmem:[%s9617_s7 + $0xcc] ss:$16 sps:$4 sm:$0xff]   ;;  %v5653_v32 = vcombine.high %v2021_v27, %v2025_v35  ;;  %v5652_v20 = vcombine.low %v2021_v27, %v2025_v35 }
 0x461   :  { %1853 = vmatprep.subr.bf16.mxu1 %v6701_v40  ;;  %1894 = vmatprep.subr.bf16.mxu0 %v7347_v48  ;;  %v6705_v48 = vld [vmem:[%s9617_s7 + $0xac] ss:$16 sps:$4 sm:$0xff]   ;;  %v2081_v27 = vld [vmem:[%s9622_s8 + $0x2e0] sm:$0xff]  ;;  %v2079_v35 = vld [vmem:[%s9622_s8 + $0x2d0] sm:$0xff] }
 0x462   :  { %v7772_v42 = vadd.f32 %v1747_v22, %v1746_v39  ;;  %v2027_v22 = vld [vmem:[%s9622_s8 + $0x130] sm:$0xff] }
 0x463   :  { %v5656_v39 = vcombine.low %v2023_v37, %v2027_v22  ;;  %v5657_v40 = vcombine.high %v2023_v37, %v2027_v22 }
 0x464   :  { %6531 = vtanh.f32 %v7772_v42  ;;  %1854 = vmatpush1.bf16.msra.mxu1 %v6702_v45  ;;  %1895 = vmatpush1.bf16.msra.mxu0 %v6703_v47  ;;  %v6530_v30 = vpop.eup %6529  ;;  %v2029_v45 = vld [vmem:[%s9622_s8 + $0x140] sm:$0xff] }
 0x465   :  { %1855 = vmatprep.subr.bf16.mxu1 %v6704_v36  ;;  %1896 = vmatprep.subr.bf16.mxu0 %v6705_v48  ;;  %v2033_v47 = vld [vmem:[%s9622_s8 + $0x160] sm:$0xff]  ;;  %v2031_v36 = vld [vmem:[%s9622_s8 + $0x150] sm:$0xff] }
 0x466   :  { %v5661_v48 = vcombine.high %v2029_v45, %v2033_v47 }
 0x468   :  { %1856 = vmatpush1.bf16.msra.mxu1 %v6706_v41  ;;  %1897 = vmatpush1.bf16.msra.mxu0 %v6707_v28  ;;  %v2035_v41 = vld [vmem:[%s9622_s8 + $0x170] sm:$0xff]  ;;  %v5660_v28 = vcombine.low %v2029_v45, %v2033_v47  ;;  %v2089_v45 = vld [vmem:[%s9622_s8 + $0x320] sm:$0xff] }
 0x469   :  { %1857 = vmatprep.subr.bf16.mxu1 %v6708_v19  ;;  %1898 = vmatprep.subr.bf16.mxu0 %v6709_v34  ;;  %v5664_v19 = vcombine.low %v2031_v36, %v2035_v41  ;;  %v5665_v34 = vcombine.high %v2031_v36, %v2035_v41  ;;  %v2087_v47 = vld [vmem:[%s9622_s8 + $0x310] sm:$0xff] }
 0x46c   :  { %1858 = vmatpush1.bf16.msra.mxu1 %v6710_v24  ;;  %1899 = vmatpush1.bf16.msra.mxu0 %v6711_v43  ;;  %v2037_v24 = vld [vmem:[%s9622_s8 + $0x180] sm:$0xff] }
 0x46d   :  { %1859 = vmatprep.subr.bf16.mxu1 %v6712_v5  ;;  %1900 = vmatprep.subr.bf16.mxu0 %v6713_v16  ;;  %v2041_v43 = vld [vmem:[%s9622_s8 + $0x1a0] sm:$0xff]  ;;  %v2043_v16 = vld [vmem:[%s9622_s8 + $0x1b0] sm:$0xff] }
 0x46e   :  { %v6532_v6 = vpop.eup %6531  ;;  %v5669_v5 = vcombine.high %v2037_v24, %v2041_v43 }
 0x46f   :  { %v7811_v2 = vmul.f32 %v6532_v6, %v6530_v30  ;;  %v2039_v30 = vld [vmem:[%s9622_s8 + $0x190] sm:$0xff]  ;;  %v5668_v6 = vcombine.low %v2037_v24, %v2041_v43  ;;  %v2097_v24 = vld [vmem:[%s9622_s8 + $0x360] sm:$0xff] }
 0x470   :  { %1860 = vmatpush1.bf16.msra.mxu1 %v6714_v17  ;;  %1901 = vmatpush1.bf16.msra.mxu0 %v6715_v4  ;;  %v5672_v17 = vcombine.low %v2039_v30, %v2043_v16  ;;  %v5673_v4 = vcombine.high %v2039_v30, %v2043_v16  ;;  %v2095_v43 = vld [vmem:[%s9622_s8 + $0x350] sm:$0xff] }
 0x471   :  { %v1840_v15 = vpack.c.bf16 %v7811_v2, %v7811_v2  ;;  %2799 = vmatprep.subr.bf16.mxu0 %v5621_v52  ;;  %2905 = vmatprep.subr.bf16.mxu1 %v5625_v62  ;;  %v2051_v52 = vld [vmem:[%s9622_s8 + $0x1f0] sm:$0xff]  ;;  %v2053_v62 = vld [vmem:[%s9622_s8 + $0x200] sm:$0xff] }
 0x472   :  { %v5685_v49 = vcombine.high %v2053_v62, %v2057_v13  ;;  %v5684_v53 = vcombine.low %v2053_v62, %v2057_v13  ;;  %v2099_v16 = vld [vmem:[%s9622_s8 + $0x370] sm:$0xff] }
 0x473   :  { %1878 = vmatmul.mubr.bf16.vlgmr.msra.gmra.mrb[32].mxu1 %v1840_v15  ;;  %1919 = vmatmul.mubr.bf16.vlgmr.msra.gmra.mrb[64].mxu0 %v1840_v15  ;;  %v2045_v15 = vld [vmem:[%s9622_s8 + $0x1c0] sm:$0xff]  ;;  %v2115_v62 = vld [vmem:[%s9622_s8 + $0x3f0] sm:$0xff] }
 0x474   :  { %2800 = vmatpush1.bf16.msra.mxu0 %v5620_v58  ;;  %2906 = vmatpush1.bf16.msra.mxu1 %v5624_v61  ;;  %v5677_v50 = vcombine.high %v2045_v15, %v2049_v38  ;;  %v5676_v56 = vcombine.low %v2045_v15, %v2049_v38  ;;  %v5680_v58 = vcombine.low %v2047_v44, %v2051_v52 }
 0x475   :  { %2801 = vmatprep.subr.bf16.mxu0 %v5629_v51  ;;  %2907 = vmatprep.subr.bf16.mxu1 %v5633_v57  ;;  %v5681_v61 = vcombine.high %v2047_v44, %v2051_v52  ;;  %v2059_v51 = vld [vmem:[%s9622_s8 + $0x230] sm:$0xff]  ;;  %v2061_v57 = vld [vmem:[%s9622_s8 + $0x240] sm:$0xff]  ;;  %v5729_v15 = vcombine.high %v2095_v43, %v2099_v16 }
 0x476   :  { %v5693_v1 = vcombine.high %v2061_v57, %v2065_v59  ;;  %v5692_v23 = vcombine.low %v2061_v57, %v2065_v59  ;;  %v2103_v44 = vld [vmem:[%s9622_s8 + $0x390] sm:$0xff]  ;;  %v8021_v57 = vld [vmem:[%s9622_s8 + $0x28] sm:$0xff] }
 0x478   :  { %2802 = vmatpush1.bf16.msra.mxu0 %v5628_v54  ;;  %2908 = vmatpush1.bf16.msra.mxu1 %v5632_v55  ;;  %v5688_v54 = vcombine.low %v2055_v14, %v2059_v51  ;;  %v5689_v55 = vcombine.high %v2055_v14, %v2059_v51 }
 0x479   :  { %2803 = vmatprep.subr.bf16.mxu0 %v5637_v10  ;;  %2909 = vmatprep.subr.bf16.mxu1 %v5641_v33  ;;  %v2067_v10 = vld [vmem:[%s9622_s8 + $0x270] sm:$0xff]  ;;  %v2069_v33 = vld [vmem:[%s9622_s8 + $0x280] sm:$0xff] }
 0x47a   :  { %v5701_v11 = vcombine.high %v2069_v33, %v2073_v12  ;;  %v5700_v29 = vcombine.low %v2069_v33, %v2073_v12  ;;  %v9865_v33 = vld [vmem:[#allocation53_spill] sm:$0xff] }
 0x47c   :  { %2804 = vmatpush1.bf16.msra.mxu0 %v5636_v9  ;;  %2910 = vmatpush1.bf16.msra.mxu1 %v5640_v8  ;;  %v5696_v9 = vcombine.low %v2063_v26, %v2067_v10  ;;  %v5697_v8 = vcombine.high %v2063_v26, %v2067_v10  ;;  %v8028_v26 = vld [vmem:[%s9623_s10 + $0x4] ss:$16 sps:$4 sm:$0xff]  }
 0x47d   :  { %2805 = vmatprep.subr.bf16.mxu0 %v5645_v18  ;;  %2911 = vmatprep.subr.bf16.mxu1 %v5649_v0  ;;  %v2075_v18 = vld [vmem:[%s9622_s8 + $0x2b0] sm:$0xff]  ;;  %v2077_v0 = vld [vmem:[%s9622_s8 + $0x2c0] sm:$0xff] }
 0x47e   :  { %v5709_v37 = vcombine.high %v2077_v0, %v2081_v27  ;;  %v5708_v22 = vcombine.low %v2077_v0, %v2081_v27 }
 0x480   :  { %2806 = vmatpush1.bf16.msra.mxu0 %v5644_v31  ;;  %2912 = vmatpush1.bf16.msra.mxu1 %v5648_v7  ;;  %v5704_v31 = vcombine.low %v2071_v63, %v2075_v18  ;;  %v5705_v7 = vcombine.high %v2071_v63, %v2075_v18  ;;  %v9866_v18 = vld [vmem:[#allocation48_spill] sm:$0xff] }
 0x481   :  { %2807 = vmatprep.subr.bf16.mxu0 %v5653_v32  ;;  %2913 = vmatprep.subr.bf16.mxu1 %v5657_v40  ;;  %v2083_v32 = vld [vmem:[%s9622_s8 + $0x2f0] sm:$0xff]  ;;  %v2085_v40 = vld [vmem:[%s9622_s8 + $0x300] sm:$0xff] }
 0x482   :  { %v5717_v36 = vcombine.high %v2085_v40, %v2089_v45  ;;  %v5716_v41 = vcombine.low %v2085_v40, %v2089_v45 }
 0x484   :  { %2808 = vmatpush1.bf16.msra.mxu0 %v5652_v20  ;;  %2914 = vmatpush1.bf16.msra.mxu1 %v5656_v39  ;;  %v5712_v20 = vcombine.low %v2079_v35, %v2083_v32  ;;  %v5713_v39 = vcombine.high %v2079_v35, %v2083_v32 }
 0x485   :  { %2809 = vmatprep.subr.bf16.mxu0 %v5661_v48  ;;  %2915 = vmatprep.subr.bf16.mxu1 %v5665_v34  ;;  %v2091_v48 = vld [vmem:[%s9622_s8 + $0x330] sm:$0xff]  ;;  %v2093_v34 = vld [vmem:[%s9622_s8 + $0x340] sm:$0xff] }
 0x486   :  { %v5724_v30 = vcombine.low %v2093_v34, %v2097_v24 }
 0x488   :  { %2810 = vmatpush1.bf16.msra.mxu0 %v5660_v28  ;;  %2916 = vmatpush1.bf16.msra.mxu1 %v5664_v19  ;;  %v5720_v28 = vcombine.low %v2087_v47, %v2091_v48  ;;  %v5721_v19 = vcombine.high %v2087_v47, %v2091_v48 }
 0x489   :  { %2811 = vmatprep.subr.bf16.mxu0 %v5669_v5  ;;  %2917 = vmatprep.subr.bf16.mxu1 %v5673_v4  ;;  %v5725_v5 = vcombine.high %v2093_v34, %v2097_v24  ;;  %v5728_v4 = vcombine.low %v2095_v43, %v2099_v16  ;;  %v9868_v16 = vld [vmem:[#allocation37_spill] sm:$0xff] }
 0x48c   :  { %2812 = vmatpush1.bf16.msra.mxu0 %v5668_v6  ;;  %2918 = vmatpush1.bf16.msra.mxu1 %v5672_v17  ;;  %v2101_v6 = vld [vmem:[%s9622_s8 + $0x380] sm:$0xff] }
 0x48d   :  { %2813 = vmatprep.subr.bf16.mxu0 %v5677_v50  ;;  %2919 = vmatprep.subr.bf16.mxu1 %v5681_v61  ;;  %v2105_v17 = vld [vmem:[%s9622_s8 + $0x3a0] sm:$0xff]  ;;  %v2107_v50 = vld [vmem:[%s9622_s8 + $0x3b0] sm:$0xff] }
 0x48e   :  { %v5733_v38 = vcombine.high %v2101_v6, %v2105_v17  ;;  %v5737_v52 = vcombine.high %v2103_v44, %v2107_v50  ;;  %v2111_v61 = vld [vmem:[%s9622_s8 + $0x3d0] sm:$0xff]  ;;  %v5732_v13 = vcombine.low %v2101_v6, %v2105_v17  ;;  %v5736_v14 = vcombine.low %v2103_v44, %v2107_v50  ;;  %v9870_v44 = vld [vmem:[#allocation38_spill] sm:$0xff] }
 0x48f   :  { %v5745_v51 = vcombine.high %v2111_v61, %v2115_v62  ;;  %v9869_v17 = vld [vmem:[#allocation55_spill] sm:$0xff] }
 0x490   :  { %2814 = vmatpush1.bf16.msra.mxu0 %v5676_v56  ;;  %2920 = vmatpush1.bf16.msra.mxu1 %v5680_v58  ;;  %v2109_v56 = vld [vmem:[%s9622_s8 + $0x3c0] sm:$0xff] }
 0x491   :  { %2815 = vmatprep.subr.bf16.mxu0 %v5685_v49  ;;  %2921 = vmatprep.subr.bf16.mxu1 %v5689_v55  ;;  %v2113_v58 = vld [vmem:[%s9622_s8 + $0x3e0] sm:$0xff]  ;;  %v8016_v55 = vld [vmem:[%s9622_s8 + $0x8] sm:$0xff] }
 0x492   :  { %v5741_v49 = vcombine.high %v2109_v56, %v2113_v58  ;;  %v5623_v59 = vcombine.high %v8016_v55, %v8021_v57 }
 0x494   :  { %2816 = vmatpush1.bf16.msra.mxu0 %v5684_v53  ;;  %2922 = vmatpush1.bf16.msra.mxu1 %v5688_v54  ;;  %v5740_v53 = vcombine.low %v2109_v56, %v2113_v58  ;;  %v5744_v54 = vcombine.low %v2111_v61, %v2115_v62 }
 0x495   :  { %2817 = vmatprep.subr.bf16.mxu0 %v5693_v1  ;;  %2923 = vmatprep.subr.bf16.mxu1 %v5697_v8  ;;  %v5622_v1 = vcombine.low %v8016_v55, %v8021_v57  ;;  %v2014_v55 = vld [vmem:[%s9622_s8 + $0xc8] sm:$0xff] }
 0x496   :  { %v2018_v57 = vld [vmem:[%s9622_s8 + $0xe8] sm:$0xff] }
 0x498   :  { %2818 = vmatpush1.bf16.msra.mxu0 %v5692_v23  ;;  %2924 = vmatpush1.bf16.msra.mxu1 %v5696_v9  ;;  %v9864_v9 = vld [vmem:[#allocation47_spill] sm:$0xff] }
 0x499   :  { %2819 = vmatprep.subr.bf16.mxu0 %v5701_v11  ;;  %2925 = vmatprep.subr.bf16.mxu1 %v5705_v7 }
 0x49c   :  { %2820 = vmatpush1.bf16.msra.mxu0 %v5700_v29  ;;  %2926 = vmatpush1.bf16.msra.mxu1 %v5704_v31  ;;  %v9867_v31 = vld [vmem:[#allocation54_spill] sm:$0xff] }
 0x49d   :  { %2821 = vmatprep.subr.bf16.mxu0 %v5709_v37  ;;  %2927 = vmatprep.subr.bf16.mxu1 %v5713_v39 }
 0x4a0   :  { %2822 = vmatpush1.bf16.msra.mxu0 %v5708_v22  ;;  %2928 = vmatpush1.bf16.msra.mxu1 %v5712_v20 }
 0x4a1   :  { %2823 = vmatprep.subr.bf16.mxu0 %v5717_v36  ;;  %2929 = vmatprep.subr.bf16.mxu1 %v5721_v19 }
 0x4a4   :  { %2824 = vmatpush1.bf16.msra.mxu0 %v5716_v41  ;;  %2930 = vmatpush1.bf16.msra.mxu1 %v5720_v28 }
 0x4a5   :  { %2825 = vmatprep.subr.bf16.mxu0 %v5725_v5  ;;  %2931 = vmatprep.subr.bf16.mxu1 %v5729_v15 }
 0x4a8   :  { %2826 = vmatpush1.bf16.msra.mxu0 %v5724_v30  ;;  %2932 = vmatpush1.bf16.msra.mxu1 %v5728_v4 }
 0x4a9   :  { %2827 = vmatprep.subr.bf16.mxu0 %v5733_v38  ;;  %2933 = vmatprep.subr.bf16.mxu1 %v5737_v52  ;;  %v9871_v52 = vld [vmem:[#allocation56_spill] sm:$0xff] }
 0x4ac   :  { %2828 = vmatpush1.bf16.msra.mxu0 %v5732_v13  ;;  %2934 = vmatpush1.bf16.msra.mxu1 %v5736_v14 }
 0x4ad   :  { %2829 = vmatprep.subr.bf16.mxu0 %v5741_v49  ;;  %2935 = vmatprep.subr.bf16.mxu1 %v5745_v51 }
 0x4b0   :  { %2830 = vmatpush1.bf16.msra.mxu0 %v5740_v53  ;;  %2936 = vmatpush1.bf16.msra.mxu1 %v5744_v54 }
 0x4b1   :  { %2852 = vmatprep.subr.bf16.mxu0 %v5623_v59  ;;  %3271 = vmatprep.subr.bf16.mxu1 %v8028_v26 }
 0x526   :  { %v1792_v10 = vpop.f32.mrb[28].mxu1  ;;  %v1833_v23 = vpop.f32.mrb[60].mxu0 }
 0x527   :  { %v1793_v8 = vadd.f32 %v1792_v10, %v9864_v9  ;;  %v1834_v12 = vadd.f32 %v1833_v23, %v9865_v33  ;;  %v1794_v63 = vpop.f32.mrb[29].mxu1  ;;  %v1835_v11 = vpop.f32.mrb[61].mxu0 }
 0x528   :  { %v1795_v29 = vadd.f32 %v1794_v63, %v9866_v18  ;;  %v1836_v7 = vadd.f32 %v1835_v11, %v9867_v31  ;;  %v1796_v0 = vpop.f32.mrb[30].mxu1  ;;  %v1837_v27 = vpop.f32.mrb[62].mxu0 }
 0x529   :  { %v5614_v35 = vmul.f32 -1.442695, %v1793_v8  ;;  %v1797_v37 = vpop.f32.mrb[31].mxu1  ;;  %v1838_v32 = vpop.f32.mrb[63].mxu0 }
 0x52a   :  { %v5615_v22 = vmul.f32 -1.442695, %v1795_v29  ;;  %v5616_v20 = vmul.f32 -1.442695, %v1836_v7  ;;  %v2002_v37 = vld [vmem:[%s9622_s8 + $0x68] sm:$0xff] }
 0x52b   :  { %6533 = vpow2.f32 %v5614_v35  ;;  %v1998_v35 = vld [vmem:[%s9622_s8 + $0x48] sm:$0xff] }
 0x52c   :  { %6535 = vpow2.f32 %v5615_v22  ;;  %v9872_v22 = vld [vmem:[#allocation61_spill] sm:$0xff] }
 0x52d   :  { %6537 = vpow2.f32 %v5616_v20  ;;  %v8059_v20 = vpack.c.bf16 %v7620_v25, %v9872_v22  ;;  %v9873_v25 = vld [vmem:[#allocation62_spill] sm:$0xff]  ;;  %v8247_v22 = vld [vmem:[%s9624_s11 + $0x44] ss:$16 sps:$4 sm:$0xff]  }
 0x52e   :  { %6539 = vtanh.f32 %v1834_v12 }
 0x535   :  { %v6534_v39 = vpop.eup %6533 }
 0x536   :  { %v6536_v40 = vpop.eup %6535  ;;  %v1930_v45 = vadd.f32 1.0, %v6534_v39  ;;  %v5631_v39 = vcombine.high %v1998_v35, %v2002_v37 }
 0x537   :  { %v1936_v47 = vadd.f32 1.0, %v6536_v40  ;;  %v6538_v36 = vpop.eup %6537  ;;  %v8066_v40 = vld [vmem:[%s9623_s10 + $0x24] ss:$16 sps:$4 sm:$0xff]  }
 0x538   :  { %6541 = vrcp.f32 %v1930_v45  ;;  %v6540_v48 = vpop.eup %6539  ;;  %v1943_v34 = vadd.f32 1.0, %v6538_v36  ;;  %v2010_v45 = vld [vmem:[%s9622_s8 + $0xa8] sm:$0xff]  ;;  %v5630_v36 = vcombine.low %v1998_v35, %v2002_v37  ;;  %v8241_v35 = vld [vmem:[%s9624_s11 + $0x20] ss:$16 sps:$4 sm:$0xff]  }
 0x539   :  { %6543 = vrcp.f32 %v1936_v47  ;;  %v8078_v47 = vpack.c.bf16 %v9873_v25, %v7693_v46  ;;  %v8094_v46 = vld [vmem:[%s9623_s10 + $0x44] ss:$16 sps:$4 sm:$0xff]   ;;  %v8260_v25 = vld [vmem:[%s9624_s11 + $0x40] ss:$16 sps:$4 sm:$0xff]  }
 0x53a   :  { %6545 = vrcp.f32 %v1943_v34  ;;  %v5647_v34 = vcombine.high %v2014_v55, %v2018_v57 }
 0x542   :  { %v6542_v41 = vpop.eup %6541 }
 0x543   :  { %v6544_v28 = vpop.eup %6543  ;;  %v1947_v19 = vmul.f32 %v6542_v41, %v6540_v48  ;;  %v8087_v48 = vld [vmem:[%s9623_s10 + $0x20] ss:$16 sps:$4 sm:$0xff]  }
 0x544   :  { %v1946_v24 = vmul.f32 %v6544_v28, %v7740_v60  ;;  %v6546_v49 = vpop.eup %6545  ;;  %v8107_v28 = vld [vmem:[%s9623_s10 + $0x40] ss:$16 sps:$4 sm:$0xff]  }
 0x546   :  { %v1948_v43 = vadd.f32 %v1947_v19, %v1946_v24  ;;  %v1879_v30 = vpop.f32.mrb[32].mxu1  ;;  %v1920_v5 = vpop.f32.mrb[64].mxu0  ;;  %v8116_v24 = vld [vmem:[%s9623_s10 + $0x64] ss:$16 sps:$4 sm:$0xff]  }
 0x547   :  { %v1880_v6 = vadd.f32 %v1879_v30, %v9868_v16  ;;  %v1921_v4 = vadd.f32 %v1920_v5, %v9869_v17  ;;  %v1881_v15 = vpop.f32.mrb[33].mxu1  ;;  %v1922_v38 = vpop.f32.mrb[65].mxu0  ;;  %v2026_v30 = vld [vmem:[%s9622_s8 + $0x128] sm:$0xff]  ;;  %v8130_v5 = vld [vmem:[%s9623_s10 + $0x60] ss:$16 sps:$4 sm:$0xff]  }
 0x548   :  { %6547 = vtanh.f32 %v1948_v43  ;;  %v1882_v50 = vadd.f32 %v1881_v15, %v9870_v44  ;;  %v1923_v56 = vadd.f32 %v1922_v38, %v9871_v52  ;;  %v1883_v58 = vpop.f32.mrb[34].mxu1  ;;  %v1924_v61 = vpop.f32.mrb[66].mxu0  ;;  %v2022_v43 = vld [vmem:[%s9622_s8 + $0x108] sm:$0xff]  ;;  %v8150_v38 = vld [vmem:[%s9623_s10 + $0x80] ss:$16 sps:$4 sm:$0xff]  }
 0x549   :  { %v5617_v62 = vmul.f32 -1.442695, %v1880_v6  ;;  %v1884_v13 = vpop.f32.mrb[35].mxu1  ;;  %v1925_v60 = vpop.f32.mrb[67].mxu0  ;;  %v5655_v16 = vcombine.high %v2022_v43, %v2026_v30  ;;  %v8136_v6 = vld [vmem:[%s9623_s10 + $0x84] ss:$16 sps:$4 sm:$0xff]   ;;  %v5654_v15 = vcombine.low %v2022_v43, %v2026_v30 }
 0x54a   :  { %v5618_v14 = vmul.f32 -1.442695, %v1882_v50  ;;  %v5619_v53 = vmul.f32 -1.442695, %v1923_v56  ;;  %v2030_v17 = vld [vmem:[%s9622_s8 + $0x148] sm:$0xff] }
 0x54b   :  { %6549 = vpow2.f32 %v5617_v62  ;;  %v8156_v50 = vld [vmem:[%s9623_s10 + $0xa4] ss:$16 sps:$4 sm:$0xff]   ;;  %v2038_v52 = vld [vmem:[%s9622_s8 + $0x188] sm:$0xff]  ;;  %v8168_v61 = vld [vmem:[%s9623_s10 + $0xa0] ss:$16 sps:$4 sm:$0xff]  }
 0x54c   :  { %6551 = vpow2.f32 %v5618_v14  ;;  %v2042_v56 = vld [vmem:[%s9622_s8 + $0x1a8] sm:$0xff]  ;;  %v8174_v13 = vld [vmem:[%s9623_s10 + $0xc4] ss:$16 sps:$4 sm:$0xff]  }
 0x54d   :  { %6553 = vpow2.f32 %v5619_v53  ;;  %v5671_v62 = vcombine.high %v2038_v52, %v2042_v56  ;;  %v2046_v60 = vld [vmem:[%s9622_s8 + $0x1c8] sm:$0xff]  ;;  %v8284_v30 = vld [vmem:[%s9624_s11 + $0x84] ss:$16 sps:$4 sm:$0xff]  }
 0x54e   :  { %6555 = vtanh.f32 %v1921_v4  ;;  %v2034_v4 = vld [vmem:[%s9622_s8 + $0x168] sm:$0xff] }
 0x54f   :  { %v5663_v44 = vcombine.high %v2030_v17, %v2034_v4  ;;  %v5662_v58 = vcombine.low %v2030_v17, %v2034_v4  ;;  %v2050_v14 = vld [vmem:[%s9622_s8 + $0x1e8] sm:$0xff]  ;;  %v8296_v4 = vld [vmem:[%s9624_s11 + $0x80] ss:$16 sps:$4 sm:$0xff]  }
 0x550   :  { %v5679_v53 = vcombine.high %v2046_v60, %v2050_v14 }
 0x552   :  { %v6548_v51 = vpop.eup %6547 }
 0x553   :  { %v1950_v54 = vmul.f32 %v6548_v51, %v6546_v49  ;;  %v5670_v49 = vcombine.low %v2038_v52, %v2042_v56  ;;  %v8186_v51 = vld [vmem:[%s9623_s10 + $0xc0] ss:$16 sps:$4 sm:$0xff]   ;;  %v2102_v52 = vld [vmem:[%s9622_s8 + $0x388] sm:$0xff] }
 0x554   :  { %v2106_v56 = vld [vmem:[%s9622_s8 + $0x3a8] sm:$0xff] }
 0x555   :  { %v6550_v59 = vpop.eup %6549  ;;  %v8111_v19 = vpack.c.bf16 %v1950_v54, %v7747_v3  ;;  %v5646_v3 = vcombine.low %v2014_v55, %v2018_v57  ;;  %v8192_v54 = vld [vmem:[%s9623_s10 + $0xe4] ss:$16 sps:$4 sm:$0xff]   ;;  %v2086_v55 = vld [vmem:[%s9622_s8 + $0x308] sm:$0xff] }
 0x556   :  { %v6552_v10 = vpop.eup %6551  ;;  %v1954_v23 = vadd.f32 1.0, %v6550_v59  ;;  %v2054_v59 = vld [vmem:[%s9622_s8 + $0x208] sm:$0xff] }
 0x557   :  { %v1960_v9 = vadd.f32 1.0, %v6552_v10  ;;  %v6554_v8 = vpop.eup %6553  ;;  %v2058_v10 = vld [vmem:[%s9622_s8 + $0x228] sm:$0xff] }
 0x558   :  { %6557 = vrcp.f32 %v1954_v23  ;;  %v6556_v33 = vpop.eup %6555  ;;  %v1967_v18 = vadd.f32 1.0, %v6554_v8  ;;  %v5678_v23 = vcombine.low %v2046_v60, %v2050_v14  ;;  %v5687_v8 = vcombine.high %v2054_v59, %v2058_v10  ;;  %v2090_v57 = vld [vmem:[%s9622_s8 + $0x328] sm:$0xff]  ;;  %v8320_v14 = vld [vmem:[%s9624_s11 + $0xc4] ss:$16 sps:$4 sm:$0xff]  }
 0x559   :  { %6559 = vrcp.f32 %v1960_v9  ;;  %v8204_v9 = vld [vmem:[%s9623_s10 + $0xe0] ss:$16 sps:$4 sm:$0xff]   ;;  %v5719_v43 = vcombine.high %v2086_v55, %v2090_v57  ;;  %v5718_v17 = vcombine.low %v2086_v55, %v2090_v57  ;;  %v5735_v60 = vcombine.high %v2102_v52, %v2106_v56  ;;  %v2020_v57 = vld [vmem:[%s9622_s8 + $0xf8] sm:$0xff] }
 0x55a   :  { %6561 = vrcp.f32 %v1967_v18  ;;  %v8222_v18 = vld [vmem:[%s9624_s11] ss:$16 sps:$4 sm:$0xff]  }
 0x562   :  { %v6558_v12 = vpop.eup %6557 }
 0x563   :  { %v6560_v63 = vpop.eup %6559  ;;  %v1971_v11 = vmul.f32 %v6558_v12, %v6556_v33  ;;  %v8210_v33 = vld [vmem:[%s9624_s11 + $0x4] ss:$16 sps:$4 sm:$0xff]   ;;  %v2062_v12 = vld [vmem:[%s9622_s8 + $0x248] sm:$0xff] }
 0x564   :  { %v1970_v29 = vmul.f32 %v6560_v63, %v7772_v42  ;;  %v6562_v7 = vpop.eup %6561  ;;  %v8055_v42 = vld [vmem:[%s9623_s10] ss:$16 sps:$4 sm:$0xff]   ;;  %9874 = vst [vmem:[#allocation19_spill] sm:$0xff] %v8210_v33  ;;  %v2066_v63 = vld [vmem:[%s9622_s8 + $0x268] sm:$0xff] }
 0x566   :  { %v1972_v31 = vadd.f32 %v1971_v11, %v1970_v29  ;;  %v5686_v11 = vcombine.low %v2054_v59, %v2058_v10  ;;  %v5695_v29 = vcombine.high %v2062_v12, %v2066_v63  ;;  %v5734_v59 = vcombine.low %v2102_v52, %v2106_v56  ;;  %v8332_v10 = vld [vmem:[%s9624_s11 + $0xc0] ss:$16 sps:$4 sm:$0xff]   ;;  %v2052_v56 = vld [vmem:[%s9622_s8 + $0x1f8] sm:$0xff] }
 0x568   :  { %6563 = vtanh.f32 %v1972_v31  ;;  %v8228_v31 = vld [vmem:[%s9624_s11 + $0x24] ss:$16 sps:$4 sm:$0xff]  }
 0x572   :  { %v6564_v0 = vpop.eup %6563 }
 0x573   :  { %v1974_v27 = vmul.f32 %v6564_v0, %v6562_v7  ;;  %v2070_v7 = vld [vmem:[%s9622_s8 + $0x288] sm:$0xff] }
 0x574   :  { %v2074_v0 = vld [vmem:[%s9622_s8 + $0x2a8] sm:$0xff] }
 0x575   :  { %v8050_v32 = vpack.c.bf16 %v7811_v2, %v1974_v27  ;;  %v2006_v2 = vld [vmem:[%s9622_s8 + $0x88] sm:$0xff]  ;;  %v5694_v27 = vcombine.low %v2062_v12, %v2066_v63  ;;  %v5703_v37 = vcombine.high %v2070_v7, %v2074_v0  ;;  %v1992_v12 = vld [vmem:[%s9622_s8 + $0x18] sm:$0xff] }
 0x576   :  { %v5639_v41 = vcombine.high %v2006_v2, %v2010_v45  ;;  %v1996_v63 = vld [vmem:[%s9622_s8 + $0x38] sm:$0xff] }
 0x577   :  { %2831 = vmatprep.mubr.bf16.mxu0 %v8050_v32  ;;  %2937 = vmatprep.mubr.bf16.mxu1 %v8050_v32 }
 0x578   :  { %2832 = vmatmul.mubr.bf16.vlgmr.msra.gmra.mrb[68].mxu0 %v8059_v20  ;;  %2938 = vmatmul.mubr.bf16.vlgmr.msra.gmra.mrb[36].mxu1 %v8059_v20 }
 0x579   :  { %2853 = vmatpush1.bf16.msra.mxu0 %v5622_v1  ;;  %3272 = vmatpush1.bf16.msra.mxu1 %v8055_v42  ;;  %v5638_v1 = vcombine.low %v2006_v2, %v2010_v45  ;;  %v2082_v2 = vld [vmem:[%s9622_s8 + $0x2e8] sm:$0xff]  ;;  %v5702_v45 = vcombine.low %v2070_v7, %v2074_v0  ;;  %v5627_v7 = vcombine.high %v1992_v12, %v1996_v63  ;;  %v2000_v0 = vld [vmem:[%s9622_s8 + $0x58] sm:$0xff] }
 0x57a   :  { %2841 = vmatprep.mubr.bf16.mxu0 %v8078_v47  ;;  %2947 = vmatprep.mubr.bf16.mxu1 %v8078_v47 }
 0x57b   :  { %2854 = vmatprep.subr.bf16.mxu0 %v5631_v39  ;;  %3273 = vmatprep.subr.bf16.mxu1 %v8066_v40  ;;  %v2078_v39 = vld [vmem:[%s9622_s8 + $0x2c8] sm:$0xff] }
 0x57d   :  { %2855 = vmatpush1.bf16.msra.mxu0 %v5630_v36  ;;  %3274 = vmatpush1.bf16.msra.mxu1 %v8087_v48  ;;  %v5711_v36 = vcombine.high %v2078_v39, %v2082_v2 }
 0x57e   :  { %2856 = vmatprep.subr.bf16.mxu0 %v5639_v41  ;;  %3275 = vmatprep.subr.bf16.mxu1 %v8094_v46  ;;  %v8266_v41 = vld [vmem:[%s9624_s11 + $0x64] ss:$16 sps:$4 sm:$0xff]  }
 0x580   :  { %2842 = vmatmul.mubr.bf16.gmra.mrb[72].mxu0 %v8111_v19  ;;  %2948 = vmatmul.mubr.bf16.gmra.mrb[40].mxu1 %v8111_v19 }
 0x581   :  { %2857 = vmatpush1.bf16.msra.mxu0 %v5638_v1  ;;  %3276 = vmatpush1.bf16.msra.mxu1 %v8107_v28  ;;  %v5710_v1 = vcombine.low %v2078_v39, %v2082_v2  ;;  %v2008_v2 = vld [vmem:[%s9622_s8 + $0x98] sm:$0xff] }
 0x582   :  { %2884 = vmatprep.mubr.bf16.mxu0 %v8050_v32  ;;  %2858 = vmatprep.subr.bf16.mxu0 %v5647_v34  ;;  %v8278_v34 = vld [vmem:[%s9624_s11 + $0x60] ss:$16 sps:$4 sm:$0xff]  }
 0x583   :  { %3277 = vmatprep.subr.bf16.mxu1 %v8116_v24  ;;  %3303 = vmatprep.mubr.bf16.mxu1 %v9799_v21 }
 0x585   :  { %2859 = vmatpush1.bf16.msra.mxu0 %v5646_v3  ;;  %3278 = vmatpush1.bf16.msra.mxu1 %v8130_v5  ;;  %v2094_v3 = vld [vmem:[%s9622_s8 + $0x348] sm:$0xff] }
 0x586   :  { %2860 = vmatprep.subr.bf16.mxu0 %v5655_v16  ;;  %3279 = vmatprep.subr.bf16.mxu1 %v8136_v6  ;;  %v2098_v16 = vld [vmem:[%s9622_s8 + $0x368] sm:$0xff] }
 0x589   :  { %2861 = vmatpush1.bf16.msra.mxu0 %v5654_v15  ;;  %3280 = vmatpush1.bf16.msra.mxu1 %v8150_v38  ;;  %v5727_v15 = vcombine.high %v2094_v3, %v2098_v16 }
 0x58a   :  { %2862 = vmatprep.subr.bf16.mxu0 %v5663_v44  ;;  %3281 = vmatprep.subr.bf16.mxu1 %v8156_v50  ;;  %v8302_v44 = vld [vmem:[%s9624_s11 + $0xa4] ss:$16 sps:$4 sm:$0xff]  }
 0x58d   :  { %2863 = vmatpush1.bf16.msra.mxu0 %v5662_v58  ;;  %3282 = vmatpush1.bf16.msra.mxu1 %v8168_v61  ;;  %v5726_v58 = vcombine.low %v2094_v3, %v2098_v16  ;;  %v2028_v3 = vld [vmem:[%s9622_s8 + $0x138] sm:$0xff] }
 0x58e   :  { %2864 = vmatprep.subr.bf16.mxu0 %v5671_v62  ;;  %3283 = vmatprep.subr.bf16.mxu1 %v8174_v13  ;;  %v8314_v62 = vld [vmem:[%s9624_s11 + $0xa0] ss:$16 sps:$4 sm:$0xff]  }
 0x591   :  { %2865 = vmatpush1.bf16.msra.mxu0 %v5670_v49  ;;  %3284 = vmatpush1.bf16.msra.mxu1 %v8186_v51  ;;  %v2110_v49 = vld [vmem:[%s9622_s8 + $0x3c8] sm:$0xff] }
 0x592   :  { %2866 = vmatprep.subr.bf16.mxu0 %v5679_v53  ;;  %3285 = vmatprep.subr.bf16.mxu1 %v8192_v54  ;;  %v2114_v53 = vld [vmem:[%s9622_s8 + $0x3e8] sm:$0xff] }
 0x595   :  { %2867 = vmatpush1.bf16.msra.mxu0 %v5678_v23  ;;  %3286 = vmatpush1.bf16.msra.mxu1 %v8204_v9  ;;  %v5743_v23 = vcombine.high %v2110_v49, %v2114_v53 }
 0x596   :  { %2868 = vmatprep.subr.bf16.mxu0 %v5687_v8  ;;  %3517 = vmatprep.subr.bf16.mxu1 %v8210_v33  ;;  %v8338_v8 = vld [vmem:[%s9624_s11 + $0xe4] ss:$16 sps:$4 sm:$0xff]  }
 0x598   :  { %3304 = vmatmul.mubr.bf16.vlgmr.msra.gmra.mrb[44].mxu1 %v9799_v21 }
 0x599   :  { %2869 = vmatpush1.bf16.msra.mxu0 %v5686_v11  ;;  %3518 = vmatpush1.bf16.msra.mxu1 %v8222_v18  ;;  %v5742_v11 = vcombine.low %v2110_v49, %v2114_v53  ;;  %v2068_v53 = vld [vmem:[%s9622_s8 + $0x278] sm:$0xff] }
 0x59a   :  { %2870 = vmatprep.subr.bf16.mxu0 %v5695_v29  ;;  %3519 = vmatprep.subr.bf16.mxu1 %v8228_v31  ;;  %v8350_v29 = vld [vmem:[%s9624_s11 + $0xe0] ss:$16 sps:$4 sm:$0xff]  }
 0x59b   :  { %3549 = vmatprep.mubr.bf16.mxu1 %v9799_v21 }
 0x59d   :  { %2871 = vmatpush1.bf16.msra.mxu0 %v5694_v27  ;;  %3520 = vmatpush1.bf16.msra.mxu1 %v8241_v35  ;;  %v2004_v27 = vld [vmem:[%s9622_s8 + $0x78] sm:$0xff] }
 0x59e   :  { %2872 = vmatprep.subr.bf16.mxu0 %v5703_v37  ;;  %3521 = vmatprep.subr.bf16.mxu1 %v8247_v22  ;;  %v5626_v37 = vcombine.low %v1992_v12, %v1996_v63  ;;  %v5635_v39 = vcombine.high %v2000_v0, %v2004_v27  ;;  %v2080_v63 = vld [vmem:[%s9622_s8 + $0x2d8] sm:$0xff] }
 0x5a1   :  { %2873 = vmatpush1.bf16.msra.mxu0 %v5702_v45  ;;  %3522 = vmatpush1.bf16.msra.mxu1 %v8260_v25  ;;  %v2012_v45 = vld [vmem:[%s9622_s8 + $0xb8] sm:$0xff] }
 0x5a2   :  { %2874 = vmatprep.subr.bf16.mxu0 %v5711_v36  ;;  %3523 = vmatprep.subr.bf16.mxu1 %v8266_v41  ;;  %v5634_v36 = vcombine.low %v2000_v0, %v2004_v27  ;;  %v5643_v55 = vcombine.high %v2008_v2, %v2012_v45  ;;  %v2088_v0 = vld [vmem:[%s9622_s8 + $0x318] sm:$0xff] }
 0x5a3   :  { %v2092_v27 = vld [vmem:[%s9622_s8 + $0x338] sm:$0xff] }
 0x5a5   :  { %2875 = vmatpush1.bf16.msra.mxu0 %v5710_v1  ;;  %3524 = vmatpush1.bf16.msra.mxu1 %v8278_v34  ;;  %v5642_v1 = vcombine.low %v2008_v2, %v2012_v45  ;;  %v2096_v2 = vld [vmem:[%s9622_s8 + $0x358] sm:$0xff] }
 0x5a6   :  { %2876 = vmatprep.subr.bf16.mxu0 %v5719_v43  ;;  %3525 = vmatprep.subr.bf16.mxu1 %v8284_v30  ;;  %v2100_v45 = vld [vmem:[%s9622_s8 + $0x378] sm:$0xff] }
 0x5a9   :  { %2877 = vmatpush1.bf16.msra.mxu0 %v5718_v17  ;;  %3526 = vmatpush1.bf16.msra.mxu1 %v8296_v4  ;;  %v2036_v17 = vld [vmem:[%s9622_s8 + $0x178] sm:$0xff] }
 0x5aa   :  { %2878 = vmatprep.subr.bf16.mxu0 %v5727_v15  ;;  %3527 = vmatprep.subr.bf16.mxu1 %v8302_v44 }
 0x5ad   :  { %2879 = vmatpush1.bf16.msra.mxu0 %v5726_v58  ;;  %3528 = vmatpush1.bf16.msra.mxu1 %v8314_v62 }
 0x5ae   :  { %2880 = vmatprep.subr.bf16.mxu0 %v5735_v60  ;;  %3529 = vmatprep.subr.bf16.mxu1 %v8320_v14  ;;  %v2060_v60 = vld [vmem:[%s9622_s8 + $0x238] sm:$0xff] }
 0x5b1   :  { %2881 = vmatpush1.bf16.msra.mxu0 %v5734_v59  ;;  %3530 = vmatpush1.bf16.msra.mxu1 %v8332_v10 }
 0x5b2   :  { %2882 = vmatprep.subr.bf16.mxu0 %v5743_v23  ;;  %3531 = vmatprep.subr.bf16.mxu1 %v8338_v8  ;;  %v2076_v23 = vld [vmem:[%s9622_s8 + $0x2b8] sm:$0xff] }
 0x5b5   :  { %2883 = vmatpush1.bf16.msra.mxu0 %v5742_v11  ;;  %3532 = vmatpush1.bf16.msra.mxu1 %v8350_v29 }
 0x5b6   :  { %2958 = vmatprep.subr.bf16.mxu0 %v5627_v7  ;;  %3654 = vmatprep.subr.bf16.mxu1 %v8028_v26  ;;  %v2016_v26 = vld [vmem:[%s9622_s8 + $0xd8] sm:$0xff] }
 0x5b7   :  { %v5651_v43 = vcombine.high %v2016_v26, %v2020_v57 }
 0x5b8   :  { %2885 = vmatmul.mubr.bf16.vlgmr.msra.gmra.mrb[76].mxu0 %v8059_v20  ;;  %3550 = vmatmul.mubr.bf16.vlgmr.msra.gmra.mrb[48].mxu1 %v9799_v21 }
 0x5b9   :  { %2894 = vmatprep.mubr.bf16.mxu0 %v8078_v47  ;;  %2959 = vmatpush1.bf16.msra.mxu0 %v5626_v37 }
 0x5ba   :  { %2960 = vmatprep.subr.bf16.mxu0 %v5635_v39  ;;  %3655 = vmatpush1.bf16.msra.mxu1 %v8055_v42  ;;  %v2024_v42 = vld [vmem:[%s9622_s8 + $0x118] sm:$0xff]  ;;  %v5723_v39 = vcombine.high %v2088_v0, %v2092_v27 }
 0x5bb   :  { %3656 = vmatprep.subr.bf16.mxu1 %v8066_v40  ;;  %3686 = vmatprep.mubr.bf16.mxu1 %v9799_v21  ;;  %v5650_v40 = vcombine.low %v2016_v26, %v2020_v57  ;;  %v5659_v16 = vcombine.high %v2024_v42, %v2028_v3  ;;  %v2104_v26 = vld [vmem:[%s9622_s8 + $0x398] sm:$0xff] }
 0x5bc   :  { %v2108_v57 = vld [vmem:[%s9622_s8 + $0x3b8] sm:$0xff] }
 0x5bd   :  { %2961 = vmatpush1.bf16.msra.mxu0 %v5634_v36  ;;  %v5722_v36 = vcombine.low %v2088_v0, %v2092_v27  ;;  %v8655_v0 = vld [vmem:[%s9624_s11 + $0xec] ss:$16 sps:$4 sm:$0xff]   ;;  %v8661_v27 = vld [vmem:[%s9624_s11 + $0xe8] ss:$16 sps:$4 sm:$0xff]  }
 0x5be   :  { %2962 = vmatprep.subr.bf16.mxu0 %v5643_v55  ;;  %3657 = vmatpush1.bf16.msra.mxu1 %v8087_v48  ;;  %v2032_v48 = vld [vmem:[%s9622_s8 + $0x158] sm:$0xff]  ;;  %v5731_v55 = vcombine.high %v2096_v2, %v2100_v45 }
 0x5bf   :  { %3658 = vmatprep.subr.bf16.mxu1 %v8094_v46  ;;  %v5658_v46 = vcombine.low %v2024_v42, %v2028_v3  ;;  %v5667_v15 = vcombine.high %v2032_v48, %v2036_v17  ;;  %v5666_v52 = vcombine.low %v2032_v48, %v2036_v17  ;;  %v2112_v42 = vld [vmem:[%s9622_s8 + $0x3d8] sm:$0xff] }
 0x5c0   :  { %2895 = vmatmul.mubr.bf16.gmra.mrb[80].mxu0 %v8111_v19  ;;  %v2116_v3 = vld [vmem:[%s9622_s8 + $0x3f8] sm:$0xff] }
 0x5c1   :  { %2963 = vmatpush1.bf16.msra.mxu0 %v5642_v1  ;;  %2990 = vmatprep.mubr.bf16.mxu0 %v8050_v32  ;;  %v2040_v32 = vld [vmem:[%s9622_s8 + $0x198] sm:$0xff]  ;;  %v5730_v1 = vcombine.low %v2096_v2, %v2100_v45  ;;  %v5746_v48 = vcombine.low %v2112_v42, %v2116_v3 }
 0x5c2   :  { %2964 = vmatprep.subr.bf16.mxu0 %v5651_v43  ;;  %3659 = vmatpush1.bf16.msra.mxu1 %v8107_v28  ;;  %v2044_v28 = vld [vmem:[%s9622_s8 + $0x1b8] sm:$0xff]  ;;  %v5739_v43 = vcombine.high %v2104_v26, %v2108_v57 }
 0x5c3   :  { %3660 = vmatprep.subr.bf16.mxu1 %v8116_v24  ;;  %v5675_v24 = vcombine.high %v2040_v32, %v2044_v28  ;;  %v5674_v58 = vcombine.low %v2040_v32, %v2044_v28  ;;  %v8470_v17 = vld [vmem:[%s9623_s10 + $0xc] ss:$16 sps:$4 sm:$0xff]   ;;  %v8489_v32 = vld [vmem:[%s9623_s10 + $0x28] ss:$16 sps:$4 sm:$0xff]  }
 0x5c4   :  { %v8495_v28 = vld [vmem:[%s9623_s10 + $0x4c] ss:$16 sps:$4 sm:$0xff]  }
 0x5c5   :  { %2965 = vmatpush1.bf16.msra.mxu0 %v5650_v40  ;;  %v5738_v40 = vcombine.low %v2104_v26, %v2108_v57 }
 0x5c6   :  { %2966 = vmatprep.subr.bf16.mxu0 %v5659_v16  ;;  %3661 = vmatpush1.bf16.msra.mxu1 %v8130_v5  ;;  %v2048_v5 = vld [vmem:[%s9622_s8 + $0x1d8] sm:$0xff]  ;;  %v5747_v16 = vcombine.high %v2112_v42, %v2116_v3 }
 0x5c7   :  { %3662 = vmatprep.subr.bf16.mxu1 %v8136_v6  ;;  %v5683_v6 = vcombine.high %v2048_v5, %v2052_v56  ;;  %v5682_v49 = vcombine.low %v2048_v5, %v2052_v56  ;;  %v8533_v5 = vld [vmem:[%s9623_s10 + $0xac] ss:$16 sps:$4 sm:$0xff]   ;;  %v8539_v56 = vld [vmem:[%s9623_s10 + $0xa8] ss:$16 sps:$4 sm:$0xff]  }
 0x5c8   :  { %9880 = vst [vmem:[#allocation22_spill] sm:$0xff] %v8533_v5  ;;  %9881 = vst [vmem:[#allocation9_spill] sm:$0xff] %v8539_v56 }
 0x5c9   :  { %2967 = vmatpush1.bf16.msra.mxu0 %v5658_v46  ;;  %v8475_v46 = vld [vmem:[%s9623_s10 + $0x8] ss:$16 sps:$4 sm:$0xff]  }
 0x5ca   :  { %2968 = vmatprep.subr.bf16.mxu0 %v5667_v15  ;;  %3663 = vmatpush1.bf16.msra.mxu1 %v8150_v38  ;;  %v2056_v38 = vld [vmem:[%s9622_s8 + $0x218] sm:$0xff] }
 0x5cb   :  { %3664 = vmatprep.subr.bf16.mxu1 %v8156_v50  ;;  %v5691_v50 = vcombine.high %v2056_v38, %v2060_v60  ;;  %v5690_v59 = vcombine.low %v2056_v38, %v2060_v60  ;;  %v8481_v15 = vld [vmem:[%s9623_s10 + $0x2c] ss:$16 sps:$4 sm:$0xff]   ;;  %v8563_v60 = vld [vmem:[%s9623_s10 + $0xe8] ss:$16 sps:$4 sm:$0xff]  }
 0x5cc   :  { %v8557_v38 = vld [vmem:[%s9623_s10 + $0xec] ss:$16 sps:$4 sm:$0xff]   ;;  %9885 = vst [vmem:[#allocation11_spill] sm:$0xff] %v8563_v60 }
 0x5cd   :  { %2969 = vmatpush1.bf16.msra.mxu0 %v5666_v52  ;;  %v8514_v52 = vld [vmem:[%s9623_s10 + $0x68] ss:$16 sps:$4 sm:$0xff]   ;;  %9884 = vst [vmem:[#allocation24_spill] sm:$0xff] %v8557_v38 }
 0x5ce   :  { %2970 = vmatprep.subr.bf16.mxu0 %v5675_v24  ;;  %3665 = vmatpush1.bf16.msra.mxu1 %v8168_v61  ;;  %v2064_v61 = vld [vmem:[%s9622_s8 + $0x258] sm:$0xff]  ;;  %9877 = vst [vmem:[#allocation7_spill] sm:$0xff] %v8514_v52 }
 0x5cf   :  { %3666 = vmatprep.subr.bf16.mxu1 %v8174_v13  ;;  %v5699_v13 = vcombine.high %v2064_v61, %v2068_v53  ;;  %v5698_v12 = vcombine.low %v2064_v61, %v2068_v53  ;;  %v8521_v24 = vld [vmem:[%s9623_s10 + $0x8c] ss:$16 sps:$4 sm:$0xff]   ;;  %v8588_v53 = vld [vmem:[%s9624_s11 + $0x28] ss:$16 sps:$4 sm:$0xff]  }
 0x5d0   :  { %9878 = vst [vmem:[#allocation21_spill] sm:$0xff] %v8521_v24  ;;  %v8581_v61 = vld [vmem:[%s9624_s11 + $0x2c] ss:$16 sps:$4 sm:$0xff]  }
 0x5d1   :  { %2971 = vmatpush1.bf16.msra.mxu0 %v5674_v58  ;;  %v8545_v58 = vld [vmem:[%s9623_s10 + $0xcc] ss:$16 sps:$4 sm:$0xff]  }
 0x5d2   :  { %2972 = vmatprep.subr.bf16.mxu0 %v5683_v6  ;;  %3667 = vmatpush1.bf16.msra.mxu1 %v8186_v51  ;;  %v2072_v51 = vld [vmem:[%s9622_s8 + $0x298] sm:$0xff]  ;;  %9882 = vst [vmem:[#allocation23_spill] sm:$0xff] %v8545_v58 }
 0x5d3   :  { %3668 = vmatprep.subr.bf16.mxu1 %v8192_v54  ;;  %v5707_v54 = vcombine.high %v2072_v51, %v2076_v23  ;;  %v5706_v11 = vcombine.low %v2072_v51, %v2076_v23  ;;  %v8551_v6 = vld [vmem:[%s9623_s10 + $0xc8] ss:$16 sps:$4 sm:$0xff]   ;;  %v8607_v51 = vld [vmem:[%s9624_s11 + $0x6c] ss:$16 sps:$4 sm:$0xff]  }
 0x5d4   :  { %9883 = vst [vmem:[#allocation10_spill] sm:$0xff] %v8551_v6  ;;  %v8613_v23 = vld [vmem:[%s9624_s11 + $0x68] ss:$16 sps:$4 sm:$0xff]  }
 0x5d5   :  { %2973 = vmatpush1.bf16.msra.mxu0 %v5682_v49  ;;  %v8569_v49 = vld [vmem:[%s9624_s11 + $0xc] ss:$16 sps:$4 sm:$0xff]  }
 0x5d6   :  { %2974 = vmatprep.subr.bf16.mxu0 %v5691_v50  ;;  %3669 = vmatpush1.bf16.msra.mxu1 %v8204_v9  ;;  %v2084_v9 = vld [vmem:[%s9622_s8 + $0x2f8] sm:$0xff]  ;;  %9886 = vst [vmem:[#allocation39_spill] sm:$0xff] %v8569_v49 }
 0x5d7   :  { %3741 = vmatprep.subr.bf16.mxu1 %v8210_v33  ;;  %v5715_v7 = vcombine.high %v2080_v63, %v2084_v9  ;;  %v5714_v37 = vcombine.low %v2080_v63, %v2084_v9  ;;  %v8575_v50 = vld [vmem:[%s9624_s11 + $0x8] ss:$16 sps:$4 sm:$0xff]   ;;  %v8631_v63 = vld [vmem:[%s9624_s11 + $0xac] ss:$16 sps:$4 sm:$0xff]  }
 0x5d8   :  { %v8637_v9 = vld [vmem:[%s9624_s11 + $0xa8] ss:$16 sps:$4 sm:$0xff]  }
 0x5d9   :  { %2975 = vmatpush1.bf16.msra.mxu0 %v5690_v59  ;;  %v8595_v59 = vld [vmem:[%s9624_s11 + $0x4c] ss:$16 sps:$4 sm:$0xff]  }
 0x5da   :  { %2976 = vmatprep.subr.bf16.mxu0 %v5699_v13  ;;  %v8601_v13 = vld [vmem:[%s9624_s11 + $0x48] ss:$16 sps:$4 sm:$0xff]  }
 0x5dd   :  { %2977 = vmatpush1.bf16.msra.mxu0 %v5698_v12  ;;  %v8619_v12 = vld [vmem:[%s9624_s11 + $0x8c] ss:$16 sps:$4 sm:$0xff]  }
 0x5de   :  { %2978 = vmatprep.subr.bf16.mxu0 %v5707_v54  ;;  %v8625_v54 = vld [vmem:[%s9624_s11 + $0x88] ss:$16 sps:$4 sm:$0xff]  }
 0x5e1   :  { %2979 = vmatpush1.bf16.msra.mxu0 %v5706_v11  ;;  %v8643_v11 = vld [vmem:[%s9624_s11 + $0xcc] ss:$16 sps:$4 sm:$0xff]  }
 0x5e2   :  { %2980 = vmatprep.subr.bf16.mxu0 %v5715_v7  ;;  %v8649_v7 = vld [vmem:[%s9624_s11 + $0xc8] ss:$16 sps:$4 sm:$0xff]  }
 0x5e5   :  { %2981 = vmatpush1.bf16.msra.mxu0 %v5714_v37  ;;  %v8677_v37 = vld [vmem:[%s9625_s9] sm:$0xff] }
 0x5e6   :  { %2982 = vmatprep.subr.bf16.mxu0 %v5723_v39  ;;  %v9887_v39 = vld [vmem:[#allocation34_spill] sm:$0xff] }
 0x5e7   :  { %v9888_v2 = vsub.s32 4, %v9887_v39 }
 0x5e9   :  { %2983 = vmatpush1.bf16.msra.mxu0 %v5722_v36  ;;  %v2138_v45 = vrot.slane %v8677_v37, %v9888_v2  ;;  %v9889_v36 = vsub.s32 5, %v9887_v39 }
 0x5ea   :  { %2984 = vmatprep.subr.bf16.mxu0 %v5731_v55 }
 0x5eb   :  { %v2142_v55 = vrot.slane %v8677_v37, %v9889_v36 }
 0x5ed   :  { %2985 = vmatpush1.bf16.msra.mxu0 %v5730_v1  ;;  %v9890_v1 = vld [vmem:[#allocation35_spill] sm:$0xff] }
 0x5ee   :  { %2986 = vmatprep.subr.bf16.mxu0 %v5739_v43  ;;  %v2122_v43 = vrot.slane %v8677_v37, %v9890_v1 }
 0x5f1   :  { %2987 = vmatpush1.bf16.msra.mxu0 %v5738_v40 }
 0x5f2   :  { %2988 = vmatprep.subr.bf16.mxu0 %v5747_v16  ;;  %v9892_v16 = vld [vmem:[#allocation36_spill] sm:$0xff] }
 0x5f5   :  { %2989 = vmatpush1.bf16.msra.mxu0 %v5746_v48  ;;  %v2126_v48 = vrot.slane %v8677_v37, %v9892_v16 }
 0x5f6   :  { %3312 = vmatprep.subr.bf16.mxu0 %v8470_v17 }
 0x5f8   :  { %2991 = vmatmul.mubr.bf16.vlgmr.msra.gmra.mrb[84].mxu0 %v8059_v20  ;;  %v8501_v20 = vld [vmem:[%s9623_s10 + $0x48] ss:$16 sps:$4 sm:$0xff]  }
 0x5f9   :  { %3000 = vmatprep.mubr.bf16.mxu0 %v8078_v47  ;;  %3313 = vmatpush1.bf16.msra.mxu0 %v8475_v46  ;;  %9875 = vst [vmem:[#allocation6_spill] sm:$0xff] %v8501_v20  ;;  %v8507_v47 = vld [vmem:[%s9623_s10 + $0x6c] ss:$16 sps:$4 sm:$0xff]  }
 0x5fa   :  { %3314 = vmatprep.subr.bf16.mxu0 %v8481_v15  ;;  %9876 = vst [vmem:[#allocation20_spill] sm:$0xff] %v8507_v47 }
 0x5fd   :  { %3315 = vmatpush1.bf16.msra.mxu0 %v8489_v32 }
 0x5fe   :  { %3316 = vmatprep.subr.bf16.mxu0 %v8495_v28 }
 0x600   :  { %3001 = vmatmul.mubr.bf16.gmra.mrb[88].mxu0 %v8111_v19  ;;  %v8527_v19 = vld [vmem:[%s9623_s10 + $0x88] ss:$16 sps:$4 sm:$0xff]  }
 0x601   :  { %3317 = vmatpush1.bf16.msra.mxu0 %v8501_v20  ;;  %3344 = vmatprep.mubr.bf16.mxu0 %v9799_v21  ;;  %9879 = vst [vmem:[#allocation8_spill] sm:$0xff] %v8527_v19 }
 0x602   :  { %3318 = vmatprep.subr.bf16.mxu0 %v8507_v47 }
 0x605   :  { %3319 = vmatpush1.bf16.msra.mxu0 %v8514_v52 }
 0x606   :  { %3320 = vmatprep.subr.bf16.mxu0 %v8521_v24 }
 0x609   :  { %3321 = vmatpush1.bf16.msra.mxu0 %v8527_v19 }
 0x60a   :  { %3322 = vmatprep.subr.bf16.mxu0 %v8533_v5 }
 0x60d   :  { %3323 = vmatpush1.bf16.msra.mxu0 %v8539_v56 }
 0x60e   :  { %3324 = vmatprep.subr.bf16.mxu0 %v8545_v58 }
 0x611   :  { %3325 = vmatpush1.bf16.msra.mxu0 %v8551_v6 }
 0x612   :  { %3326 = vmatprep.subr.bf16.mxu0 %v8557_v38 }
 0x615   :  { %3327 = vmatpush1.bf16.msra.mxu0 %v8563_v60 }
 0x616   :  { %3558 = vmatprep.subr.bf16.mxu0 %v8569_v49 }
 0x618   :  { %3345 = vmatmul.mubr.bf16.vlgmr.msra.gmra.mrb[92].mxu0 %v9799_v21 }
 0x619   :  { %3559 = vmatpush1.bf16.msra.mxu0 %v8575_v50  ;;  %3590 = vmatprep.mubr.bf16.mxu0 %v9799_v21 }
 0x61a   :  { %3560 = vmatprep.subr.bf16.mxu0 %v8581_v61 }
 0x61d   :  { %3561 = vmatpush1.bf16.msra.mxu0 %v8588_v53 }
 0x61e   :  { %3562 = vmatprep.subr.bf16.mxu0 %v8595_v59 }
 0x621   :  { %3563 = vmatpush1.bf16.msra.mxu0 %v8601_v13 }
 0x622   :  { %3564 = vmatprep.subr.bf16.mxu0 %v8607_v51 }
 0x625   :  { %3565 = vmatpush1.bf16.msra.mxu0 %v8613_v23 }
 0x626   :  { %3566 = vmatprep.subr.bf16.mxu0 %v8619_v12 }
 0x629   :  { %3567 = vmatpush1.bf16.msra.mxu0 %v8625_v54 }
 0x62a   :  { %3568 = vmatprep.subr.bf16.mxu0 %v8631_v63 }
 0x62d   :  { %3569 = vmatpush1.bf16.msra.mxu0 %v8637_v9 }
 0x62e   :  { %3570 = vmatprep.subr.bf16.mxu0 %v8643_v11 }
 0x631   :  { %3571 = vmatpush1.bf16.msra.mxu0 %v8649_v7 }
 0x632   :  { %3572 = vmatprep.subr.bf16.mxu0 %v8655_v0 }
 0x635   :  { %3573 = vmatpush1.bf16.msra.mxu0 %v8661_v27 }
 0x636   :  { %3695 = vmatprep.subr.bf16.mxu0 %v8470_v17 }
 0x638   :  { %3591 = vmatmul.mubr.bf16.vlgmr.msra.gmra.mrb[96].mxu0 %v9799_v21 }
 0x639   :  { %3696 = vmatpush1.bf16.msra.mxu0 %v8475_v46  ;;  %3727 = vmatprep.mubr.bf16.mxu0 %v9799_v21 }
 0x63a   :  { %3697 = vmatprep.subr.bf16.mxu0 %v8481_v15 }
 0x63d   :  { %3698 = vmatpush1.bf16.msra.mxu0 %v8489_v32 }
 0x63e   :  { %3699 = vmatprep.subr.bf16.mxu0 %v8495_v28 }
 0x641   :  { %3700 = vmatpush1.bf16.msra.mxu0 %v8501_v20 }
 0x642   :  { %3701 = vmatprep.subr.bf16.mxu0 %v8507_v47 }
 0x645   :  { %3702 = vmatpush1.bf16.msra.mxu0 %v8514_v52 }
 0x646   :  { %3703 = vmatprep.subr.bf16.mxu0 %v8521_v24 }
 0x649   :  { %3704 = vmatpush1.bf16.msra.mxu0 %v8527_v19 }
 0x64a   :  { %3705 = vmatprep.subr.bf16.mxu0 %v8533_v5 }
 0x64b   :  { %v2833_v26 = vpop.f32.mrb[68].mxu0  ;;  %v2939_v57 = vpop.f32.mrb[36].mxu1 }
 0x64c   :  { %v8691_v42 = vadd.f32 %v2939_v57, %v2138_v45  ;;  %v2835_v3 = vpop.f32.mrb[69].mxu0  ;;  %v2941_v40 = vpop.f32.mrb[37].mxu1 }
 0x64d   :  { %v8695_v2 = vadd.f32 %v2941_v40, %v2142_v55  ;;  %v2837_v33 = vpop.f32.mrb[70].mxu0  ;;  %v2943_v36 = vpop.f32.mrb[38].mxu1  ;;  %3706 = vmatpush1.bf16.msra.mxu0 %v8539_v56 }
 0x64e   :  { %9891 = vst [vmem:[#allocation49_spill] sm:$0xff] %v8691_v42  ;;  %v8698_v19 = vadd.f32 %v2837_v33, %v2122_v43  ;;  %v8700_v5 = vadd.f32 %v2943_v36, %v2138_v45  ;;  %v2839_v24 = vpop.f32.mrb[71].mxu0  ;;  %v2945_v52 = vpop.f32.mrb[39].mxu1  ;;  %3707 = vmatprep.subr.bf16.mxu0 %v8545_v58 }
 0x64f   :  { %9893 = vst [vmem:[#allocation41_spill] sm:$0xff] %v8695_v2  ;;  %v8703_v57 = vadd.f32 %v2839_v24, %v2126_v48  ;;  %v8705_v1 = vadd.f32 %v2945_v52, %v2142_v55 }
 0x650   :  { %9894 = vst [vmem:[#allocation50_spill] sm:$0xff] %v8698_v19  ;;  %9895 = vst [vmem:[#allocation44_spill] sm:$0xff] %v8700_v5 }
 0x651   :  { %9896 = vst [vmem:[#allocation59_spill] sm:$0xff] %v8703_v57  ;;  %9897 = vst [vmem:[#allocation46_spill] sm:$0xff] %v8705_v1  ;;  %3708 = vmatpush1.bf16.msra.mxu0 %v8551_v6 }
 0x652   :  { %3709 = vmatprep.subr.bf16.mxu0 %v8557_v38 }
 0x653   :  { %v2843_v40 = vpop.f32.mrb[72].mxu0  ;;  %v2949_v16 = vpop.f32.mrb[40].mxu1 }
 0x654   :  { %v8709_v2 = vadd.f32 %v2843_v40, %v2122_v43  ;;  %v8711_v33 = vadd.f32 %v2949_v16, %v2138_v45  ;;  %v2845_v36 = vpop.f32.mrb[73].mxu0  ;;  %v2951_v42 = vpop.f32.mrb[41].mxu1  ;;  %v2834_v16 = vadd.f32 %v2833_v26, %v2122_v43  ;;  %v9905_v26 = vsub.s32 3, %v9887_v39 }
 0x655   :  { %v8713_v5 = vadd.f32 %v2845_v36, %v2126_v48  ;;  %v8715_v19 = vadd.f32 %v2951_v42, %v2142_v55  ;;  %v2847_v24 = vpop.f32.mrb[74].mxu0  ;;  %v2953_v57 = vpop.f32.mrb[42].mxu1  ;;  %3710 = vmatpush1.bf16.msra.mxu0 %v8563_v60 }
 0x656   :  { %9898 = vst [vmem:[#allocation60_spill] sm:$0xff] %v8709_v2  ;;  %9899 = vst [vmem:[#allocation25_spill] sm:$0xff] %v8711_v33  ;;  %v8718_v52 = vadd.f32 %v2847_v24, %v2122_v43  ;;  %v2849_v1 = vpop.f32.mrb[75].mxu0  ;;  %v2955_v38 = vpop.f32.mrb[43].mxu1  ;;  %3782 = vmatprep.subr.bf16.mxu0 %v8569_v49  ;;  %v2836_v2 = vadd.f32 %v2835_v3, %v2126_v48  ;;  %v2954_v58 = vadd.f32 %v2953_v57, %v2138_v45 }
 0x657   :  { %9900 = vst [vmem:[#allocation12_spill] sm:$0xff] %v8713_v5  ;;  %9901 = vst [vmem:[#allocation26_spill] sm:$0xff] %v8715_v19  ;;  %v8721_v40 = vadd.f32 %v2849_v1, %v2126_v48  ;;  %v2956_v56 = vadd.f32 %v2955_v38, %v2142_v55  ;;  %v9904_v24 = vsub.s32 2, %v9887_v39  ;;  %v2134_v43 = vrot.slane %v8677_v37, %v9905_v26 }
 0x658   :  { %9902 = vst [vmem:[#allocation13_spill] sm:$0xff] %v8718_v52  ;;  %v9913_v26 = vsub.s32 7, %v9887_v39 }
 0x659   :  { %9903 = vst [vmem:[#allocation27_spill] sm:$0xff] %v8721_v40  ;;  %v2130_v52 = vrot.slane %v8677_v37, %v9904_v24 }
 0x66b   :  { %v3305_v33 = vpop.f32.mrb[44].mxu1 }
 0x66c   :  { %v3306_v6 = vadd.f32 %v3305_v33, %v2834_v16  ;;  %v3307_v36 = vpop.f32.mrb[45].mxu1 }
 0x66d   :  { %v3308_v5 = vadd.f32 %v3307_v36, %v2836_v2  ;;  %v3309_v42 = vpop.f32.mrb[46].mxu1 }
 0x66e   :  { %v3310_v19 = vpop.f32.mrb[47].mxu1 }
 0x68b   :  { %v2886_v47 = vpop.f32.mrb[76].mxu0  ;;  %v3551_v60 = vpop.f32.mrb[48].mxu1 }
 0x68c   :  { %v3552_v20 = vadd.f32 %v3551_v60, %v2954_v58  ;;  %v2888_v49 = vpop.f32.mrb[77].mxu0  ;;  %v3553_v1 = vpop.f32.mrb[49].mxu1 }
 0x68d   :  { %v3554_v3 = vadd.f32 %v3553_v1, %v2956_v56  ;;  %v2890_v48 = vpop.f32.mrb[78].mxu0  ;;  %v3555_v2 = vpop.f32.mrb[50].mxu1  ;;  %v9912_v56 = vsub.s32 6, %v9887_v39 }
 0x68e   :  { %v8729_v33 = vadd.f32 %v2890_v48, %v2130_v52  ;;  %v2892_v19 = vpop.f32.mrb[79].mxu0  ;;  %v3556_v38 = vpop.f32.mrb[51].mxu1  ;;  %v2150_v48 = vrot.slane %v8677_v37, %v9913_v26  ;;  %v5813_v26 = vmul.f32 -1.442695, %v3308_v5 }
 0x68f   :  { %v8731_v45 = vadd.f32 %v2892_v19, %v2134_v43  ;;  %v2146_v1 = vrot.slane %v8677_v37, %v9912_v56 }
 0x690   :  { %9906 = vst [vmem:[#allocation14_spill] sm:$0xff] %v8729_v33  ;;  %6565 = vpow2.f32 %v5813_v26  ;;  %v5816_v26 = vmul.f32 -1.442695, %v3554_v3  ;;  %v5815_v33 = vmul.f32 -1.442695, %v3552_v20 }
 0x691   :  { %9907 = vst [vmem:[#allocation28_spill] sm:$0xff] %v8731_v45 }
 0x693   :  { %v2896_v55 = vpop.f32.mrb[80].mxu0 }
 0x694   :  { %v8733_v57 = vadd.f32 %v2896_v55, %v2130_v52  ;;  %v2898_v16 = vpop.f32.mrb[81].mxu0 }
 0x695   :  { %v8735_v58 = vadd.f32 %v2898_v16, %v2134_v43  ;;  %v2900_v60 = vpop.f32.mrb[82].mxu0 }
 0x696   :  { %9908 = vst [vmem:[#allocation15_spill] sm:$0xff] %v8733_v57  ;;  %v8737_v36 = vadd.f32 %v2900_v60, %v2130_v52  ;;  %v2902_v42 = vpop.f32.mrb[83].mxu0  ;;  %v2889_v57 = vadd.f32 %v2888_v49, %v2134_v43 }
 0x697   :  { %9909 = vst [vmem:[#allocation29_spill] sm:$0xff] %v8735_v58  ;;  %v8739_v24 = vadd.f32 %v2902_v42, %v2134_v43 }
 0x698   :  { %9910 = vst [vmem:[#allocation16_spill] sm:$0xff] %v8737_v36 }
 0x699   :  { %9911 = vst [vmem:[#allocation30_spill] sm:$0xff] %v8739_v24 }
 0x6cb   :  { %v2992_v2 = vpop.f32.mrb[84].mxu0 }
 0x6cc   :  { %v8747_v19 = vadd.f32 %v2992_v2, %v2146_v1  ;;  %v2994_v38 = vpop.f32.mrb[85].mxu0  ;;  %v5812_v2 = vmul.f32 -1.442695, %v3306_v6 }
 0x6cd   :  { %v8749_v55 = vadd.f32 %v2994_v38, %v2150_v48  ;;  %v2996_v16 = vpop.f32.mrb[86].mxu0  ;;  %v6566_v38 = vpop.eup %6565 }
 0x6ce   :  { %9914 = vst [vmem:[#allocation17_spill] sm:$0xff] %v8747_v19  ;;  %v8751_v60 = vadd.f32 %v2996_v16, %v2146_v1  ;;  %v2998_v40 = vpop.f32.mrb[87].mxu0  ;;  %6567 = vpow2.f32 %v5812_v2  ;;  %v3608_v19 = vadd.f32 1.0, %v6566_v38 }
 0x6cf   :  { %9915 = vst [vmem:[#allocation31_spill] sm:$0xff] %v8749_v55  ;;  %v8753_v42 = vadd.f32 %v2998_v40, %v2150_v48 }
 0x6d0   :  { %9916 = vst [vmem:[#allocation18_spill] sm:$0xff] %v8751_v60  ;;  %v2887_v60 = vadd.f32 %v2886_v47, %v2130_v52  ;;  %6569 = vrcp.f32 %v3608_v19 }
 0x6d1   :  { %9917 = vst [vmem:[#allocation32_spill] sm:$0xff] %v8753_v42 }
 0x6d3   :  { %v3002_v24 = vpop.f32.mrb[88].mxu0 }
 0x6d4   :  { %v8755_v36 = vadd.f32 %v3002_v24, %v2146_v1  ;;  %v3004_v56 = vpop.f32.mrb[89].mxu0 }
 0x6d5   :  { %v8757_v58 = vadd.f32 %v3004_v56, %v2150_v48  ;;  %v3006_v39 = vpop.f32.mrb[90].mxu0 }
 0x6d6   :  { %9918 = vst [vmem:[#allocation5_spill] sm:$0xff] %v8755_v36  ;;  %v3008_v37 = vpop.f32.mrb[91].mxu0 }
 0x6d7   :  { %9919 = vst [vmem:[#allocation33_spill] sm:$0xff] %v8757_v58  ;;  %v3009_v20 = vadd.f32 %v3008_v37, %v2150_v48 }
 0x6d8   :  { %v6568_v55 = vpop.eup %6567 }
 0x6d9   :  { %v3602_v16 = vadd.f32 1.0, %v6568_v55 }
 0x6da   :  { %v6570_v5 = vpop.eup %6569 }
 0x6db   :  { %6571 = vrcp.f32 %v3602_v16  ;;  %v3618_v38 = vmul.f32 0.0, %v6570_v5 }
 0x6e5   :  { %v6572_v6 = vpop.eup %6571 }
 0x6eb   :  { %v3346_v40 = vpop.f32.mrb[92].mxu0 }
 0x6ec   :  { %v3347_v42 = vadd.f32 %v3346_v40, %v2887_v60  ;;  %v3348_v24 = vpop.f32.mrb[93].mxu0  ;;  %v3007_v60 = vadd.f32 %v3006_v39, %v2146_v1 }
 0x6ed   :  { %v3349_v36 = vadd.f32 %v3348_v24, %v2889_v57  ;;  %v3350_v56 = vpop.f32.mrb[94].mxu0 }
 0x6ee   :  { %6573 = vtanh.f32 %v3347_v42  ;;  %v3351_v58 = vpop.f32.mrb[95].mxu0 }
 0x6ef   :  { %v5814_v45 = vmul.f32 -1.442695, %v3349_v36 }
 0x6f1   :  { %6575 = vpow2.f32 %v5814_v45 }
 0x6f2   :  { %6577 = vpow2.f32 %v5816_v26  ;;  %v8852_v26 = vld [vmem:[%s9623_s10 + $0x64] ss:$16 sps:$4 sm:$0xff]  }
 0x6f3   :  { %6579 = vpow2.f32 %v5815_v33 }
 0x6f8   :  { %v6574_v2 = vpop.eup %6573 }
 0x6f9   :  { %v3619_v55 = vmul.f32 %v6574_v2, %v6572_v6  ;;  %v9922_v6 = vld [vmem:[#allocation6_spill] sm:$0xff]  ;;  %v9923_v2 = vld [vmem:[#allocation20_spill] sm:$0xff] }
 0x6fb   :  { %v6576_v47 = vpop.eup %6575  ;;  %v8759_v49 = vadd.f32 %v3619_v55, %v3618_v38  ;;  %v8859_v38 = vld [vmem:[%s9623_s10 + $0x60] ss:$16 sps:$4 sm:$0xff]  }
 0x6fc   :  { %v3615_v52 = vadd.f32 1.0, %v6576_v47  ;;  %v6578_v43 = vpop.eup %6577  ;;  %v9924_v55 = vld [vmem:[#allocation7_spill] sm:$0xff] }
 0x6fd   :  { %6581 = vtanh.f32 %v8759_v49  ;;  %v6580_v57 = vpop.eup %6579  ;;  %v3632_v36 = vadd.f32 1.0, %v6578_v43  ;;  %v8866_v47 = vld [vmem:[%s9623_s10 + $0x84] ss:$16 sps:$4 sm:$0xff]   ;;  %v8873_v43 = vld [vmem:[%s9623_s10 + $0x80] ss:$16 sps:$4 sm:$0xff]  }
 0x6fe   :  { %6583 = vrcp.f32 %v3615_v52  ;;  %v3626_v19 = vadd.f32 1.0, %v6580_v57  ;;  %v9925_v52 = vld [vmem:[#allocation21_spill] sm:$0xff]  ;;  %v9926_v57 = vld [vmem:[#allocation8_spill] sm:$0xff] }
 0x6ff   :  { %6585 = vrcp.f32 %v3632_v36  ;;  %v8887_v36 = vld [vmem:[%s9623_s10 + $0xa0] ss:$16 sps:$4 sm:$0xff]  }
 0x700   :  { %6587 = vrcp.f32 %v3626_v19  ;;  %v9928_v19 = vld [vmem:[#allocation9_spill] sm:$0xff] }
 0x707   :  { %v6582_v58 = vpop.eup %6581 }
 0x708   :  { %v6584_v45 = vpop.eup %6583 }
 0x709   :  { %v3622_v3 = vmul.f32 %v6584_v45, %v6582_v58  ;;  %v8880_v58 = vld [vmem:[%s9623_s10 + $0xa4] ss:$16 sps:$4 sm:$0xff]   ;;  %v9927_v45 = vld [vmem:[#allocation22_spill] sm:$0xff] }
 0x70b   :  { %v3592_v42 = vpop.f32.mrb[96].mxu0  ;;  %v8762_v16 = vpack.c.bf16 %v3622_v3, %v3622_v3  ;;  %v8894_v3 = vld [vmem:[%s9623_s10 + $0xc4] ss:$16 sps:$4 sm:$0xff]  }
 0x70c   :  { %v3593_v40 = vadd.f32 %v3592_v42, %v3007_v60  ;;  %v3594_v24 = vpop.f32.mrb[97].mxu0  ;;  %v9929_v60 = vld [vmem:[#allocation23_spill] sm:$0xff]  ;;  %v9931_v42 = vld [vmem:[#allocation10_spill] sm:$0xff] }
 0x70d   :  { %9920 = vst [vmem:[#allocation43_spill] sm:$0xff] %v8762_v16  ;;  %v3595_v33 = vadd.f32 %v3594_v24, %v3009_v20  ;;  %v3596_v56 = vpop.f32.mrb[98].mxu0  ;;  %3687 = vmatmul.mubr.bf16.vlgmr.msra.gmra.mrb[52].mxu1 %v8762_v16  ;;  %3728 = vmatmul.mubr.bf16.vlgmr.msra.gmra.mrb[100].mxu0 %v8762_v16  ;;  %v8901_v20 = vld [vmem:[%s9623_s10 + $0xc0] ss:$16 sps:$4 sm:$0xff]   ;;  %v9933_v24 = vld [vmem:[#allocation24_spill] sm:$0xff] }
 0x70e   :  { %6589 = vtanh.f32 %v3593_v40  ;;  %v3597_v5 = vpop.f32.mrb[99].mxu0  ;;  %3742 = vmatpush1.bf16.msra.mxu1 %v8222_v18  ;;  %3783 = vmatpush1.bf16.msra.mxu0 %v8575_v50  ;;  %v6586_v18 = vpop.eup %6585  ;;  %9930 = vst [vmem:[#allocation45_spill] sm:$0xff] %v8901_v20  ;;  %v8908_v40 = vld [vmem:[%s9623_s10 + $0xe4] ss:$16 sps:$4 sm:$0xff]  }
 0x70f   :  { %v5817_v1 = vmul.f32 -1.442695, %v3595_v33  ;;  %3743 = vmatprep.subr.bf16.mxu1 %v8228_v31  ;;  %3784 = vmatprep.subr.bf16.mxu0 %v8581_v61  ;;  %v6588_v31 = vpop.eup %6587  ;;  %v3642_v39 = vmul.f32 0.0, %v6586_v18  ;;  %9932 = vst [vmem:[#allocation52_spill] sm:$0xff] %v8908_v40  ;;  %v8915_v33 = vld [vmem:[%s9623_s10 + $0xe0] ss:$16 sps:$4 sm:$0xff]  }
 0x710   :  { %3773 = vmatprep.mubr.bf16.mxu1 %v9799_v21  ;;  %3814 = vmatprep.mubr.bf16.mxu0 %v9799_v21  ;;  %9934 = vst [vmem:[#allocation40_spill] sm:$0xff] %v8915_v33  ;;  %v9935_v56 = vld [vmem:[#allocation11_spill] sm:$0xff] }
 0x711   :  { %6591 = vpow2.f32 %v5817_v1  ;;  %v9936_v5 = vld [vmem:[#allocation19_spill] sm:$0xff] }
 0x712   :  { %3744 = vmatpush1.bf16.msra.mxu1 %v8241_v35  ;;  %3785 = vmatpush1.bf16.msra.mxu0 %v8588_v53  ;;  %v9937_v1 = vld [vmem:[#allocation39_spill] sm:$0xff] }
 0x713   :  { %3745 = vmatprep.subr.bf16.mxu1 %v8247_v22  ;;  %3786 = vmatprep.subr.bf16.mxu0 %v8595_v59 }
 0x716   :  { %3746 = vmatpush1.bf16.msra.mxu1 %v8260_v25  ;;  %3787 = vmatpush1.bf16.msra.mxu0 %v8601_v13 }
 0x717   :  { %3747 = vmatprep.subr.bf16.mxu1 %v8266_v41  ;;  %3788 = vmatprep.subr.bf16.mxu0 %v8607_v51 }
 0x718   :  { %v6590_v48 = vpop.eup %6589 }
 0x719   :  { %v3643_v37 = vmul.f32 %v6590_v48, %v6588_v31  ;;  %v9938_v48 = vld [vmem:[#allocation50_spill] sm:$0xff] }
 0x71a   :  { %3748 = vmatpush1.bf16.msra.mxu1 %v8278_v34  ;;  %3789 = vmatpush1.bf16.msra.mxu0 %v8613_v23 }
 0x71b   :  { %v6592_v35 = vpop.eup %6591  ;;  %v8782_v22 = vadd.f32 %v3643_v37, %v3642_v39  ;;  %3749 = vmatprep.subr.bf16.mxu1 %v8284_v30  ;;  %3790 = vmatprep.subr.bf16.mxu0 %v8619_v12  ;;  %v9939_v37 = vld [vmem:[#allocation14_spill] sm:$0xff] }
 0x71c   :  { %v3639_v25 = vadd.f32 1.0, %v6592_v35 }
 0x71d   :  { %6593 = vtanh.f32 %v8782_v22 }
 0x71e   :  { %6595 = vrcp.f32 %v3639_v25  ;;  %3750 = vmatpush1.bf16.msra.mxu1 %v8296_v4  ;;  %3791 = vmatpush1.bf16.msra.mxu0 %v8625_v54 }
 0x71f   :  { %3751 = vmatprep.subr.bf16.mxu1 %v8302_v44  ;;  %3792 = vmatprep.subr.bf16.mxu0 %v8631_v63  ;;  %v8806_v44 = vld [vmem:[%s9623_s10 + $0x4] ss:$16 sps:$4 sm:$0xff]  }
 0x722   :  { %3752 = vmatpush1.bf16.msra.mxu1 %v8314_v62  ;;  %3793 = vmatpush1.bf16.msra.mxu0 %v8637_v9  ;;  %v8815_v62 = vld [vmem:[%s9623_s10] ss:$16 sps:$4 sm:$0xff]  }
 0x723   :  { %3753 = vmatprep.subr.bf16.mxu1 %v8320_v14  ;;  %3794 = vmatprep.subr.bf16.mxu0 %v8643_v11  ;;  %v8822_v14 = vld [vmem:[%s9623_s10 + $0x24] ss:$16 sps:$4 sm:$0xff]  }
 0x726   :  { %3754 = vmatpush1.bf16.msra.mxu1 %v8332_v10  ;;  %3795 = vmatpush1.bf16.msra.mxu0 %v8649_v7  ;;  %v8831_v10 = vld [vmem:[%s9623_s10 + $0x20] ss:$16 sps:$4 sm:$0xff]  }
 0x727   :  { %v6594_v41 = vpop.eup %6593  ;;  %3755 = vmatprep.subr.bf16.mxu1 %v8338_v8  ;;  %3796 = vmatprep.subr.bf16.mxu0 %v8655_v0  ;;  %v8838_v8 = vld [vmem:[%s9623_s10 + $0x44] ss:$16 sps:$4 sm:$0xff]  }
 0x728   :  { %v6596_v34 = vpop.eup %6595 }
 0x729   :  { %v3646_v30 = vmul.f32 %v6596_v34, %v6594_v41  ;;  %v9940_v34 = vld [vmem:[#allocation59_spill] sm:$0xff] }
 0x72a   :  { %3756 = vmatpush1.bf16.msra.mxu1 %v8350_v29  ;;  %3797 = vmatpush1.bf16.msra.mxu0 %v8661_v27  ;;  %v8845_v29 = vld [vmem:[%s9623_s10 + $0x40] ss:$16 sps:$4 sm:$0xff]  }
 0x72b   :  { %v8801_v4 = vpack.c.bf16 %v3646_v30, %v3646_v30  ;;  %3878 = vmatprep.subr.bf16.mxu1 %v8806_v44  ;;  %3919 = vmatprep.subr.bf16.mxu0 %v8470_v17 }
 0x72d   :  { %9921 = vst [vmem:[#allocation51_spill] sm:$0xff] %v8801_v4  ;;  %3774 = vmatmul.mubr.bf16.vlgmr.msra.gmra.mrb[56].mxu1 %v8801_v4  ;;  %3815 = vmatmul.mubr.bf16.vlgmr.msra.gmra.mrb[104].mxu0 %v8801_v4  ;;  %v9941_v4 = vld [vmem:[#allocation28_spill] sm:$0xff] }
 0x72e   :  { %3879 = vmatpush1.bf16.msra.mxu1 %v8815_v62  ;;  %3920 = vmatpush1.bf16.msra.mxu0 %v8475_v46 }
 0x72f   :  { %3880 = vmatprep.subr.bf16.mxu1 %v8822_v14  ;;  %3921 = vmatprep.subr.bf16.mxu0 %v8481_v15 }
 0x730   :  { %3910 = vmatprep.mubr.bf16.mxu1 %v9799_v21  ;;  %3951 = vmatprep.mubr.bf16.mxu0 %v9799_v21 }
 0x732   :  { %3881 = vmatpush1.bf16.msra.mxu1 %v8831_v10  ;;  %3922 = vmatpush1.bf16.msra.mxu0 %v8489_v32 }
 0x733   :  { %3882 = vmatprep.subr.bf16.mxu1 %v8838_v8  ;;  %3923 = vmatprep.subr.bf16.mxu0 %v8495_v28 }
 0x736   :  { %3883 = vmatpush1.bf16.msra.mxu1 %v8845_v29  ;;  %3924 = vmatpush1.bf16.msra.mxu0 %v9922_v6 }
 0x737   :  { %3884 = vmatprep.subr.bf16.mxu1 %v8852_v26  ;;  %3925 = vmatprep.subr.bf16.mxu0 %v9923_v2 }
 0x73a   :  { %3885 = vmatpush1.bf16.msra.mxu1 %v8859_v38  ;;  %3926 = vmatpush1.bf16.msra.mxu0 %v9924_v55 }
 0x73b   :  { %3886 = vmatprep.subr.bf16.mxu1 %v8866_v47  ;;  %3927 = vmatprep.subr.bf16.mxu0 %v9925_v52 }
 0x73e   :  { %3887 = vmatpush1.bf16.msra.mxu1 %v8873_v43  ;;  %3928 = vmatpush1.bf16.msra.mxu0 %v9926_v57 }
 0x73f   :  { %3888 = vmatprep.subr.bf16.mxu1 %v8880_v58  ;;  %3929 = vmatprep.subr.bf16.mxu0 %v9927_v45 }
 0x742   :  { %3889 = vmatpush1.bf16.msra.mxu1 %v8887_v36  ;;  %3930 = vmatpush1.bf16.msra.mxu0 %v9928_v19 }
 0x743   :  { %3890 = vmatprep.subr.bf16.mxu1 %v8894_v3  ;;  %3931 = vmatprep.subr.bf16.mxu0 %v9929_v60 }
 0x746   :  { %3891 = vmatpush1.bf16.msra.mxu1 %v8901_v20  ;;  %3932 = vmatpush1.bf16.msra.mxu0 %v9931_v42 }
 0x747   :  { %3892 = vmatprep.subr.bf16.mxu1 %v8908_v40  ;;  %3933 = vmatprep.subr.bf16.mxu0 %v9933_v24 }
 0x74a   :  { %3893 = vmatpush1.bf16.msra.mxu1 %v8915_v33  ;;  %3934 = vmatpush1.bf16.msra.mxu0 %v9935_v56 }
 0x74b   :  { %3965 = vmatprep.subr.bf16.mxu1 %v9936_v5  ;;  %4006 = vmatprep.subr.bf16.mxu0 %v9937_v1 }
 0x7e0   :  { %v3688_v18 = vpop.f32.mrb[52].mxu1  ;;  %v3729_v31 = vpop.f32.mrb[100].mxu0 }
 0x7e1   :  { %v3689_v39 = vadd.f32 %v3688_v18, %v9938_v48  ;;  %v3730_v35 = vadd.f32 %v3729_v31, %v9939_v37  ;;  %v3690_v25 = vpop.f32.mrb[53].mxu1  ;;  %v3731_v41 = vpop.f32.mrb[101].mxu0 }
 0x7e2   :  { %v3691_v30 = vadd.f32 %v3690_v25, %v9940_v34  ;;  %v3732_v16 = vadd.f32 %v3731_v41, %v9941_v4  ;;  %v3692_v24 = vpop.f32.mrb[54].mxu1  ;;  %v3733_v33 = vpop.f32.mrb[102].mxu0  ;;  %v9942_v25 = vld [vmem:[#allocation25_spill] sm:$0xff]  ;;  %v9944_v34 = vld [vmem:[#allocation26_spill] sm:$0xff] }
 0x7e3   :  { %v5818_v40 = vmul.f32 -1.442695, %v3689_v39  ;;  %v3693_v56 = vpop.f32.mrb[55].mxu1  ;;  %v3734_v42 = vpop.f32.mrb[103].mxu0 }
 0x7e4   :  { %v5819_v5 = vmul.f32 -1.442695, %v3691_v30  ;;  %v5820_v1 = vmul.f32 -1.442695, %v3732_v16 }
 0x7e5   :  { %6597 = vpow2.f32 %v5818_v40 }
 0x7e6   :  { %6599 = vpow2.f32 %v5819_v5  ;;  %v9945_v5 = vld [vmem:[#allocation33_spill] sm:$0xff] }
 0x7e7   :  { %6601 = vpow2.f32 %v5820_v1  ;;  %v9943_v1 = vld [vmem:[#allocation5_spill] sm:$0xff] }
 0x7e8   :  { %6603 = vtanh.f32 %v3730_v35 }
 0x7ef   :  { %v6598_v20 = vpop.eup %6597 }
 0x7f0   :  { %v6600_v60 = vpop.eup %6599  ;;  %v3826_v18 = vadd.f32 1.0, %v6598_v20 }
 0x7f1   :  { %v3832_v31 = vadd.f32 1.0, %v6600_v60  ;;  %v6602_v48 = vpop.eup %6601 }
 0x7f2   :  { %6605 = vrcp.f32 %v3826_v18  ;;  %v6604_v37 = vpop.eup %6603  ;;  %v3839_v39 = vadd.f32 1.0, %v6602_v48 }
 0x7f3   :  { %6607 = vrcp.f32 %v3832_v31 }
 0x7f4   :  { %6609 = vrcp.f32 %v3839_v39 }
 0x7fc   :  { %v6606_v4 = vpop.eup %6605 }
 0x7fd   :  { %v6608_v24 = vpop.eup %6607  ;;  %v3843_v33 = vmul.f32 %v6606_v4, %v6604_v37 }
 0x7fe   :  { %v3842_v42 = vmul.f32 %v6608_v24, %v8759_v49 }
 0x800   :  { %v8926_v56 = vadd.f32 %v3843_v33, %v3842_v42  ;;  %v3775_v40 = vpop.f32.mrb[56].mxu1  ;;  %v3816_v16 = vpop.f32.mrb[104].mxu0 }
 0x801   :  { %v3776_v20 = vadd.f32 %v3775_v40, %v9942_v25  ;;  %v3817_v35 = vadd.f32 %v3816_v16, %v9943_v1  ;;  %v3777_v60 = vpop.f32.mrb[57].mxu1  ;;  %v3818_v41 = vpop.f32.mrb[105].mxu0 }
 0x802   :  { %v3778_v30 = vadd.f32 %v3777_v60, %v9944_v34  ;;  %v3819_v18 = vadd.f32 %v3818_v41, %v9945_v5  ;;  %v3779_v31 = vpop.f32.mrb[58].mxu1  ;;  %v3820_v37 = vpop.f32.mrb[106].mxu0  ;;  %6611 = vtanh.f32 %v8926_v56  ;;  %v8956_v34 = vld [vmem:[%s9624_s11 + $0x20] ss:$16 sps:$4 sm:$0xff]  }
 0x803   :  { %v5821_v49 = vmul.f32 -1.442695, %v3776_v20  ;;  %v3780_v48 = vpop.f32.mrb[59].mxu1  ;;  %v3821_v4 = vpop.f32.mrb[107].mxu0  ;;  %v8940_v20 = vld [vmem:[%s9624_s11] ss:$16 sps:$4 sm:$0xff]  }
 0x804   :  { %v5822_v24 = vmul.f32 -1.442695, %v3778_v30  ;;  %v6610_v33 = vpop.eup %6609  ;;  %v5823_v42 = vmul.f32 -1.442695, %v3819_v18  ;;  %v8963_v30 = vld [vmem:[%s9624_s11 + $0x44] ss:$16 sps:$4 sm:$0xff]  }
 0x805   :  { %6613 = vpow2.f32 %v5821_v49  ;;  %v8970_v18 = vld [vmem:[%s9624_s11 + $0x40] ss:$16 sps:$4 sm:$0xff]   ;;  %v8977_v37 = vld [vmem:[%s9624_s11 + $0x64] ss:$16 sps:$4 sm:$0xff]  }
 0x806   :  { %6615 = vpow2.f32 %v5822_v24 }
 0x807   :  { %6617 = vpow2.f32 %v5823_v42  ;;  %v8992_v42 = vld [vmem:[%s9624_s11 + $0x84] ss:$16 sps:$4 sm:$0xff]  }
 0x808   :  { %6619 = vtanh.f32 %v3817_v35  ;;  %v8947_v35 = vld [vmem:[%s9624_s11 + $0x24] ss:$16 sps:$4 sm:$0xff]  }
 0x80c   :  { %v6612_v39 = vpop.eup %6611 }
 0x80d   :  { %v3846_v40 = vmul.f32 %v6612_v39, %v6610_v33  ;;  %v8985_v39 = vld [vmem:[%s9624_s11 + $0x60] ss:$16 sps:$4 sm:$0xff]  }
 0x80f   :  { %v6614_v16 = vpop.eup %6613  ;;  %v8933_v25 = vpack.c.bf16 %v3846_v40, %v3846_v40 }
 0x810   :  { %v6616_v1 = vpop.eup %6615  ;;  %v3850_v60 = vadd.f32 1.0, %v6614_v16  ;;  %v9009_v16 = vld [vmem:[%s9624_s11 + $0xa4] ss:$16 sps:$4 sm:$0xff]  }
 0x811   :  { %v3856_v41 = vadd.f32 1.0, %v6616_v1  ;;  %3911 = vmatmul.mubr.bf16.vlgmr.msra.gmra.mrb[60].mxu1 %v8933_v25  ;;  %3952 = vmatmul.mubr.bf16.vlgmr.msra.gmra.mrb[108].mxu0 %v8933_v25  ;;  %v6618_v5 = vpop.eup %6617  ;;  %v9016_v1 = vld [vmem:[%s9624_s11 + $0xa0] ss:$16 sps:$4 sm:$0xff]  }
 0x812   :  { %6621 = vrcp.f32 %v3850_v60  ;;  %3966 = vmatpush1.bf16.msra.mxu1 %v8940_v20  ;;  %4007 = vmatpush1.bf16.msra.mxu0 %v8575_v50  ;;  %v6620_v31 = vpop.eup %6619  ;;  %v3863_v24 = vadd.f32 1.0, %v6618_v5  ;;  %v9023_v60 = vld [vmem:[%s9624_s11 + $0xc4] ss:$16 sps:$4 sm:$0xff]  }
 0x813   :  { %6623 = vrcp.f32 %v3856_v41  ;;  %3967 = vmatprep.subr.bf16.mxu1 %v8947_v35  ;;  %4008 = vmatprep.subr.bf16.mxu0 %v8581_v61  ;;  %v9030_v41 = vld [vmem:[%s9624_s11 + $0xc0] ss:$16 sps:$4 sm:$0xff]  }
 0x814   :  { %3997 = vmatprep.mubr.bf16.mxu1 %v9799_v21  ;;  %4038 = vmatprep.mubr.bf16.mxu0 %v9799_v21  ;;  %6625 = vrcp.f32 %v3863_v24 }
 0x816   :  { %3968 = vmatpush1.bf16.msra.mxu1 %v8956_v34  ;;  %4009 = vmatpush1.bf16.msra.mxu0 %v8588_v53 }
 0x817   :  { %3969 = vmatprep.subr.bf16.mxu1 %v8963_v30  ;;  %4010 = vmatprep.subr.bf16.mxu0 %v8595_v59 }
 0x81a   :  { %3970 = vmatpush1.bf16.msra.mxu1 %v8970_v18  ;;  %4011 = vmatpush1.bf16.msra.mxu0 %v8601_v13 }
 0x81b   :  { %3971 = vmatprep.subr.bf16.mxu1 %v8977_v37  ;;  %4012 = vmatprep.subr.bf16.mxu0 %v8607_v51 }
 0x81c   :  { %v6622_v49 = vpop.eup %6621 }
 0x81d   :  { %v6624_v48 = vpop.eup %6623  ;;  %v3867_v4 = vmul.f32 %v6622_v49, %v6620_v31  ;;  %v9037_v31 = vld [vmem:[%s9624_s11 + $0xe4] ss:$16 sps:$4 sm:$0xff]  }
 0x81e   :  { %v3866_v33 = vmul.f32 %v6624_v48, %v8782_v22  ;;  %3972 = vmatpush1.bf16.msra.mxu1 %v8985_v39  ;;  %4013 = vmatpush1.bf16.msra.mxu0 %v8613_v23  ;;  %v9001_v22 = vld [vmem:[%s9624_s11 + $0x80] ss:$16 sps:$4 sm:$0xff]   ;;  %v6626_v5 = vpop.eup %6625 }
 0x81f   :  { %3973 = vmatprep.subr.bf16.mxu1 %v8992_v42  ;;  %4014 = vmatprep.subr.bf16.mxu0 %v8619_v12 }
 0x820   :  { %v8996_v40 = vadd.f32 %v3867_v4, %v3866_v33  ;;  %v9044_v4 = vld [vmem:[%s9624_s11 + $0xe0] ss:$16 sps:$4 sm:$0xff]  }
 0x822   :  { %3974 = vmatpush1.bf16.msra.mxu1 %v9001_v22  ;;  %4015 = vmatpush1.bf16.msra.mxu0 %v8625_v54  ;;  %6627 = vtanh.f32 %v8996_v40 }
 0x823   :  { %3975 = vmatprep.subr.bf16.mxu1 %v9009_v16  ;;  %4016 = vmatprep.subr.bf16.mxu0 %v8631_v63 }
 0x826   :  { %3976 = vmatpush1.bf16.msra.mxu1 %v9016_v1  ;;  %4017 = vmatpush1.bf16.msra.mxu0 %v8637_v9 }
 0x827   :  { %3977 = vmatprep.subr.bf16.mxu1 %v9023_v60  ;;  %4018 = vmatprep.subr.bf16.mxu0 %v8643_v11 }
 0x82a   :  { %3978 = vmatpush1.bf16.msra.mxu1 %v9030_v41  ;;  %4019 = vmatpush1.bf16.msra.mxu0 %v8649_v7 }
 0x82b   :  { %3979 = vmatprep.subr.bf16.mxu1 %v9037_v31  ;;  %4020 = vmatprep.subr.bf16.mxu0 %v8655_v0 }
 0x82c   :  { %v6628_v49 = vpop.eup %6627 }
 0x82d   :  { %v3870_v48 = vmul.f32 %v6628_v49, %v6626_v5 }
 0x82e   :  { %3980 = vmatpush1.bf16.msra.mxu1 %v9044_v4  ;;  %4021 = vmatpush1.bf16.msra.mxu0 %v8661_v27 }
 0x82f   :  { %v9048_v24 = vpack.c.bf16 %v3870_v48, %v3870_v48  ;;  %4102 = vmatprep.subr.bf16.mxu1 %v8806_v44  ;;  %4143 = vmatprep.subr.bf16.mxu0 %v8470_v17  ;;  %v9946_v17 = vld [vmem:[#allocation23_spill] sm:$0xff]  ;;  %v9951_v44 = vld [vmem:[#allocation40_spill] sm:$0xff] }
 0x831   :  { %3998 = vmatmul.mubr.bf16.vlgmr.msra.gmra.mrb[64].mxu1 %v9048_v24  ;;  %4039 = vmatmul.mubr.bf16.vlgmr.msra.gmra.mrb[112].mxu0 %v9048_v24 }
 0x832   :  { %4103 = vmatpush1.bf16.msra.mxu1 %v8815_v62  ;;  %4144 = vmatpush1.bf16.msra.mxu0 %v8475_v46  ;;  %v9947_v46 = vld [vmem:[#allocation45_spill] sm:$0xff]  ;;  %v9952_v62 = vld [vmem:[#allocation11_spill] sm:$0xff] }
 0x833   :  { %4104 = vmatprep.subr.bf16.mxu1 %v8822_v14  ;;  %4145 = vmatprep.subr.bf16.mxu0 %v8481_v15  ;;  %v9948_v15 = vld [vmem:[#allocation10_spill] sm:$0xff]  ;;  %v6747_v14 = vld [vmem:[%s9624_s11 + $0x4] ss:$16 sps:$4 sm:$0xff]  }
 0x834   :  { %4134 = vmatprep.mubr.bf16.mxu1 %v9799_v21  ;;  %4175 = vmatprep.mubr.bf16.mxu0 %v9799_v21 }
 0x836   :  { %4105 = vmatpush1.bf16.msra.mxu1 %v8831_v10  ;;  %4146 = vmatpush1.bf16.msra.mxu0 %v8489_v32  ;;  %v9949_v32 = vld [vmem:[#allocation52_spill] sm:$0xff]  ;;  %v9953_v10 = vld [vmem:[#allocation39_spill] sm:$0xff] }
 0x837   :  { %4106 = vmatprep.subr.bf16.mxu1 %v8838_v8  ;;  %4147 = vmatprep.subr.bf16.mxu0 %v8495_v28  ;;  %v9950_v28 = vld [vmem:[#allocation24_spill] sm:$0xff] }
 0x83a   :  { %4107 = vmatpush1.bf16.msra.mxu1 %v8845_v29  ;;  %4148 = vmatpush1.bf16.msra.mxu0 %v9922_v6  ;;  %v9954_v6 = vld [vmem:[#allocation60_spill] sm:$0xff] }
 0x83b   :  { %4108 = vmatprep.subr.bf16.mxu1 %v8852_v26  ;;  %4149 = vmatprep.subr.bf16.mxu0 %v9923_v2  ;;  %v9955_v2 = vld [vmem:[#allocation15_spill] sm:$0xff] }
 0x83e   :  { %4109 = vmatpush1.bf16.msra.mxu1 %v8859_v38  ;;  %4150 = vmatpush1.bf16.msra.mxu0 %v9924_v55 }
 0x83f   :  { %4110 = vmatprep.subr.bf16.mxu1 %v8866_v47  ;;  %4151 = vmatprep.subr.bf16.mxu0 %v9925_v52  ;;  %v9956_v52 = vld [vmem:[#allocation12_spill] sm:$0xff] }
 0x842   :  { %4111 = vmatpush1.bf16.msra.mxu1 %v8873_v43  ;;  %4152 = vmatpush1.bf16.msra.mxu0 %v9926_v57  ;;  %v9957_v57 = vld [vmem:[#allocation29_spill] sm:$0xff] }
 0x843   :  { %4112 = vmatprep.subr.bf16.mxu1 %v8880_v58  ;;  %4153 = vmatprep.subr.bf16.mxu0 %v9927_v45 }
 0x846   :  { %4113 = vmatpush1.bf16.msra.mxu1 %v8887_v36  ;;  %4154 = vmatpush1.bf16.msra.mxu0 %v9928_v19 }
 0x847   :  { %4114 = vmatprep.subr.bf16.mxu1 %v8894_v3  ;;  %4155 = vmatprep.subr.bf16.mxu0 %v9946_v17 }
 0x84a   :  { %4115 = vmatpush1.bf16.msra.mxu1 %v9947_v46  ;;  %4156 = vmatpush1.bf16.msra.mxu0 %v9948_v15 }
 0x84b   :  { %4116 = vmatprep.subr.bf16.mxu1 %v9949_v32  ;;  %4157 = vmatprep.subr.bf16.mxu0 %v9950_v28 }
 0x84e   :  { %4117 = vmatpush1.bf16.msra.mxu1 %v9951_v44  ;;  %4158 = vmatpush1.bf16.msra.mxu0 %v9952_v62 }
 0x84f   :  { %4189 = vmatprep.subr.bf16.mxu1 %v6747_v14  ;;  %4230 = vmatprep.subr.bf16.mxu0 %v9953_v10 }
 0x8e4   :  { %v3912_v8 = vpop.f32.mrb[60].mxu1  ;;  %v3953_v29 = vpop.f32.mrb[108].mxu0 }
 0x8e5   :  { %v3913_v26 = vadd.f32 %v3912_v8, %v9954_v6  ;;  %v3954_v38 = vadd.f32 %v3953_v29, %v9955_v2  ;;  %v3914_v55 = vpop.f32.mrb[61].mxu1  ;;  %v3955_v47 = vpop.f32.mrb[109].mxu0  ;;  %v9958_v2 = vld [vmem:[#allocation44_spill] sm:$0xff] }
 0x8e6   :  { %v3915_v43 = vadd.f32 %v3914_v55, %v9956_v52  ;;  %v3956_v58 = vadd.f32 %v3955_v47, %v9957_v57  ;;  %v3916_v45 = vpop.f32.mrb[62].mxu1  ;;  %v3957_v36 = vpop.f32.mrb[110].mxu0  ;;  %v9959_v47 = vld [vmem:[#allocation18_spill] sm:$0xff] }
 0x8e7   :  { %v5824_v19 = vmul.f32 -1.442695, %v3913_v26  ;;  %v3917_v3 = vpop.f32.mrb[63].mxu1  ;;  %v3958_v33 = vpop.f32.mrb[111].mxu0  ;;  %v9960_v57 = vld [vmem:[#allocation46_spill] sm:$0xff]  ;;  %v9961_v45 = vld [vmem:[#allocation32_spill] sm:$0xff] }
 0x8e8   :  { %v5825_v5 = vmul.f32 -1.442695, %v3915_v43  ;;  %v5826_v49 = vmul.f32 -1.442695, %v3956_v58 }
 0x8e9   :  { %6629 = vpow2.f32 %v5824_v19 }
 0x8ea   :  { %6631 = vpow2.f32 %v5825_v5 }
 0x8eb   :  { %6633 = vpow2.f32 %v5826_v49 }
 0x8ec   :  { %6635 = vtanh.f32 %v3954_v38 }
 0x8f3   :  { %v6630_v48 = vpop.eup %6629 }
 0x8f4   :  { %v6632_v17 = vpop.eup %6631  ;;  %v4050_v46 = vadd.f32 1.0, %v6630_v48 }
 0x8f5   :  { %v4056_v15 = vadd.f32 1.0, %v6632_v17  ;;  %v6634_v32 = vpop.eup %6633 }
 0x8f6   :  { %6637 = vrcp.f32 %v4050_v46  ;;  %v6636_v28 = vpop.eup %6635  ;;  %v4063_v10 = vadd.f32 1.0, %v6634_v32 }
 0x8f7   :  { %6639 = vrcp.f32 %v4056_v15 }
 0x8f8   :  { %6641 = vrcp.f32 %v4063_v10  ;;  %v6261_v10 = vld [vmem:[%s9626_s12 + $0xa4] ss:$8 sps:$4 sm:$0xff]  }
 0x900   :  { %v6638_v44 = vpop.eup %6637 }
 0x901   :  { %v6640_v62 = vpop.eup %6639  ;;  %v4067_v14 = vmul.f32 %v6638_v44, %v6636_v28 }
 0x902   :  { %v4066_v8 = vmul.f32 %v6640_v62, %v8926_v56  ;;  %v6642_v48 = vpop.eup %6641 }
 0x904   :  { %v9095_v29 = vadd.f32 %v4067_v14, %v4066_v8  ;;  %v3999_v6 = vpop.f32.mrb[64].mxu1  ;;  %v4040_v26 = vpop.f32.mrb[112].mxu0  ;;  %v6259_v8 = vld [vmem:[%s9626_s12 + $0xa0] ss:$8 sps:$4 sm:$0xff]  }
 0x905   :  { %v4000_v55 = vadd.f32 %v3999_v6, %v9958_v2  ;;  %v4041_v38 = vadd.f32 %v4040_v26, %v9959_v47  ;;  %v4001_v52 = vpop.f32.mrb[65].mxu1  ;;  %v4042_v43 = vpop.f32.mrb[113].mxu0  ;;  %v6264_v6 = vld [vmem:[%s9626_s12 + $0xb4] ss:$8 sps:$4 sm:$0xff]   ;;  %v6262_v26 = vld [vmem:[%s9626_s12 + $0xb0] ss:$8 sps:$4 sm:$0xff]  }
 0x906   :  { %v4002_v58 = vadd.f32 %v4001_v52, %v9960_v57  ;;  %v4043_v36 = vadd.f32 %v4042_v43, %v9961_v45  ;;  %v4003_v19 = vpop.f32.mrb[66].mxu1  ;;  %v4044_v3 = vpop.f32.mrb[114].mxu0  ;;  %6643 = vtanh.f32 %v9095_v29  ;;  %v6267_v2 = vld [vmem:[%s9626_s12 + $0xc4] ss:$8 sps:$4 sm:$0xff]   ;;  %v6270_v47 = vld [vmem:[%s9626_s12 + $0xd4] ss:$8 sps:$4 sm:$0xff]  }
 0x907   :  { %v5827_v56 = vmul.f32 -1.442695, %v4000_v55  ;;  %v4004_v33 = vpop.f32.mrb[67].mxu1  ;;  %v4045_v5 = vpop.f32.mrb[115].mxu0  ;;  %v6265_v55 = vld [vmem:[%s9626_s12 + $0xc0] ss:$8 sps:$4 sm:$0xff]  }
 0x908   :  { %v5828_v49 = vmul.f32 -1.442695, %v4002_v58  ;;  %v5829_v46 = vmul.f32 -1.442695, %v4043_v36  ;;  %v6273_v52 = vld [vmem:[%s9626_s12 + $0xe4] ss:$8 sps:$4 sm:$0xff]  }
 0x909   :  { %6645 = vpow2.f32 %v5827_v56  ;;  %v6271_v43 = vld [vmem:[%s9626_s12 + $0xe0] ss:$8 sps:$4 sm:$0xff]   ;;  %v6276_v57 = vld [vmem:[%s9626_s12 + $0xf4] ss:$8 sps:$4 sm:$0xff]   ;;  %v6274_v58 = vld [vmem:[%s9626_s12 + $0xf0] ss:$8 sps:$4 sm:$0xff]  }
 0x90a   :  { %6647 = vpow2.f32 %v5828_v49  ;;  %v6279_v45 = vld [vmem:[%s9626_s12 + $0x104] ss:$8 sps:$4 sm:$0xff]   ;;  %v9963_v33 = vld [vmem:[#allocation16_spill] sm:$0xff] }
 0x90b   :  { %6649 = vpow2.f32 %v5829_v46  ;;  %v9962_v3 = vld [vmem:[#allocation13_spill] sm:$0xff] }
 0x90c   :  { %6651 = vtanh.f32 %v4041_v38  ;;  %v6268_v38 = vld [vmem:[%s9626_s12 + $0xd0] ss:$8 sps:$4 sm:$0xff]  }
 0x910   :  { %v6644_v17 = vpop.eup %6643 }
 0x911   :  { %v4070_v15 = vmul.f32 %v6644_v17, %v6642_v48  ;;  %v9964_v17 = vld [vmem:[#allocation27_spill] sm:$0xff] }
 0x913   :  { %v6646_v32 = vpop.eup %6645  ;;  %v9102_v28 = vpack.c.bf16 %v4070_v15, %v4070_v15  ;;  %v9965_v15 = vld [vmem:[#allocation30_spill] sm:$0xff] }
 0x914   :  { %v6648_v44 = vpop.eup %6647  ;;  %v4074_v62 = vadd.f32 1.0, %v6646_v32 }
 0x915   :  { %v4080_v14 = vadd.f32 1.0, %v6648_v44  ;;  %4135 = vmatmul.mubr.bf16.vlgmr.msra.gmra.mrb[68].mxu1 %v9102_v28  ;;  %4176 = vmatmul.mubr.bf16.vlgmr.msra.gmra.mrb[116].mxu0 %v9102_v28 }
 0x916   :  { %6653 = vrcp.f32 %v4074_v62  ;;  %4190 = vmatpush1.bf16.msra.mxu1 %v8940_v20  ;;  %4231 = vmatpush1.bf16.msra.mxu0 %v8575_v50  ;;  %v6650_v20 = vpop.eup %6649 }
 0x917   :  { %6655 = vrcp.f32 %v4080_v14  ;;  %4191 = vmatprep.subr.bf16.mxu1 %v8947_v35  ;;  %4232 = vmatprep.subr.bf16.mxu0 %v8581_v61  ;;  %v6652_v50 = vpop.eup %6651 }
 0x918   :  { %4221 = vmatprep.mubr.bf16.mxu1 %v9799_v21  ;;  %4262 = vmatprep.mubr.bf16.mxu0 %v9799_v21 }
 0x91a   :  { %4192 = vmatpush1.bf16.msra.mxu1 %v8956_v34  ;;  %4233 = vmatpush1.bf16.msra.mxu0 %v8588_v53  ;;  %v4087_v34 = vadd.f32 1.0, %v6650_v20 }
 0x91b   :  { %4193 = vmatprep.subr.bf16.mxu1 %v8963_v30  ;;  %4234 = vmatprep.subr.bf16.mxu0 %v8595_v59  ;;  %v6238_v30 = vld [vmem:[%s9626_s12 + $0x30] ss:$8 sps:$4 sm:$0xff]  }
 0x91c   :  { %6657 = vrcp.f32 %v4087_v34 }
 0x91e   :  { %4194 = vmatpush1.bf16.msra.mxu1 %v8970_v18  ;;  %4235 = vmatpush1.bf16.msra.mxu0 %v8601_v13  ;;  %v6243_v18 = vld [vmem:[%s9626_s12 + $0x44] ss:$8 sps:$4 sm:$0xff]  }
 0x91f   :  { %4195 = vmatprep.subr.bf16.mxu1 %v8977_v37  ;;  %4236 = vmatprep.subr.bf16.mxu0 %v8607_v51  ;;  %v6241_v37 = vld [vmem:[%s9626_s12 + $0x40] ss:$8 sps:$4 sm:$0xff]  }
 0x920   :  { %v6654_v61 = vpop.eup %6653 }
 0x921   :  { %v6656_v21 = vpop.eup %6655  ;;  %v4091_v35 = vmul.f32 %v6654_v61, %v6652_v50 }
 0x922   :  { %v4090_v53 = vmul.f32 %v6656_v21, %v8996_v40  ;;  %4196 = vmatpush1.bf16.msra.mxu1 %v8985_v39  ;;  %4237 = vmatpush1.bf16.msra.mxu0 %v8613_v23  ;;  %v6246_v39 = vld [vmem:[%s9626_s12 + $0x54] ss:$8 sps:$4 sm:$0xff]   ;;  %v6249_v40 = vld [vmem:[%s9626_s12 + $0x64] ss:$8 sps:$4 sm:$0xff]  }
 0x923   :  { %4197 = vmatprep.subr.bf16.mxu1 %v8992_v42  ;;  %4238 = vmatprep.subr.bf16.mxu0 %v8619_v12  ;;  %v6244_v42 = vld [vmem:[%s9626_s12 + $0x50] ss:$8 sps:$4 sm:$0xff]  }
 0x924   :  { %v9125_v59 = vadd.f32 %v4091_v35, %v4090_v53 }
 0x926   :  { %4198 = vmatpush1.bf16.msra.mxu1 %v9001_v22  ;;  %4239 = vmatpush1.bf16.msra.mxu0 %v8625_v54  ;;  %6659 = vtanh.f32 %v9125_v59  ;;  %v6658_v13 = vpop.eup %6657  ;;  %v6231_v54 = vld [vmem:[%s9626_s12 + $0x4] ss:$8 sps:$4 sm:$0xff]   ;;  %v6247_v22 = vld [vmem:[%s9626_s12 + $0x60] ss:$8 sps:$4 sm:$0xff]  }
 0x927   :  { %4199 = vmatprep.subr.bf16.mxu1 %v9009_v16  ;;  %4240 = vmatprep.subr.bf16.mxu0 %v8631_v63  ;;  %v6229_v63 = vld [vmem:[%s9626_s12] ss:$8 sps:$4 sm:$0xff]   ;;  %v6252_v16 = vld [vmem:[%s9626_s12 + $0x74] ss:$8 sps:$4 sm:$0xff]  }
 0x92a   :  { %4200 = vmatpush1.bf16.msra.mxu1 %v9016_v1  ;;  %4241 = vmatpush1.bf16.msra.mxu0 %v8637_v9  ;;  %v6234_v9 = vld [vmem:[%s9626_s12 + $0x14] ss:$8 sps:$4 sm:$0xff]   ;;  %v6250_v1 = vld [vmem:[%s9626_s12 + $0x70] ss:$8 sps:$4 sm:$0xff]  }
 0x92b   :  { %4201 = vmatprep.subr.bf16.mxu1 %v9023_v60  ;;  %4242 = vmatprep.subr.bf16.mxu0 %v8643_v11  ;;  %v6232_v11 = vld [vmem:[%s9626_s12 + $0x10] ss:$8 sps:$4 sm:$0xff]   ;;  %v6255_v60 = vld [vmem:[%s9626_s12 + $0x84] ss:$8 sps:$4 sm:$0xff]  }
 0x92e   :  { %4202 = vmatpush1.bf16.msra.mxu1 %v9030_v41  ;;  %4243 = vmatpush1.bf16.msra.mxu0 %v8649_v7  ;;  %v6237_v7 = vld [vmem:[%s9626_s12 + $0x24] ss:$8 sps:$4 sm:$0xff]   ;;  %v6253_v41 = vld [vmem:[%s9626_s12 + $0x80] ss:$8 sps:$4 sm:$0xff]  }
 0x92f   :  { %4203 = vmatprep.subr.bf16.mxu1 %v9037_v31  ;;  %4244 = vmatprep.subr.bf16.mxu0 %v8655_v0  ;;  %v6235_v0 = vld [vmem:[%s9626_s12 + $0x20] ss:$8 sps:$4 sm:$0xff]   ;;  %v6258_v31 = vld [vmem:[%s9626_s12 + $0x94] ss:$8 sps:$4 sm:$0xff]  }
 0x930   :  { %v6660_v51 = vpop.eup %6659 }
 0x931   :  { %v4094_v23 = vmul.f32 %v6660_v51, %v6658_v13 }
 0x932   :  { %4204 = vmatpush1.bf16.msra.mxu1 %v9044_v4  ;;  %4245 = vmatpush1.bf16.msra.mxu0 %v8661_v27  ;;  %v6240_v27 = vld [vmem:[%s9626_s12 + $0x34] ss:$8 sps:$4 sm:$0xff]   ;;  %v6256_v4 = vld [vmem:[%s9626_s12 + $0x90] ss:$8 sps:$4 sm:$0xff]  }
 0x933   :  { %v9142_v12 = vpack.c.bf16 %v4094_v23, %v4094_v23  ;;  %5105 = vmatprep.subr.bf16.mxu1 %v6231_v54 }
 0x935   :  { %4222 = vmatmul.mubr.bf16.vlgmr.msra.gmra.mrb[72].mxu1 %v9142_v12  ;;  %4263 = vmatmul.mubr.bf16.vlgmr.msra.gmra.mrb[120].mxu0 %v9142_v12 }
 0x936   :  { %5106 = vmatpush1.bf16.msra.mxu1 %v6229_v63 }
 0x937   :  { %5107 = vmatprep.subr.bf16.mxu1 %v6234_v9 }
 0x93a   :  { %5108 = vmatpush1.bf16.msra.mxu1 %v6232_v11 }
 0x93b   :  { %5109 = vmatprep.subr.bf16.mxu1 %v6237_v7 }
 0x93e   :  { %5110 = vmatpush1.bf16.msra.mxu1 %v6235_v0 }
 0x93f   :  { %5111 = vmatprep.subr.bf16.mxu1 %v6240_v27 }
 0x942   :  { %5112 = vmatpush1.bf16.msra.mxu1 %v6238_v30 }
 0x943   :  { %5113 = vmatprep.subr.bf16.mxu1 %v6243_v18  ;;  %v9966_v18 = vld [vmem:[#allocation49_spill] sm:$0xff] }
 0x946   :  { %5114 = vmatpush1.bf16.msra.mxu1 %v6241_v37 }
 0x947   :  { %5115 = vmatprep.subr.bf16.mxu1 %v6246_v39  ;;  %v9967_v39 = vld [vmem:[#allocation17_spill] sm:$0xff] }
 0x94a   :  { %5116 = vmatpush1.bf16.msra.mxu1 %v6244_v42 }
 0x94b   :  { %5117 = vmatprep.subr.bf16.mxu1 %v6249_v40 }
 0x94e   :  { %5118 = vmatpush1.bf16.msra.mxu1 %v6247_v22 }
 0x94f   :  { %5119 = vmatprep.subr.bf16.mxu1 %v6252_v16  ;;  %v9968_v16 = vld [vmem:[#allocation41_spill] sm:$0xff] }
 0x952   :  { %5120 = vmatpush1.bf16.msra.mxu1 %v6250_v1 }
 0x953   :  { %5121 = vmatprep.subr.bf16.mxu1 %v6255_v60  ;;  %v9969_v60 = vld [vmem:[#allocation31_spill] sm:$0xff] }
 0x956   :  { %5122 = vmatpush1.bf16.msra.mxu1 %v6253_v41 }
 0x957   :  { %5123 = vmatprep.subr.bf16.mxu1 %v6258_v31 }
 0x95a   :  { %5124 = vmatpush1.bf16.msra.mxu1 %v6256_v4 }
 0x95b   :  { %5125 = vmatprep.subr.bf16.mxu1 %v6261_v10 }
 0x95e   :  { %5126 = vmatpush1.bf16.msra.mxu1 %v6259_v8 }
 0x95f   :  { %5127 = vmatprep.subr.bf16.mxu1 %v6264_v6 }
 0x962   :  { %5128 = vmatpush1.bf16.msra.mxu1 %v6262_v26 }
 0x963   :  { %5129 = vmatprep.subr.bf16.mxu1 %v6267_v2 }
 0x966   :  { %5130 = vmatpush1.bf16.msra.mxu1 %v6265_v55 }
 0x967   :  { %5131 = vmatprep.subr.bf16.mxu1 %v6270_v47 }
 0x96a   :  { %5132 = vmatpush1.bf16.msra.mxu1 %v6268_v38 }
 0x96b   :  { %5133 = vmatprep.subr.bf16.mxu1 %v6273_v52 }
 0x96e   :  { %5134 = vmatpush1.bf16.msra.mxu1 %v6271_v43 }
 0x96f   :  { %5135 = vmatprep.subr.bf16.mxu1 %v6276_v57 }
 0x972   :  { %5136 = vmatpush1.bf16.msra.mxu1 %v6274_v58 }
 0x973   :  { %5146 = vmatprep.subr.bf16.mxu1 %v6279_v45 }
 0x9e8   :  { %v4136_v36 = vpop.f32.mrb[68].mxu1  ;;  %v4177_v19 = vpop.f32.mrb[116].mxu0 }
 0x9e9   :  { %v4137_v56 = vadd.f32 %v4136_v36, %v9962_v3  ;;  %v4178_v5 = vadd.f32 %v4177_v19, %v9963_v33  ;;  %v4138_v49 = vpop.f32.mrb[69].mxu1  ;;  %v4179_v48 = vpop.f32.mrb[117].mxu0 }
 0x9ea   :  { %v4139_v46 = vadd.f32 %v4138_v49, %v9964_v17  ;;  %v4180_v32 = vadd.f32 %v4179_v48, %v9965_v15  ;;  %v4140_v44 = vpop.f32.mrb[70].mxu1  ;;  %v4181_v62 = vpop.f32.mrb[118].mxu0  ;;  %v6277_v15 = vld [vmem:[%s9626_s12 + $0x100] ss:$8 sps:$4 sm:$0xff]  }
 0x9eb   :  { %v5830_v14 = vmul.f32 -1.442695, %v4137_v56  ;;  %v4141_v20 = vpop.f32.mrb[71].mxu1  ;;  %v4182_v50 = vpop.f32.mrb[119].mxu0  ;;  %v9970_v44 = vld [vmem:[#allocation43_spill] sm:$0xff] }
 0x9ec   :  { %v5831_v61 = vmul.f32 -1.442695, %v4139_v46  ;;  %v5832_v21 = vmul.f32 -1.442695, %v4180_v32  ;;  %v6282_v32 = vld [vmem:[%s9626_s12 + $0x114] ss:$8 sps:$4 sm:$0xff]  }
 0x9ed   :  { %6661 = vpow2.f32 %v5830_v14  ;;  %v6285_v62 = vld [vmem:[%s9626_s12 + $0x124] ss:$8 sps:$4 sm:$0xff]   ;;  %v6283_v14 = vld [vmem:[%s9626_s12 + $0x120] ss:$8 sps:$4 sm:$0xff]   ;;  %v6288_v20 = vld [vmem:[%s9626_s12 + $0x134] ss:$8 sps:$4 sm:$0xff]  }
 0x9ee   :  { %6663 = vpow2.f32 %v5831_v61  ;;  %v6291_v50 = vld [vmem:[%s9626_s12 + $0x144] ss:$8 sps:$4 sm:$0xff]   ;;  %v6289_v61 = vld [vmem:[%s9626_s12 + $0x140] ss:$8 sps:$4 sm:$0xff]  }
 0x9ef   :  { %6665 = vpow2.f32 %v5832_v21  ;;  %v6294_v21 = vld [vmem:[%s9626_s12 + $0x154] ss:$8 sps:$4 sm:$0xff]  }
 0x9f0   :  { %6667 = vtanh.f32 %v4178_v5 }
 0x9f7   :  { %v6662_v35 = vpop.eup %6661 }
 0x9f8   :  { %v6664_v34 = vpop.eup %6663  ;;  %v4274_v53 = vadd.f32 1.0, %v6662_v35  ;;  %v6292_v35 = vld [vmem:[%s9626_s12 + $0x150] ss:$8 sps:$4 sm:$0xff]  }
 0x9f9   :  { %v4280_v13 = vadd.f32 1.0, %v6664_v34  ;;  %v6666_v51 = vpop.eup %6665  ;;  %v6297_v34 = vld [vmem:[%s9626_s12 + $0x164] ss:$8 sps:$4 sm:$0xff]  }
 0x9fa   :  { %6669 = vrcp.f32 %v4274_v53  ;;  %v6668_v23 = vpop.eup %6667  ;;  %v4287_v11 = vadd.f32 1.0, %v6666_v51  ;;  %v6295_v53 = vld [vmem:[%s9626_s12 + $0x160] ss:$8 sps:$4 sm:$0xff]   ;;  %v6298_v51 = vld [vmem:[%s9626_s12 + $0x170] ss:$8 sps:$4 sm:$0xff]  }
 0x9fb   :  { %6671 = vrcp.f32 %v4280_v13  ;;  %v6300_v13 = vld [vmem:[%s9626_s12 + $0x174] ss:$8 sps:$4 sm:$0xff]  }
 0x9fc   :  { %6673 = vrcp.f32 %v4287_v11  ;;  %v6309_v11 = vld [vmem:[%s9626_s12 + $0x1a4] ss:$8 sps:$4 sm:$0xff]  }
 0xa04   :  { %v6670_v54 = vpop.eup %6669 }
 0xa05   :  { %v6672_v63 = vpop.eup %6671  ;;  %v4291_v9 = vmul.f32 %v6670_v54, %v6668_v23  ;;  %v6303_v23 = vld [vmem:[%s9626_s12 + $0x184] ss:$8 sps:$4 sm:$0xff]   ;;  %v6301_v54 = vld [vmem:[%s9626_s12 + $0x180] ss:$8 sps:$4 sm:$0xff]  }
 0xa06   :  { %v4290_v7 = vmul.f32 %v6672_v63, %v9095_v29  ;;  %v6674_v26 = vpop.eup %6673  ;;  %v6306_v63 = vld [vmem:[%s9626_s12 + $0x194] ss:$8 sps:$4 sm:$0xff]  }
 0xa08   :  { %v4292_v0 = vadd.f32 %v4291_v9, %v4290_v7  ;;  %v4223_v27 = vpop.f32.mrb[72].mxu1  ;;  %v4264_v30 = vpop.f32.mrb[120].mxu0  ;;  %v6304_v9 = vld [vmem:[%s9626_s12 + $0x190] ss:$8 sps:$4 sm:$0xff]   ;;  %v6307_v7 = vld [vmem:[%s9626_s12 + $0x1a0] ss:$8 sps:$4 sm:$0xff]  }
 0xa09   :  { %v4224_v37 = vadd.f32 %v4223_v27, %v9966_v18  ;;  %v4265_v42 = vadd.f32 %v4264_v30, %v9967_v39  ;;  %v4225_v40 = vpop.f32.mrb[73].mxu1  ;;  %v4266_v22 = vpop.f32.mrb[121].mxu0  ;;  %v6310_v27 = vld [vmem:[%s9626_s12 + $0x1b0] ss:$8 sps:$4 sm:$0xff]   ;;  %v6315_v30 = vld [vmem:[%s9626_s12 + $0x1c4] ss:$8 sps:$4 sm:$0xff]  }
 0xa0a   :  { %6675 = vtanh.f32 %v4292_v0  ;;  %v4226_v1 = vadd.f32 %v4225_v40, %v9968_v16  ;;  %v4267_v41 = vadd.f32 %v4266_v22, %v9969_v60  ;;  %v4227_v31 = vpop.f32.mrb[74].mxu1  ;;  %v4268_v4 = vpop.f32.mrb[122].mxu0  ;;  %v6312_v0 = vld [vmem:[%s9626_s12 + $0x1b4] ss:$8 sps:$4 sm:$0xff]   ;;  %v6313_v18 = vld [vmem:[%s9626_s12 + $0x1c0] ss:$8 sps:$4 sm:$0xff]  }
 0xa0b   :  { %v5833_v10 = vmul.f32 -1.442695, %v4224_v37  ;;  %v4228_v8 = vpop.f32.mrb[75].mxu1  ;;  %v4269_v29 = vpop.f32.mrb[123].mxu0  ;;  %v6318_v37 = vld [vmem:[%s9626_s12 + $0x1d4] ss:$8 sps:$4 sm:$0xff]  }
 0xa0c   :  { %v5834_v6 = vmul.f32 -1.442695, %v4226_v1  ;;  %v5835_v55 = vmul.f32 -1.442695, %v4267_v41  ;;  %v6316_v39 = vld [vmem:[%s9626_s12 + $0x1d0] ss:$8 sps:$4 sm:$0xff]  }
 0xa0d   :  { %6677 = vpow2.f32 %v5833_v10  ;;  %v6319_v40 = vld [vmem:[%s9626_s12 + $0x1e0] ss:$8 sps:$4 sm:$0xff]   ;;  %v6324_v22 = vld [vmem:[%s9626_s12 + $0x1f4] ss:$8 sps:$4 sm:$0xff]   ;;  %v6322_v16 = vld [vmem:[%s9626_s12 + $0x1f0] ss:$8 sps:$4 sm:$0xff]  }
 0xa0e   :  { %6679 = vpow2.f32 %v5834_v6  ;;  %v6327_v1 = vld [vmem:[%s9626_s12 + $0x204] ss:$8 sps:$4 sm:$0xff]   ;;  %v6325_v60 = vld [vmem:[%s9626_s12 + $0x200] ss:$8 sps:$4 sm:$0xff]   ;;  %v6330_v41 = vld [vmem:[%s9626_s12 + $0x214] ss:$8 sps:$4 sm:$0xff]  }
 0xa0f   :  { %6681 = vpow2.f32 %v5835_v55  ;;  %v6328_v31 = vld [vmem:[%s9626_s12 + $0x210] ss:$8 sps:$4 sm:$0xff]   ;;  %v6333_v4 = vld [vmem:[%s9626_s12 + $0x224] ss:$8 sps:$4 sm:$0xff]   ;;  %v6331_v8 = vld [vmem:[%s9626_s12 + $0x220] ss:$8 sps:$4 sm:$0xff]  }
 0xa10   :  { %6683 = vtanh.f32 %v4265_v42  ;;  %v6321_v42 = vld [vmem:[%s9626_s12 + $0x1e4] ss:$8 sps:$4 sm:$0xff]   ;;  %v6425_v6 = vld [vmem:[%s9627_s15 + $0x50] sm:$0xff]  }
 0xa11   :  { %v6421_v10 = vld [vmem:[%s9627_s15 + $0x40] sm:$0xff]   ;;  %v6423_v29 = vld [vmem:[%s9627_s15 + $0x48] sm:$0xff]  }
 0xa12   :  { %5986 = vmatprep.subr.bf16.mxu0 %v6421_v10  ;;  %v6339_v55 = vld [vmem:[%s9626_s12 + $0x244] ss:$8 sps:$4 sm:$0xff]  }
 0xa13   :  { %v6411_v10 = vld [vmem:[%s9626_s12 + $0x3c4] ss:$8 sps:$4 sm:$0xff]  }
 0xa14   :  { %v6676_v2 = vpop.eup %6675 }
 0xa15   :  { %v9254_v47 = vmul.f32 %v6676_v2, %v6674_v26  ;;  %v6336_v26 = vld [vmem:[%s9626_s12 + $0x234] ss:$8 sps:$4 sm:$0xff]   ;;  %v6334_v2 = vld [vmem:[%s9626_s12 + $0x230] ss:$8 sps:$4 sm:$0xff]  }
 0xa17   :  { %v6678_v38 = vpop.eup %6677 }
 0xa18   :  { %v6680_v52 = vpop.eup %6679  ;;  %v4298_v43 = vadd.f32 1.0, %v6678_v38  ;;  %v6426_v38 = vld [vmem:[%s9627_s15 + $0x10] sm:$0xff]  }
 0xa19   :  { %v4304_v57 = vadd.f32 1.0, %v6680_v52  ;;  %v6682_v58 = vpop.eup %6681  ;;  %v6427_v52 = vld [vmem:[%s9627_s15 + $0x58] sm:$0xff]  }
 0xa1a   :  { %6685 = vrcp.f32 %v4298_v43  ;;  %v6684_v45 = vpop.eup %6683  ;;  %v4311_v56 = vadd.f32 1.0, %v6682_v58  ;;  %v6428_v43 = vld [vmem:[%s9627_s15 + $0x18] sm:$0xff]   ;;  %v6429_v58 = vld [vmem:[%s9627_s15 + $0x60] sm:$0xff]  }
 0xa1b   :  { %6687 = vrcp.f32 %v4304_v57  ;;  %v6337_v57 = vld [vmem:[%s9626_s12 + $0x240] ss:$8 sps:$4 sm:$0xff]  }
 0xa1c   :  { %6689 = vrcp.f32 %v4311_v56  ;;  %v6345_v56 = vld [vmem:[%s9626_s12 + $0x264] ss:$8 sps:$4 sm:$0xff]  }
 0xa24   :  { %v6686_v36 = vpop.eup %6685 }
 0xa25   :  { %v6688_v19 = vpop.eup %6687  ;;  %v4315_v3 = vmul.f32 %v6686_v36, %v6684_v45  ;;  %v6342_v45 = vld [vmem:[%s9626_s12 + $0x254] ss:$8 sps:$4 sm:$0xff]   ;;  %v6430_v36 = vld [vmem:[%s9627_s15 + $0x20] sm:$0xff]  }
 0xa26   :  { %v4314_v33 = vmul.f32 %v6688_v19, %v9125_v59  ;;  %v6690_v49 = vpop.eup %6689  ;;  %v6280_v59 = vld [vmem:[%s9626_s12 + $0x110] ss:$8 sps:$4 sm:$0xff]  }
 0xa27   :  { %v6340_v19 = vld [vmem:[%s9626_s12 + $0x250] ss:$8 sps:$4 sm:$0xff]  }
 0xa28   :  { %v4316_v5 = vadd.f32 %v4315_v3, %v4314_v33  ;;  %v6431_v3 = vld [vmem:[%s9627_s15 + $0x68] sm:$0xff]  }
 0xa29   :  { %v6343_v33 = vld [vmem:[%s9626_s12 + $0x260] ss:$8 sps:$4 sm:$0xff]  }
 0xa2a   :  { %6691 = vtanh.f32 %v4316_v5  ;;  %v6348_v5 = vld [vmem:[%s9626_s12 + $0x274] ss:$8 sps:$4 sm:$0xff]  }
 0xa34   :  { %v6692_v48 = vpop.eup %6691 }
 0xa35   :  { %v4318_v17 = vmul.f32 %v6692_v48, %v6690_v49  ;;  %v6346_v49 = vld [vmem:[%s9626_s12 + $0x270] ss:$8 sps:$4 sm:$0xff]   ;;  %v6351_v48 = vld [vmem:[%s9626_s12 + $0x284] ss:$8 sps:$4 sm:$0xff]  }
 0xa37   :  { %v4330_v46 = vpack.c.bf16 %v4318_v17, %v4318_v17  ;;  %v6349_v17 = vld [vmem:[%s9626_s12 + $0x280] ss:$8 sps:$4 sm:$0xff]  }
 0xa39   :  { %5137 = vmatprep.mubr.bf16.mxu1 %v4330_v46  ;;  %v6354_v46 = vld [vmem:[%s9626_s12 + $0x294] ss:$8 sps:$4 sm:$0xff]  }
 0xa3a   :  { %5138 = vmatmul.mubr.bf16.vlgmr.msra.gmra.mrb[76].mxu1 %v9970_v44  ;;  %v6355_v44 = vld [vmem:[%s9626_s12 + $0x2a0] ss:$8 sps:$4 sm:$0xff]  }
 0xa3b   :  { %5147 = vmatpush1.bf16.msra.mxu1 %v6277_v15  ;;  %5178 = vmatprep.mubr.bf16.mxu1 %v9142_v12  ;;  %v6286_v12 = vld [vmem:[%s9626_s12 + $0x130] ss:$8 sps:$4 sm:$0xff]  }
 0xa3c   :  { %5148 = vmatprep.subr.bf16.mxu1 %v6282_v32  ;;  %v6352_v15 = vld [vmem:[%s9626_s12 + $0x290] ss:$8 sps:$4 sm:$0xff]   ;;  %v6357_v32 = vld [vmem:[%s9626_s12 + $0x2a4] ss:$8 sps:$4 sm:$0xff]  }
 0xa3f   :  { %5149 = vmatpush1.bf16.msra.mxu1 %v6280_v59  ;;  %v6360_v59 = vld [vmem:[%s9626_s12 + $0x2b4] ss:$8 sps:$4 sm:$0xff]  }
 0xa40   :  { %5150 = vmatprep.subr.bf16.mxu1 %v6285_v62  ;;  %v6358_v62 = vld [vmem:[%s9626_s12 + $0x2b0] ss:$8 sps:$4 sm:$0xff]  }
 0xa43   :  { %5151 = vmatpush1.bf16.msra.mxu1 %v6283_v14  ;;  %v6363_v14 = vld [vmem:[%s9626_s12 + $0x2c4] ss:$8 sps:$4 sm:$0xff]  }
 0xa44   :  { %5152 = vmatprep.subr.bf16.mxu1 %v6288_v20  ;;  %v6361_v20 = vld [vmem:[%s9626_s12 + $0x2c0] ss:$8 sps:$4 sm:$0xff]  }
 0xa47   :  { %5153 = vmatpush1.bf16.msra.mxu1 %v6286_v12  ;;  %v6366_v12 = vld [vmem:[%s9626_s12 + $0x2d4] ss:$8 sps:$4 sm:$0xff]  }
 0xa48   :  { %5154 = vmatprep.subr.bf16.mxu1 %v6291_v50  ;;  %v6364_v50 = vld [vmem:[%s9626_s12 + $0x2d0] ss:$8 sps:$4 sm:$0xff]  }
 0xa4b   :  { %5155 = vmatpush1.bf16.msra.mxu1 %v6289_v61  ;;  %v6369_v61 = vld [vmem:[%s9626_s12 + $0x2e4] ss:$8 sps:$4 sm:$0xff]  }
 0xa4c   :  { %5156 = vmatprep.subr.bf16.mxu1 %v6294_v21  ;;  %v6367_v21 = vld [vmem:[%s9626_s12 + $0x2e0] ss:$8 sps:$4 sm:$0xff]  }
 0xa4f   :  { %5157 = vmatpush1.bf16.msra.mxu1 %v6292_v35  ;;  %v6372_v35 = vld [vmem:[%s9626_s12 + $0x2f4] ss:$8 sps:$4 sm:$0xff]  }
 0xa50   :  { %5158 = vmatprep.subr.bf16.mxu1 %v6297_v34  ;;  %v6370_v34 = vld [vmem:[%s9626_s12 + $0x2f0] ss:$8 sps:$4 sm:$0xff]  }
 0xa53   :  { %5159 = vmatpush1.bf16.msra.mxu1 %v6295_v53  ;;  %v6375_v53 = vld [vmem:[%s9626_s12 + $0x304] ss:$8 sps:$4 sm:$0xff]  }
 0xa54   :  { %5160 = vmatprep.subr.bf16.mxu1 %v6300_v13  ;;  %v6373_v13 = vld [vmem:[%s9626_s12 + $0x300] ss:$8 sps:$4 sm:$0xff]  }
 0xa57   :  { %5161 = vmatpush1.bf16.msra.mxu1 %v6298_v51  ;;  %v6378_v51 = vld [vmem:[%s9626_s12 + $0x314] ss:$8 sps:$4 sm:$0xff]  }
 0xa58   :  { %5162 = vmatprep.subr.bf16.mxu1 %v6303_v23  ;;  %v9971_v23 = vld [vmem:[#allocation51_spill] sm:$0xff] }
 0xa5b   :  { %5163 = vmatpush1.bf16.msra.mxu1 %v6301_v54  ;;  %v6376_v54 = vld [vmem:[%s9626_s12 + $0x310] ss:$8 sps:$4 sm:$0xff]  }
 0xa5c   :  { %5164 = vmatprep.subr.bf16.mxu1 %v6306_v63  ;;  %v6381_v63 = vld [vmem:[%s9626_s12 + $0x324] ss:$8 sps:$4 sm:$0xff]  }
 0xa5f   :  { %5165 = vmatpush1.bf16.msra.mxu1 %v6304_v9  ;;  %v6379_v9 = vld [vmem:[%s9626_s12 + $0x320] ss:$8 sps:$4 sm:$0xff]  }
 0xa60   :  { %5166 = vmatprep.subr.bf16.mxu1 %v6309_v11  ;;  %v6382_v11 = vld [vmem:[%s9626_s12 + $0x330] ss:$8 sps:$4 sm:$0xff]  }
 0xa63   :  { %5167 = vmatpush1.bf16.msra.mxu1 %v6307_v7  ;;  %v6387_v7 = vld [vmem:[%s9626_s12 + $0x344] ss:$8 sps:$4 sm:$0xff]  }
 0xa64   :  { %5168 = vmatprep.subr.bf16.mxu1 %v6312_v0  ;;  %v6385_v0 = vld [vmem:[%s9626_s12 + $0x340] ss:$8 sps:$4 sm:$0xff]  }
 0xa67   :  { %5169 = vmatpush1.bf16.msra.mxu1 %v6310_v27  ;;  %v6390_v27 = vld [vmem:[%s9626_s12 + $0x354] ss:$8 sps:$4 sm:$0xff]  }
 0xa68   :  { %5170 = vmatprep.subr.bf16.mxu1 %v6315_v30  ;;  %v6388_v30 = vld [vmem:[%s9626_s12 + $0x350] ss:$8 sps:$4 sm:$0xff]  }
 0xa6b   :  { %5171 = vmatpush1.bf16.msra.mxu1 %v6313_v18  ;;  %v6393_v18 = vld [vmem:[%s9626_s12 + $0x364] ss:$8 sps:$4 sm:$0xff]  }
 0xa6c   :  { %5172 = vmatprep.subr.bf16.mxu1 %v6318_v37  ;;  %v6391_v37 = vld [vmem:[%s9626_s12 + $0x360] ss:$8 sps:$4 sm:$0xff]  }
 0xa6f   :  { %5173 = vmatpush1.bf16.msra.mxu1 %v6316_v39  ;;  %v6396_v39 = vld [vmem:[%s9626_s12 + $0x374] ss:$8 sps:$4 sm:$0xff]  }
 0xa70   :  { %5174 = vmatprep.subr.bf16.mxu1 %v6321_v42  ;;  %v6394_v42 = vld [vmem:[%s9626_s12 + $0x370] ss:$8 sps:$4 sm:$0xff]  }
 0xa73   :  { %5175 = vmatpush1.bf16.msra.mxu1 %v6319_v40  ;;  %v6399_v40 = vld [vmem:[%s9626_s12 + $0x384] ss:$8 sps:$4 sm:$0xff]  }
 0xa74   :  { %5176 = vmatprep.subr.bf16.mxu1 %v6324_v22  ;;  %v6397_v22 = vld [vmem:[%s9626_s12 + $0x380] ss:$8 sps:$4 sm:$0xff]  }
 0xa77   :  { %5177 = vmatpush1.bf16.msra.mxu1 %v6322_v16  ;;  %v6402_v16 = vld [vmem:[%s9626_s12 + $0x394] ss:$8 sps:$4 sm:$0xff]  }
 0xa78   :  { %5187 = vmatprep.subr.bf16.mxu1 %v6327_v1  ;;  %v6400_v1 = vld [vmem:[%s9626_s12 + $0x390] ss:$8 sps:$4 sm:$0xff]  }
 0xa7a   :  { %5179 = vmatmul.mubr.bf16.vlgmr.msra.gmra.mrb[76].mxu1 %v8933_v25  ;;  %v6422_v25 = vld [vmem:[%s9627_s15] sm:$0xff]  }
 0xa7b   :  { %5188 = vmatpush1.bf16.msra.mxu1 %v6325_v60  ;;  %5219 = vmatprep.mubr.bf16.mxu1 %v9048_v24  ;;  %v6424_v24 = vld [vmem:[%s9627_s15 + $0x8] sm:$0xff]  }
 0xa7c   :  { %5189 = vmatprep.subr.bf16.mxu1 %v6330_v41  ;;  %5987 = vmatpush3.bf16.msra.mxu0 %v6422_v25  ;;  %v6405_v60 = vld [vmem:[%s9626_s12 + $0x3a4] ss:$8 sps:$4 sm:$0xff]   ;;  %v6403_v41 = vld [vmem:[%s9626_s12 + $0x3a0] ss:$8 sps:$4 sm:$0xff]  }
 0xa7d   :  { %5988 = vmatprep.subr.bf16.mxu0 %v6423_v29  ;;  %v6409_v25 = vld [vmem:[%s9626_s12 + $0x3c0] ss:$8 sps:$4 sm:$0xff]   ;;  %v6412_v29 = vld [vmem:[%s9626_s12 + $0x3d0] ss:$8 sps:$4 sm:$0xff]  }
 0xa7f   :  { %5190 = vmatpush1.bf16.msra.mxu1 %v6328_v31  ;;  %v6408_v31 = vld [vmem:[%s9626_s12 + $0x3b4] ss:$8 sps:$4 sm:$0xff]  }
 0xa80   :  { %5191 = vmatprep.subr.bf16.mxu1 %v6333_v4  ;;  %5989 = vmatpush3.bf16.msra.mxu0 %v6424_v24  ;;  %v6406_v4 = vld [vmem:[%s9626_s12 + $0x3b0] ss:$8 sps:$4 sm:$0xff]   ;;  %v6417_v24 = vld [vmem:[%s9626_s12 + $0x3e4] ss:$8 sps:$4 sm:$0xff]  }
 0xa81   :  { %5990 = vmatprep.subr.bf16.mxu0 %v6425_v6  ;;  %v6415_v6 = vld [vmem:[%s9626_s12 + $0x3e0] ss:$8 sps:$4 sm:$0xff]  }
 0xa83   :  { %5192 = vmatpush1.bf16.msra.mxu1 %v6331_v8  ;;  %v6414_v8 = vld [vmem:[%s9626_s12 + $0x3d4] ss:$8 sps:$4 sm:$0xff]  }
 0xa84   :  { %5193 = vmatprep.subr.bf16.mxu1 %v6336_v26  ;;  %5991 = vmatpush3.bf16.msra.mxu0 %v6426_v38  ;;  %v6420_v26 = vld [vmem:[%s9626_s12 + $0x3f4] ss:$8 sps:$4 sm:$0xff]   ;;  %v6432_v38 = vld [vmem:[%s9627_s15 + $0x28] sm:$0xff]  }
 0xa85   :  { %5992 = vmatprep.subr.bf16.mxu0 %v6427_v52  ;;  %v6433_v52 = vld [vmem:[%s9627_s15 + $0x70] sm:$0xff]  }
 0xa87   :  { %5194 = vmatpush1.bf16.msra.mxu1 %v6334_v2  ;;  %v6418_v2 = vld [vmem:[%s9626_s12 + $0x3f0] ss:$8 sps:$4 sm:$0xff]  }
 0xa88   :  { %5195 = vmatprep.subr.bf16.mxu1 %v6339_v55  ;;  %5993 = vmatpush3.bf16.msra.mxu0 %v6428_v43  ;;  %v4335_v55 = vpack.c.bf16 %v9254_v47, %v9254_v47  ;;  %v6434_v43 = vld [vmem:[%s9627_s15 + $0x30] sm:$0xff]   ;;  %v6435_v47 = vld [vmem:[%s9627_s15 + $0x78] sm:$0xff]  }
 0xa89   :  { %5994 = vmatprep.subr.bf16.mxu0 %v6429_v58  ;;  %v5269_v58 = vld [vmem:[%s9628_s13] sm:$0x3] }
 0xa8b   :  { %5196 = vmatpush1.bf16.msra.mxu1 %v6337_v57  ;;  %v6436_v57 = vld [vmem:[%s9627_s15 + $0x38] sm:$0xff]  }
 0xa8c   :  { %5197 = vmatprep.subr.bf16.mxu1 %v6342_v45  ;;  %5995 = vmatpush3.bf16.msra.mxu0 %v6430_v36  ;;  %v5283_v45 = vld [vmem:[%s9629_s14] sm:$0x3]  ;;  %v9972_v36 = vld [vmem:[#allocation35_spill] sm:$0xff] }
 0xa8d   :  { %5996 = vmatprep.subr.bf16.mxu0 %v6431_v3  ;;  %v9973_v3 = vld [vmem:[#allocation36_spill] sm:$0xff] }
 0xa8f   :  { %5198 = vmatpush1.bf16.msra.mxu1 %v6340_v19  ;;  %v5274_v19 = vrot.slane %v5269_v58, %v9972_v36 }
 0xa90   :  { %5199 = vmatprep.subr.bf16.mxu1 %v6345_v56  ;;  %5997 = vmatpush3.bf16.msra.mxu0 %v6432_v38  ;;  %v5278_v56 = vrot.slane %v5269_v58, %v9973_v3 }
 0xa91   :  { %5998 = vmatprep.subr.bf16.mxu0 %v6433_v52 }
 0xa93   :  { %5200 = vmatpush1.bf16.msra.mxu1 %v6343_v33  ;;  %v5288_v33 = vrot.slane %v5283_v45, %v9972_v36 }
 0xa94   :  { %5201 = vmatprep.subr.bf16.mxu1 %v6348_v5  ;;  %5999 = vmatpush3.bf16.msra.mxu0 %v6434_v43 }
 0xa95   :  { %6000 = vmatprep.subr.bf16.mxu0 %v6435_v47 }
 0xa97   :  { %5202 = vmatpush1.bf16.msra.mxu1 %v6346_v49  ;;  %v5292_v49 = vrot.slane %v5283_v45, %v9973_v3 }
 0xa98   :  { %5203 = vmatprep.subr.bf16.mxu1 %v6351_v48  ;;  %6001 = vmatpush3.bf16.msra.mxu0 %v6436_v57 }
 0xa9b   :  { %5204 = vmatpush1.bf16.msra.mxu1 %v6349_v17 }
 0xa9c   :  { %5205 = vmatprep.subr.bf16.mxu1 %v6354_v46 }
 0xa9f   :  { %5206 = vmatpush1.bf16.msra.mxu1 %v6352_v15 }
 0xaa0   :  { %5207 = vmatprep.subr.bf16.mxu1 %v6357_v32 }
 0xaa3   :  { %5208 = vmatpush1.bf16.msra.mxu1 %v6355_v44 }
 0xaa4   :  { %5209 = vmatprep.subr.bf16.mxu1 %v6360_v59 }
 0xaa7   :  { %5210 = vmatpush1.bf16.msra.mxu1 %v6358_v62 }
 0xaa8   :  { %5211 = vmatprep.subr.bf16.mxu1 %v6363_v14 }
 0xaab   :  { %5212 = vmatpush1.bf16.msra.mxu1 %v6361_v20 }
 0xaac   :  { %5213 = vmatprep.subr.bf16.mxu1 %v6366_v12 }
 0xaaf   :  { %5214 = vmatpush1.bf16.msra.mxu1 %v6364_v50 }
 0xab0   :  { %5215 = vmatprep.subr.bf16.mxu1 %v6369_v61  ;;  %v5964_v61 = vld [vmem:[%s9630_s16] ss:$0 sm:$0xff] }
 0xab3   :  { %5216 = vmatpush1.bf16.msra.mxu1 %v6367_v21 }
 0xab4   :  { %5217 = vmatprep.subr.bf16.mxu1 %v6372_v35 }
 0xab7   :  { %5218 = vmatpush1.bf16.msra.mxu1 %v6370_v34 }
 0xab8   :  { %5228 = vmatprep.subr.bf16.mxu1 %v6375_v53 }
 0xaba   :  { %5220 = vmatmul.mubr.bf16.vlgmr.msra.gmra.mrb[76].mxu1 %v9102_v28  ;;  %v6384_v28 = vld [vmem:[%s9626_s12 + $0x334] ss:$8 sps:$4 sm:$0xff]  }
 0xabb   :  { %5229 = vmatpush1.bf16.msra.mxu1 %v6373_v13  ;;  %5260 = vmatprep.mubr.bf16.mxu1 %v9971_v23 }
 0xabc   :  { %5230 = vmatprep.subr.bf16.mxu1 %v6378_v51 }
 0xabf   :  { %5231 = vmatpush1.bf16.msra.mxu1 %v6376_v54 }
 0xac0   :  { %5232 = vmatprep.subr.bf16.mxu1 %v6381_v63 }
 0xac3   :  { %5233 = vmatpush1.bf16.msra.mxu1 %v6379_v9 }
 0xac4   :  { %5234 = vmatprep.subr.bf16.mxu1 %v6384_v28 }
 0xac7   :  { %5235 = vmatpush1.bf16.msra.mxu1 %v6382_v11 }
 0xac8   :  { %5236 = vmatprep.subr.bf16.mxu1 %v6387_v7 }
 0xacb   :  { %5237 = vmatpush1.bf16.msra.mxu1 %v6385_v0 }
 0xacc   :  { %5238 = vmatprep.subr.bf16.mxu1 %v6390_v27 }
 0xacf   :  { %5239 = vmatpush1.bf16.msra.mxu1 %v6388_v30 }
 0xad0   :  { %5240 = vmatprep.subr.bf16.mxu1 %v6393_v18 }
 0xad3   :  { %5241 = vmatpush1.bf16.msra.mxu1 %v6391_v37 }
 0xad4   :  { %5242 = vmatprep.subr.bf16.mxu1 %v6396_v39 }
 0xad7   :  { %5243 = vmatpush1.bf16.msra.mxu1 %v6394_v42 }
 0xad8   :  { %5244 = vmatprep.subr.bf16.mxu1 %v6399_v40 }
 0xadb   :  { %5245 = vmatpush1.bf16.msra.mxu1 %v6397_v22 }
 0xadc   :  { %5246 = vmatprep.subr.bf16.mxu1 %v6402_v16 }
 0xadf   :  { %5247 = vmatpush1.bf16.msra.mxu1 %v6400_v1 }
 0xae0   :  { %5248 = vmatprep.subr.bf16.mxu1 %v6405_v60 }
 0xae3   :  { %5249 = vmatpush1.bf16.msra.mxu1 %v6403_v41 }
 0xae4   :  { %5250 = vmatprep.subr.bf16.mxu1 %v6408_v31 }
 0xae7   :  { %5251 = vmatpush1.bf16.msra.mxu1 %v6406_v4 }
 0xae8   :  { %5252 = vmatprep.subr.bf16.mxu1 %v6411_v10 }
 0xaeb   :  { %5253 = vmatpush1.bf16.msra.mxu1 %v6409_v25 }
 0xaec   :  { %5254 = vmatprep.subr.bf16.mxu1 %v6414_v8 }
 0xaef   :  { %5255 = vmatpush1.bf16.msra.mxu1 %v6412_v29 }
 0xaf0   :  { %5256 = vmatprep.subr.bf16.mxu1 %v6417_v24 }
 0xaf3   :  { %5257 = vmatpush1.bf16.msra.mxu1 %v6415_v6 }
 0xaf4   :  { %5258 = vmatprep.subr.bf16.mxu1 %v6420_v26 }
 0xaf7   :  { %5259 = vmatpush1.bf16.msra.mxu1 %v6418_v2 }
 0xafa   :  { %5261 = vmatmul.mubr.bf16.vlgmr.msra.gmra.mrb[76].mxu1 %v4335_v55 }
 0xbcd   :  { %v5262_v5 = vpop.f32.mrb[76].mxu1 }
 0xbce   :  { %v5281_v48 = vmul.f32 %v5274_v19, %v5262_v5  ;;  %v5264_v17 = vpop.f32.mrb[77].mxu1 }
 0xbcf   :  { %v5282_v46 = vmul.f32 %v5278_v56, %v5264_v17  ;;  %v5266_v15 = vpop.f32.mrb[78].mxu1 }
 0xbd0   :  { %v5295_v32 = vadd.f32 %v5288_v33, %v5281_v48  ;;  %v5267_v44 = vpop.f32.mrb[79].mxu1 }
 0xbd1   :  { %v5296_v59 = vadd.f32 %v5292_v49, %v5282_v46 }
 0xbd2   :  { %v5297_v62 = vmax.f32 %v5295_v32, 0.0 }
 0xbd3   :  { %v5298_v14 = vmax.f32 %v5296_v59, 0.0 }
 0xbd4   :  { %v5299_v12 = vpack.c.bf16 %v5297_v62, %v5297_v62 }
 0xbd5   :  { %v5300_v20 = vpack.c.bf16 %v5298_v14, %v5298_v14 }
 0xbd7   :  { %5468 = vmatprep.mubr.bf16.mxu0 %v5300_v20 }
 0xbd8   :  { %5469 = vmatmul.mubr.bf16.vlgmr.msra.gmra.mrb[124].mxu0 %v5299_v12 }
 0xcab   :  { %v6002_v50 = vpop.f32.mrb[124].mxu0 }
 0xcac   :  { %v6003_v21 = vpop.f32.mrb[125].mxu0 }
 0xcad   :  { %v6004_v35 = vadd.f32 %v6003_v21, %v6002_v50  ;;  %v6005_v34 = vpop.f32.mrb[126].mxu0 }
 0xcae   :  { %v6006_v53 = vpop.f32.mrb[127].mxu0 }
 0xcaf   :  { %v5471_v13 = vadd.f32 %v6004_v35, %v5964_v61 }
 0xcb1   :  { %5476 = vst [vmem:[%s9631_s17] sm:$0xff] %v5471_v13 }

</bundles_post_ra>
